<compile_context>
chip_gen: v5e
topology: v5e:2x2
jax: 0.10.0
libtpu: 0.0.40
codegen_flags: <defaults>
</compile_context>

<pallas_src>
import math

import jax
import jax.numpy as jnp
import numpy as np
from jax.experimental import pallas as pl
from jax.experimental.pallas import tpu as pltpu

GN_EPS = 1e-5   # nn.GroupNorm default eps (module's self.eps equals this and is unused)
COL0 = 8        # interior column offset inside W-padded buffers (sublane aligned)
WPAD = 16       # total extra padded columns (8 left + 8 right)


def _spade_kernel(x_ref, seg_ref, mean_ref, rstd_ref, w1_ref, b1_ref,
                  wgb_ref, bgb_ref, out_ref, apad_ref, lhs_ref):
    TH = x_ref.shape[1]
    W = x_ref.shape[2]
    Cn = x_ref.shape[3]
    Cl = seg_ref.shape[4]
    nh = b1_ref.shape[1]

    s = pl.program_id(1)
    H = TH * pl.num_programs(1)

    def conv3x3(read_tap, rows, cin, w_ref, b_ref, cout):
        # Fold all 9 taps into the MXU contraction dimension:
        #   (rows*W, 9*cin) @ (9*cin, cout), f32 accumulation.
        # The im2col LHS is staged through lhs_ref with static lane-offset
        # (masked) stores -- robust lowering, no minor-dim concatenate.
        for k in range(9):
            dy, dx = k // 3, k % 3
            lhs_ref[0:rows, :, k * cin:(k + 1) * cin] = read_tap(dy, dx)
        lhs = lhs_ref[0:rows, :, 0:9 * cin].reshape(rows * W, 9 * cin)
        acc = jnp.dot(lhs, w_ref[...], preferred_element_type=jnp.float32)
        return (acc + b_ref[...]).reshape(rows, W, cout)

    # ---- shared conv + ReLU over the strip's segmap: TH+2 activation rows
    # (a 1-row halo on each side for the gamma/beta conv).  seg_ref already
    # carries the zero padding (2 rows, aligned columns) from the host side.
    seg = seg_ref[0, 0]                                      # (TH+4, W+WPAD, Cl) bf16
    actv = conv3x3(
        lambda dy, dx: seg[dy:dy + TH + 2, COL0 - 1 + dx:COL0 - 1 + dx + W, :],
        TH + 2, Cl, w1_ref, b1_ref, nh)
    actv = jnp.maximum(actv, 0.0)

    # Halo rows outside the real image must be exact zeros: the reference conv
    # zero-pads the *activation*, not a conv of the zero-padded segmap.
    row = s * TH - 1 + jax.lax.broadcasted_iota(jnp.int32, (TH + 2, 1, 1), 0)
    actv = jnp.where((row >= 0) & (row < H), actv, 0.0)

    # ---- stage activations into the column-padded scratch (interior starts at
    # sublane-aligned column COL0).  Only the two border columns the taps read
    # are zeroed, re-done every step (scratch state must not be assumed across
    # cores when both grid axes are "parallel").
    zcol = jnp.zeros((TH + 2, 1, nh), jnp.bfloat16)
    apad_ref[:, COL0 - 1:COL0, :] = zcol
    apad_ref[:, COL0 + W:COL0 + W + 1, :] = zcol
    apad_ref[:, COL0:COL0 + W, :] = actv.astype(jnp.bfloat16)

    # ---- fused gamma/beta conv (Cout = 2*Cn), f32 accumulation.
    gb = conv3x3(
        lambda dy, dx: apad_ref[dy:dy + TH, COL0 - 1 + dx:COL0 - 1 + dx + W, :],
        TH, nh, wgb_ref, bgb_ref, 2 * Cn)
    gamma = gb[:, :, :Cn]
    beta = gb[:, :, Cn:]

    # ---- epilogue: GroupNorm with precomputed per-sample stats, fused with SPADE.
    x = x_ref[0].astype(jnp.float32)
    x_n = (x - mean_ref[...]) * rstd_ref[...]
    out_ref[0] = (x_n * (1.0 + gamma) + beta).astype(out_ref.dtype)


def _nearest_resize_nchw(seg, out_h, out_w):
    # F.interpolate(mode='nearest'): src = floor(dst * in / out); integer index
    # math avoids f32 rounding drift at boundary positions.
    _, _, h_in, w_in = seg.shape
    h_idx = (jnp.arange(out_h) * h_in) // out_h
    w_idx = (jnp.arange(out_w) * w_in) // out_w
    return seg[:, :, h_idx[:, None], w_idx[None, :]]


def spade_group_norm(x, segmap, params, *, tile_h=8):
    """x: (N, norm_nc, H, W); segmap: (N, label_nc, Hs, Ws); NCHW like PyTorch."""
    N, Cn, H, W = x.shape
    Cl = segmap.shape[1]
    nh = params["b_shared"].shape[0]

    TH = math.gcd(H, tile_h)      # production: size TH to VMEM (v7x: 64 MiB)
    S = H // TH
    Cmax = max(Cl, nh)

    # --- GroupNorm(1, Cn, affine=False) statistics per sample over (C, H, W):
    # tiny XLA reduce; keeps both grid axes of the main kernel fully parallel.
    xf = x.astype(jnp.float32)
    mean = jnp.mean(xf, axis=(1, 2, 3))
    var = jnp.mean(jnp.square(xf - mean[:, None, None, None]), axis=(1, 2, 3))
    rstd = jax.lax.rsqrt(var + GN_EPS)
    mean = mean.reshape(N, 1, 1)
    rstd = rstd.reshape(N, 1, 1)

    # --- nearest resize + NHWC + bf16 + zero pad (2 rows top/bottom for the
    # conv-of-conv halo, 8 aligned columns each side) + overlapping H strips.
    # TODO(synk): fold resize/strip gather into the kernel via pl.ANY + manual DMA.
    seg = _nearest_resize_nchw(segmap, H, W)
    seg = jnp.transpose(seg, (0, 2, 3, 1)).astype(jnp.bfloat16)          # (N,H,W,Cl)
    seg = jnp.pad(seg, ((0, 0), (2, 2), (COL0, WPAD - COL0), (0, 0)))
    rows = (jnp.arange(S) * TH)[:, None] + jnp.arange(TH + 4)[None, :]
    seg_strips = seg[:, rows]                                            # (N,S,TH+4,W+WPAD,Cl)

    # TODO(synk): NHWC-native consumers could skip both transposes.
    x_nhwc = jnp.transpose(x, (0, 2, 3, 1))

    # --- weights: HWIO -> (9*Cin, Cout): taps folded into the contraction dim;
    # gamma/beta fused along Cout; bf16 operands, f32 accumulation.
    w1 = params["w_shared"].reshape(9 * Cl, nh).astype(jnp.bfloat16)
    b1 = params["b_shared"].reshape(1, nh).astype(jnp.float32)
    wgb = jnp.concatenate([params["w_gamma"], params["w_beta"]], axis=-1)
    wgb = wgb.reshape(9 * nh, 2 * Cn).astype(jnp.bfloat16)
    bgb = jnp.concatenate([params["b_gamma"], params["b_beta"]]).reshape(1, 2 * Cn)
    bgb = bgb.astype(jnp.float32)

    grid_spec = pltpu.PrefetchScalarGridSpec(
        num_scalar_prefetch=0,
        grid=(N, S),
        in_specs=[
            pl.BlockSpec((1, TH, W, Cn), lambda n, s: (n, s, 0, 0)),
            pl.BlockSpec((1, 1, TH + 4, W + WPAD, Cl), lambda n, s: (n, s, 0, 0, 0)),
            pl.BlockSpec((1, 1, 1), lambda n, s: (n, 0, 0)),
            pl.BlockSpec((1, 1, 1), lambda n, s: (n, 0, 0)),
            pl.BlockSpec((9 * Cl, nh), lambda n, s: (0, 0)),
            pl.BlockSpec((1, nh), lambda n, s: (0, 0)),
            pl.BlockSpec((9 * nh, 2 * Cn), lambda n, s: (0, 0)),
            pl.BlockSpec((1, 2 * Cn), lambda n, s: (0, 0)),
        ],
        out_specs=pl.BlockSpec((1, TH, W, Cn), lambda n, s: (n, s, 0, 0)),
        scratch_shapes=[
            pltpu.VMEM((TH + 2, W + WPAD, nh), jnp.bfloat16),   # padded activations
            pltpu.VMEM((TH + 2, W, 9 * Cmax), jnp.bfloat16),    # im2col staging (reused)
        ],
    )

    out_nhwc = pl.pallas_call(
        _spade_kernel,
        out_shape=jax.ShapeDtypeStruct((N, H, W, Cn), x.dtype),
        grid_spec=grid_spec,
        compiler_params=pltpu.CompilerParams(
            # stats precomputed -> every (batch, strip) is independent
            dimension_semantics=("parallel", "parallel"),
            # re-derive per generation; <= physical VMEM on v5e/v6e/v7x
            vmem_limit_bytes=64 * 1024 * 1024,
        ),
    )(x_nhwc, seg_strips, mean, rstd, w1, b1, wgb, bgb)

    return jnp.transpose(out_nhwc, (0, 3, 1, 2))                 # back to NCHW


def init_params(key, norm_nc, label_nc):
    nh = norm_nc
    ks = jax.random.split(key, 6)

    def conv_w(k, cin, cout):
        bound = 1.0 / np.sqrt(cin * 9)
        return jax.random.uniform(k, (3, 3, cin, cout), jnp.float32, -bound, bound)

    def conv_b(k, cin, cout):
        bound = 1.0 / np.sqrt(cin * 9)
        return jax.random.uniform(k, (cout,), jnp.float32, -bound, bound)

    return {
        "w_shared": conv_w(ks[0], label_nc, nh),
        "b_shared": conv_b(ks[1], label_nc, nh),
        "w_gamma": conv_w(ks[2], nh, norm_nc),
        "b_gamma": conv_b(ks[3], nh, norm_nc),
        "w_beta": conv_w(ks[4], nh, norm_nc),
        "b_beta": conv_b(ks[5], nh, norm_nc),
    }


def reference(x, segmap, params):
    # Pure-JAX reference mirroring the PyTorch forward (f32, HIGHEST precision).
    N, Cn, H, W = x.shape
    xf = x.astype(jnp.float32)

    mean = xf.mean(axis=(1, 2, 3), keepdims=True)
    var = ((xf - mean) ** 2).mean(axis=(1, 2, 3), keepdims=True)
    x_n = (xf - mean) / jnp.sqrt(var + GN_EPS)

    seg = _nearest_resize_nchw(segmap, H, W).astype(jnp.float32)

    def conv(z, w_hwio, b):
        w_oihw = jnp.transpose(w_hwio, (3, 2, 0, 1))
        y = jax.lax.conv_general_dilated(
            z, w_oihw, (1, 1), [(1, 1), (1, 1)],
            dimension_numbers=("NCHW", "OIHW", "NCHW"),
            precision=jax.lax.Precision.HIGHEST)
        return y + b.reshape(1, -1, 1, 1)

    actv = jax.nn.relu(conv(seg, params["w_shared"], params["b_shared"]))
    gamma = conv(actv, params["w_gamma"], params["b_gamma"])
    beta = conv(actv, params["w_beta"], params["b_beta"])
    return x_n * (1.0 + gamma) + beta


if __name__ == "__main__":
    key = jax.random.PRNGKey(0)
    k_x, k_s, k_p = jax.random.split(key, 3)

    N, norm_nc, label_nc, H, W = 2, 4, 3, 16, 16
    x = jax.random.normal(k_x, (N, norm_nc, H, W), jnp.float32)
    segmap = jax.random.normal(k_s, (N, label_nc, 8, 8), jnp.float32)
    params = init_params(k_p, norm_nc, label_nc)

    out = jax.block_until_ready(spade_group_norm(x, segmap, params))
    ref = reference(x, segmap, params)

    assert out.shape == (N, norm_nc, H, W)
    # Tolerance reflects the deliberate bf16 conv operands (f32 accumulation)
    # vs the f32 / Precision.HIGHEST reference.
    assert np.allclose(np.asarray(out), np.asarray(ref), atol=5e-2, rtol=5e-2)
    print("KERNEL_OK")
</pallas_src>

<mosaic_0001>
module attributes {stable_mosaic.version = 11 : i64} {
  func.func @_spade_kernel(%arg0: i32, %arg1: i32, %arg2: memref<1x8x16x4xf32, #tpu.memory_space<vmem>>, %arg3: memref<1x1x12x32x3xbf16, #tpu.memory_space<vmem>>, %arg4: memref<1x1x1xf32, #tpu.memory_space<vmem>>, %arg5: memref<1x1x1xf32, #tpu.memory_space<vmem>>, %arg6: memref<27x4xbf16, #tpu.memory_space<vmem>>, %arg7: memref<1x4xf32, #tpu.memory_space<vmem>>, %arg8: memref<36x8xbf16, #tpu.memory_space<vmem>>, %arg9: memref<1x8xf32, #tpu.memory_space<vmem>>, %arg10: memref<1x8x16x4xf32, #tpu.memory_space<vmem>>, %arg11: memref<10x32x4xbf16, #tpu.memory_space<vmem>>, %arg12: memref<10x16x36xbf16, #tpu.memory_space<vmem>>) attributes {dimension_semantics = [#tpu.dimension_semantics<parallel>, #tpu.dimension_semantics<parallel>], iteration_bounds = array<i64: 2, 2>, scalar_prefetch = 0 : i64, scratch_operands = 2 : i64, tpu.core_type = #tpu.core_type<tc>, window_params = [{transform_indices = @transform_0, window_bounds = array<i64: 1, 8, 16, 4>}, {transform_indices = @transform_1, window_bounds = array<i64: 1, 1, 12, 32, 3>}, {transform_indices = @transform_2, window_bounds = array<i64: 1, 1, 1>}, {transform_indices = @transform_3, window_bounds = array<i64: 1, 1, 1>}, {pipeline_mode = #tpu.pipeline_mode<synchronous>, transform_indices = @transform_4, window_bounds = array<i64: 27, 4>}, {pipeline_mode = #tpu.pipeline_mode<synchronous>, transform_indices = @transform_5, window_bounds = array<i64: 1, 4>}, {pipeline_mode = #tpu.pipeline_mode<synchronous>, transform_indices = @transform_6, window_bounds = array<i64: 36, 8>}, {pipeline_mode = #tpu.pipeline_mode<synchronous>, transform_indices = @transform_7, window_bounds = array<i64: 1, 8>}, {transform_indices = @transform_8, window_bounds = array<i64: 1, 8, 16, 4>}]} {
    %c0 = arith.constant 0 : index
    %c0_0 = arith.constant 0 : index
    %c0_1 = arith.constant 0 : index
    %c0_2 = arith.constant 0 : index
    %c0_3 = arith.constant 0 : index
    %0 = vector.load %arg3[%c0, %c0_0, %c0_1, %c0_2, %c0_3] : memref<1x1x12x32x3xbf16, #tpu.memory_space<vmem>>, vector<1x1x12x32x3xbf16>
    %1 = vector.shape_cast %0 : vector<1x1x12x32x3xbf16> to vector<12x32x3xbf16>
    %2 = vector.extract_strided_slice %1 {offsets = [0, 7, 0], sizes = [10, 16, 3], strides = [1, 1, 1]} : vector<12x32x3xbf16> to vector<10x16x3xbf16>
    %c0_4 = arith.constant 0 : index
    %c0_5 = arith.constant 0 : index
    %c0_6 = arith.constant 0 : index
    %3 = vector.load %arg12[%c0_4, %c0_5, %c0_6] : memref<10x16x36xbf16, #tpu.memory_space<vmem>>, vector<10x16x3xbf16>
    tpu.vector_store %arg12[%c0_4, %c0_5, %c0_6], %2 {strides = array<i32>} : memref<10x16x36xbf16, #tpu.memory_space<vmem>>, vector<10x16x3xbf16>,
    %4 = vector.extract_strided_slice %1 {offsets = [0, 8, 0], sizes = [10, 16, 3], strides = [1, 1, 1]} : vector<12x32x3xbf16> to vector<10x16x3xbf16>
    %c0_7 = arith.constant 0 : index
    %c0_8 = arith.constant 0 : index
    %c3 = arith.constant 3 : index
    %5 = vector.load %arg12[%c0_7, %c0_8, %c3] : memref<10x16x36xbf16, #tpu.memory_space<vmem>>, vector<10x16x3xbf16>
    tpu.vector_store %arg12[%c0_7, %c0_8, %c3], %4 {strides = array<i32>} : memref<10x16x36xbf16, #tpu.memory_space<vmem>>, vector<10x16x3xbf16>,
    %6 = vector.extract_strided_slice %1 {offsets = [0, 9, 0], sizes = [10, 16, 3], strides = [1, 1, 1]} : vector<12x32x3xbf16> to vector<10x16x3xbf16>
    %c0_9 = arith.constant 0 : index
    %c0_10 = arith.constant 0 : index
    %c6 = arith.constant 6 : index
    %7 = vector.load %arg12[%c0_9, %c0_10, %c6] : memref<10x16x36xbf16, #tpu.memory_space<vmem>>, vector<10x16x3xbf16>
    tpu.vector_store %arg12[%c0_9, %c0_10, %c6], %6 {strides = array<i32>} : memref<10x16x36xbf16, #tpu.memory_space<vmem>>, vector<10x16x3xbf16>,
    %8 = vector.extract_strided_slice %1 {offsets = [1, 7, 0], sizes = [10, 16, 3], strides = [1, 1, 1]} : vector<12x32x3xbf16> to vector<10x16x3xbf16>
    %c0_11 = arith.constant 0 : index
    %c0_12 = arith.constant 0 : index
    %c9 = arith.constant 9 : index
    %9 = vector.load %arg12[%c0_11, %c0_12, %c9] : memref<10x16x36xbf16, #tpu.memory_space<vmem>>, vector<10x16x3xbf16>
    tpu.vector_store %arg12[%c0_11, %c0_12, %c9], %8 {strides = array<i32>} : memref<10x16x36xbf16, #tpu.memory_space<vmem>>, vector<10x16x3xbf16>,
    %10 = vector.extract_strided_slice %1 {offsets = [1, 8, 0], sizes = [10, 16, 3], strides = [1, 1, 1]} : vector<12x32x3xbf16> to vector<10x16x3xbf16>
    %c0_13 = arith.constant 0 : index
    %c0_14 = arith.constant 0 : index
    %c12 = arith.constant 12 : index
    %11 = vector.load %arg12[%c0_13, %c0_14, %c12] : memref<10x16x36xbf16, #tpu.memory_space<vmem>>, vector<10x16x3xbf16>
    tpu.vector_store %arg12[%c0_13, %c0_14, %c12], %10 {strides = array<i32>} : memref<10x16x36xbf16, #tpu.memory_space<vmem>>, vector<10x16x3xbf16>,
    %12 = vector.extract_strided_slice %1 {offsets = [1, 9, 0], sizes = [10, 16, 3], strides = [1, 1, 1]} : vector<12x32x3xbf16> to vector<10x16x3xbf16>
    %c0_15 = arith.constant 0 : index
    %c0_16 = arith.constant 0 : index
    %c15 = arith.constant 15 : index
    %13 = vector.load %arg12[%c0_15, %c0_16, %c15] : memref<10x16x36xbf16, #tpu.memory_space<vmem>>, vector<10x16x3xbf16>
    tpu.vector_store %arg12[%c0_15, %c0_16, %c15], %12 {strides = array<i32>} : memref<10x16x36xbf16, #tpu.memory_space<vmem>>, vector<10x16x3xbf16>,
    %14 = vector.extract_strided_slice %1 {offsets = [2, 7, 0], sizes = [10, 16, 3], strides = [1, 1, 1]} : vector<12x32x3xbf16> to vector<10x16x3xbf16>
    %c0_17 = arith.constant 0 : index
    %c0_18 = arith.constant 0 : index
    %c18 = arith.constant 18 : index
    %15 = vector.load %arg12[%c0_17, %c0_18, %c18] : memref<10x16x36xbf16, #tpu.memory_space<vmem>>, vector<10x16x3xbf16>
    tpu.vector_store %arg12[%c0_17, %c0_18, %c18], %14 {strides = array<i32>} : memref<10x16x36xbf16, #tpu.memory_space<vmem>>, vector<10x16x3xbf16>,
    %16 = vector.extract_strided_slice %1 {offsets = [2, 8, 0], sizes = [10, 16, 3], strides = [1, 1, 1]} : vector<12x32x3xbf16> to vector<10x16x3xbf16>
    %c0_19 = arith.constant 0 : index
    %c0_20 = arith.constant 0 : index
    %c21 = arith.constant 21 : index
    %17 = vector.load %arg12[%c0_19, %c0_20, %c21] : memref<10x16x36xbf16, #tpu.memory_space<vmem>>, vector<10x16x3xbf16>
    tpu.vector_store %arg12[%c0_19, %c0_20, %c21], %16 {strides = array<i32>} : memref<10x16x36xbf16, #tpu.memory_space<vmem>>, vector<10x16x3xbf16>,
    %18 = vector.extract_strided_slice %1 {offsets = [2, 9, 0], sizes = [10, 16, 3], strides = [1, 1, 1]} : vector<12x32x3xbf16> to vector<10x16x3xbf16>
    %c0_21 = arith.constant 0 : index
    %c0_22 = arith.constant 0 : index
    %c24 = arith.constant 24 : index
    %19 = vector.load %arg12[%c0_21, %c0_22, %c24] : memref<10x16x36xbf16, #tpu.memory_space<vmem>>, vector<10x16x3xbf16>
    tpu.vector_store %arg12[%c0_21, %c0_22, %c24], %18 {strides = array<i32>} : memref<10x16x36xbf16, #tpu.memory_space<vmem>>, vector<10x16x3xbf16>,
    %c0_23 = arith.constant 0 : index
    %c0_24 = arith.constant 0 : index
    %c0_25 = arith.constant 0 : index
    %20 = vector.load %arg12[%c0_23, %c0_24, %c0_25] : memref<10x16x36xbf16, #tpu.memory_space<vmem>>, vector<10x16x27xbf16>
    %21 = vector.shape_cast %20 : vector<10x16x27xbf16> to vector<160x27xbf16>
    %c0_26 = arith.constant 0 : index
    %c0_27 = arith.constant 0 : index
    %22 = vector.load %arg6[%c0_26, %c0_27] : memref<27x4xbf16, #tpu.memory_space<vmem>>, vector<27x4xbf16>
    %cst = arith.constant dense<0.000000e+00> : vector<160x4xf32>
    %23 = tpu.matmul %21, %22, %cst {dimension_numbers = #tpu.dot_dimension_numbers<[1], [0], [0], [1], [0, 0, 1, 1], [], []>} : vector<160x27xbf16>, vector<27x4xbf16>, vector<160x4xf32> -> vector<160x4xf32>
    %c0_28 = arith.constant 0 : index
    %c0_29 = arith.constant 0 : index
    %24 = vector.load %arg7[%c0_28, %c0_29] : memref<1x4xf32, #tpu.memory_space<vmem>>, vector<1x4xf32>
    %25 = vector.broadcast %24 : vector<1x4xf32> to vector<160x4xf32>
    %26 = arith.addf %23, %25 : vector<160x4xf32>
    %27 = vector.shape_cast %26 : vector<160x4xf32> to vector<10x16x4xf32>
    %cst_30 = arith.constant 0.000000e+00 : f32
    %28 = vector.broadcast %cst_30 : f32 to vector<10x16x4xf32>
    %29 = arith.maximumf %27, %28 : vector<10x16x4xf32>
    %c8_i32 = arith.constant 8 : i32
    %30 = arith.muli %arg1, %c8_i32 : i32
    %c1_i32 = arith.constant 1 : i32
    %31 = arith.subi %30, %c1_i32 : i32
    %32 = tpu.iota {dimensions = array<i32: 0>} : vector<10x1x1xi32>
    %33 = vector.broadcast %31 : i32 to vector<10x1x1xi32>
    %34 = arith.addi %33, %32 : vector<10x1x1xi32>
    %c0_i32 = arith.constant 0 : i32
    %35 = vector.broadcast %c0_i32 : i32 to vector<10x1x1xi32>
    %36 = arith.cmpi sge, %34, %35 : vector<10x1x1xi32>
    %c16_i32 = arith.constant 16 : i32
    %37 = vector.broadcast %c16_i32 : i32 to vector<10x1x1xi32>
    %38 = arith.cmpi slt, %34, %37 : vector<10x1x1xi32>
    %39 = arith.andi %36, %38 : vector<10x1x1xi1>
    %cst_31 = arith.constant 0.000000e+00 : f32
    %40 = vector.shape_cast %39 : vector<10x1x1xi1> to vector<10x1x1xi1>
    %41 = vector.broadcast %40 : vector<10x1x1xi1> to vector<10x16x4xi1>
    %42 = vector.broadcast %cst_31 : f32 to vector<10x16x4xf32>
    %43 = arith.select %41, %29, %42 : vector<10x16x4xi1>, vector<10x16x4xf32>
    %cst_32 = arith.constant 0.000000e+00 : bf16
    %44 = vector.broadcast %cst_32 : bf16 to vector<10x1x4xbf16>
    %c0_33 = arith.constant 0 : index
    %c7 = arith.constant 7 : index
    %c0_34 = arith.constant 0 : index
    %45 = vector.load %arg11[%c0_33, %c7, %c0_34] : memref<10x32x4xbf16, #tpu.memory_space<vmem>>, vector<10x1x4xbf16>
    tpu.vector_store %arg11[%c0_33, %c7, %c0_34], %44 {strides = array<i32>} : memref<10x32x4xbf16, #tpu.memory_space<vmem>>, vector<10x1x4xbf16>,
    %c0_35 = arith.constant 0 : index
    %c24_36 = arith.constant 24 : index
    %c0_37 = arith.constant 0 : index
    %46 = vector.load %arg11[%c0_35, %c24_36, %c0_37] : memref<10x32x4xbf16, #tpu.memory_space<vmem>>, vector<10x1x4xbf16>
    tpu.vector_store %arg11[%c0_35, %c24_36, %c0_37], %44 {strides = array<i32>} : memref<10x32x4xbf16, #tpu.memory_space<vmem>>, vector<10x1x4xbf16>,
    %47 = arith.truncf %43 : vector<10x16x4xf32> to vector<10x16x4xbf16>
    %c0_38 = arith.constant 0 : index
    %c8 = arith.constant 8 : index
    %c0_39 = arith.constant 0 : index
    %48 = vector.load %arg11[%c0_38, %c8, %c0_39] : memref<10x32x4xbf16, #tpu.memory_space<vmem>>, vector<10x16x4xbf16>
    tpu.vector_store %arg11[%c0_38, %c8, %c0_39], %47 {strides = array<i32>} : memref<10x32x4xbf16, #tpu.memory_space<vmem>>, vector<10x16x4xbf16>,
    %c0_40 = arith.constant 0 : index
    %c7_41 = arith.constant 7 : index
    %c0_42 = arith.constant 0 : index
    %49 = vector.load %arg11[%c0_40, %c7_41, %c0_42] : memref<10x32x4xbf16, #tpu.memory_space<vmem>>, vector<8x16x4xbf16>
    %c0_43 = arith.constant 0 : index
    %c0_44 = arith.constant 0 : index
    %c0_45 = arith.constant 0 : index
    %50 = vector.load %arg12[%c0_43, %c0_44, %c0_45] : memref<10x16x36xbf16, #tpu.memory_space<vmem>>, vector<8x16x4xbf16>
    tpu.vector_store %arg12[%c0_43, %c0_44, %c0_45], %49 {strides = array<i32>} : memref<10x16x36xbf16, #tpu.memory_space<vmem>>, vector<8x16x4xbf16>,
    %c0_46 = arith.constant 0 : index
    %c8_47 = arith.constant 8 : index
    %c0_48 = arith.constant 0 : index
    %51 = vector.load %arg11[%c0_46, %c8_47, %c0_48] : memref<10x32x4xbf16, #tpu.memory_space<vmem>>, vector<8x16x4xbf16>
    %c0_49 = arith.constant 0 : index
    %c0_50 = arith.constant 0 : index
    %c4 = arith.constant 4 : index
    %52 = vector.load %arg12[%c0_49, %c0_50, %c4] : memref<10x16x36xbf16, #tpu.memory_space<vmem>>, vector<8x16x4xbf16>
    tpu.vector_store %arg12[%c0_49, %c0_50, %c4], %51 {strides = array<i32>} : memref<10x16x36xbf16, #tpu.memory_space<vmem>>, vector<8x16x4xbf16>,
    %c0_51 = arith.constant 0 : index
    %c9_52 = arith.constant 9 : index
    %c0_53 = arith.constant 0 : index
    %53 = vector.load %arg11[%c0_51, %c9_52, %c0_53] : memref<10x32x4xbf16, #tpu.memory_space<vmem>>, vector<8x16x4xbf16>
    %c0_54 = arith.constant 0 : index
    %c0_55 = arith.constant 0 : index
    %c8_56 = arith.constant 8 : index
    %54 = vector.load %arg12[%c0_54, %c0_55, %c8_56] : memref<10x16x36xbf16, #tpu.memory_space<vmem>>, vector<8x16x4xbf16>
    tpu.vector_store %arg12[%c0_54, %c0_55, %c8_56], %53 {strides = array<i32>} : memref<10x16x36xbf16, #tpu.memory_space<vmem>>, vector<8x16x4xbf16>,
    %c1 = arith.constant 1 : index
    %c7_57 = arith.constant 7 : index
    %c0_58 = arith.constant 0 : index
    %55 = vector.load %arg11[%c1, %c7_57, %c0_58] : memref<10x32x4xbf16, #tpu.memory_space<vmem>>, vector<8x16x4xbf16>
    %c0_59 = arith.constant 0 : index
    %c0_60 = arith.constant 0 : index
    %c12_61 = arith.constant 12 : index
    %56 = vector.load %arg12[%c0_59, %c0_60, %c12_61] : memref<10x16x36xbf16, #tpu.memory_space<vmem>>, vector<8x16x4xbf16>
    tpu.vector_store %arg12[%c0_59, %c0_60, %c12_61], %55 {strides = array<i32>} : memref<10x16x36xbf16, #tpu.memory_space<vmem>>, vector<8x16x4xbf16>,
    %c1_62 = arith.constant 1 : index
    %c8_63 = arith.constant 8 : index
    %c0_64 = arith.constant 0 : index
    %57 = vector.load %arg11[%c1_62, %c8_63, %c0_64] : memref<10x32x4xbf16, #tpu.memory_space<vmem>>, vector<8x16x4xbf16>
    %c0_65 = arith.constant 0 : index
    %c0_66 = arith.constant 0 : index
    %c16 = arith.constant 16 : index
    %58 = vector.load %arg12[%c0_65, %c0_66, %c16] : memref<10x16x36xbf16, #tpu.memory_space<vmem>>, vector<8x16x4xbf16>
    tpu.vector_store %arg12[%c0_65, %c0_66, %c16], %57 {strides = array<i32>} : memref<10x16x36xbf16, #tpu.memory_space<vmem>>, vector<8x16x4xbf16>,
    %c1_67 = arith.constant 1 : index
    %c9_68 = arith.constant 9 : index
    %c0_69 = arith.constant 0 : index
    %59 = vector.load %arg11[%c1_67, %c9_68, %c0_69] : memref<10x32x4xbf16, #tpu.memory_space<vmem>>, vector<8x16x4xbf16>
    %c0_70 = arith.constant 0 : index
    %c0_71 = arith.constant 0 : index
    %c20 = arith.constant 20 : index
    %60 = vector.load %arg12[%c0_70, %c0_71, %c20] : memref<10x16x36xbf16, #tpu.memory_space<vmem>>, vector<8x16x4xbf16>
    tpu.vector_store %arg12[%c0_70, %c0_71, %c20], %59 {strides = array<i32>} : memref<10x16x36xbf16, #tpu.memory_space<vmem>>, vector<8x16x4xbf16>,
    %c2 = arith.constant 2 : index
    %c7_72 = arith.constant 7 : index
    %c0_73 = arith.constant 0 : index
    %61 = vector.load %arg11[%c2, %c7_72, %c0_73] : memref<10x32x4xbf16, #tpu.memory_space<vmem>>, vector<8x16x4xbf16>
    %c0_74 = arith.constant 0 : index
    %c0_75 = arith.constant 0 : index
    %c24_76 = arith.constant 24 : index
    %62 = vector.load %arg12[%c0_74, %c0_75, %c24_76] : memref<10x16x36xbf16, #tpu.memory_space<vmem>>, vector<8x16x4xbf16>
    tpu.vector_store %arg12[%c0_74, %c0_75, %c24_76], %61 {strides = array<i32>} : memref<10x16x36xbf16, #tpu.memory_space<vmem>>, vector<8x16x4xbf16>,
    %c2_77 = arith.constant 2 : index
    %c8_78 = arith.constant 8 : index
    %c0_79 = arith.constant 0 : index
    %63 = vector.load %arg11[%c2_77, %c8_78, %c0_79] : memref<10x32x4xbf16, #tpu.memory_space<vmem>>, vector<8x16x4xbf16>
    %c0_80 = arith.constant 0 : index
    %c0_81 = arith.constant 0 : index
    %c28 = arith.constant 28 : index
    %64 = vector.load %arg12[%c0_80, %c0_81, %c28] : memref<10x16x36xbf16, #tpu.memory_space<vmem>>, vector<8x16x4xbf16>
    tpu.vector_store %arg12[%c0_80, %c0_81, %c28], %63 {strides = array<i32>} : memref<10x16x36xbf16, #tpu.memory_space<vmem>>, vector<8x16x4xbf16>,
    %c2_82 = arith.constant 2 : index
    %c9_83 = arith.constant 9 : index
    %c0_84 = arith.constant 0 : index
    %65 = vector.load %arg11[%c2_82, %c9_83, %c0_84] : memref<10x32x4xbf16, #tpu.memory_space<vmem>>, vector<8x16x4xbf16>
    %c0_85 = arith.constant 0 : index
    %c0_86 = arith.constant 0 : index
    %c32 = arith.constant 32 : index
    %66 = vector.load %arg12[%c0_85, %c0_86, %c32] : memref<10x16x36xbf16, #tpu.memory_space<vmem>>, vector<8x16x4xbf16>
    tpu.vector_store %arg12[%c0_85, %c0_86, %c32], %65 {strides = array<i32>} : memref<10x16x36xbf16, #tpu.memory_space<vmem>>, vector<8x16x4xbf16>,
    %c0_87 = arith.constant 0 : index
    %c0_88 = arith.constant 0 : index
    %c0_89 = arith.constant 0 : index
    %67 = vector.load %arg12[%c0_87, %c0_88, %c0_89] : memref<10x16x36xbf16, #tpu.memory_space<vmem>>, vector<8x16x36xbf16>
    %68 = vector.shape_cast %67 : vector<8x16x36xbf16> to vector<128x36xbf16>
    %c0_90 = arith.constant 0 : index
    %c0_91 = arith.constant 0 : index
    %69 = vector.load %arg8[%c0_90, %c0_91] : memref<36x8xbf16, #tpu.memory_space<vmem>>, vector<36x8xbf16>
    %cst_92 = arith.constant dense<0.000000e+00> : vector<128x8xf32>
    %70 = tpu.matmul %68, %69, %cst_92 {dimension_numbers = #tpu.dot_dimension_numbers<[1], [0], [0], [1], [0, 0, 1, 1], [], []>} : vector<128x36xbf16>, vector<36x8xbf16>, vector<128x8xf32> -> vector<128x8xf32>
    %c0_93 = arith.constant 0 : index
    %c0_94 = arith.constant 0 : index
    %71 = vector.load %arg9[%c0_93, %c0_94] : memref<1x8xf32, #tpu.memory_space<vmem>>, vector<1x8xf32>
    %72 = vector.broadcast %71 : vector<1x8xf32> to vector<128x8xf32>
    %73 = arith.addf %70, %72 : vector<128x8xf32>
    %74 = vector.shape_cast %73 : vector<128x8xf32> to vector<8x16x8xf32>
    %75 = vector.extract_strided_slice %74 {offsets = [0, 0, 0], sizes = [8, 16, 4], strides = [1, 1, 1]} : vector<8x16x8xf32> to vector<8x16x4xf32>
    %76 = vector.extract_strided_slice %74 {offsets = [0, 0, 4], sizes = [8, 16, 4], strides = [1, 1, 1]} : vector<8x16x8xf32> to vector<8x16x4xf32>
    %c0_95 = arith.constant 0 : index
    %c0_96 = arith.constant 0 : index
    %c0_97 = arith.constant 0 : index
    %c0_98 = arith.constant 0 : index
    %77 = vector.load %arg2[%c0_95, %c0_96, %c0_97, %c0_98] : memref<1x8x16x4xf32, #tpu.memory_space<vmem>>, vector<1x8x16x4xf32>
    %78 = vector.shape_cast %77 : vector<1x8x16x4xf32> to vector<8x16x4xf32>
    %c0_99 = arith.constant 0 : index
    %c0_100 = arith.constant 0 : index
    %c0_101 = arith.constant 0 : index
    %79 = vector.load %arg4[%c0_99, %c0_100, %c0_101] : memref<1x1x1xf32, #tpu.memory_space<vmem>>, vector<1x1x1xf32>
    %80 = vector.broadcast %79 : vector<1x1x1xf32> to vector<8x16x4xf32>
    %81 = arith.subf %78, %80 : vector<8x16x4xf32>
    %c0_102 = arith.constant 0 : index
    %c0_103 = arith.constant 0 : index
    %c0_104 = arith.constant 0 : index
    %82 = vector.load %arg5[%c0_102, %c0_103, %c0_104] : memref<1x1x1xf32, #tpu.memory_space<vmem>>, vector<1x1x1xf32>
    %83 = vector.broadcast %82 : vector<1x1x1xf32> to vector<8x16x4xf32>
    %84 = arith.mulf %81, %83 : vector<8x16x4xf32>
    %cst_105 = arith.constant 1.000000e+00 : f32
    %85 = vector.broadcast %cst_105 : f32 to vector<8x16x4xf32>
    %86 = arith.addf %85, %75 : vector<8x16x4xf32>
    %87 = arith.mulf %84, %86 : vector<8x16x4xf32>
    %88 = arith.addf %87, %76 : vector<8x16x4xf32>
    %c0_106 = arith.constant 0 : index
    %c0_107 = arith.constant 0 : index
    %c0_108 = arith.constant 0 : index
    %c0_109 = arith.constant 0 : index
    %89 = vector.load %arg10[%c0_106, %c0_107, %c0_108, %c0_109] : memref<1x8x16x4xf32, #tpu.memory_space<vmem>>, vector<1x8x16x4xf32>
    %90 = vector.shape_cast %89 : vector<1x8x16x4xf32> to vector<8x16x4xf32>
    %91 = vector.shape_cast %88 : vector<8x16x4xf32> to vector<1x8x16x4xf32>
    tpu.vector_store %arg10[%c0_106, %c0_107, %c0_108, %c0_109], %91 {strides = array<i32>} : memref<1x8x16x4xf32, #tpu.memory_space<vmem>>, vector<1x8x16x4xf32>,
    return
  }
  func.func @transform_0(%arg0: i32, %arg1: i32) -> (i32, i32, i32, i32) {
    %c0_i32 = arith.constant 0 : i32
    %c0_i32_0 = arith.constant 0 : i32
    %c0_i32_1 = arith.constant 0 : i32
    return %arg0, %arg1, %c0_i32, %c0_i32_0 : i32, i32, i32, i32
  }
  func.func @transform_1(%arg0: i32, %arg1: i32) -> (i32, i32, i32, i32, i32) {
    %c0_i32 = arith.constant 0 : i32
    %c0_i32_0 = arith.constant 0 : i32
    %c0_i32_1 = arith.constant 0 : i32
    %c0_i32_2 = arith.constant 0 : i32
    return %arg0, %arg1, %c0_i32, %c0_i32_0, %c0_i32_1 : i32, i32, i32, i32, i32
  }
  func.func @transform_2(%arg0: i32, %arg1: i32) -> (i32, i32, i32) {
    %c0_i32 = arith.constant 0 : i32
    %c0_i32_0 = arith.constant 0 : i32
    %c0_i32_1 = arith.constant 0 : i32
    return %arg0, %c0_i32, %c0_i32_0 : i32, i32, i32
  }
  func.func @transform_3(%arg0: i32, %arg1: i32) -> (i32, i32, i32) {
    %c0_i32 = arith.constant 0 : i32
    %c0_i32_0 = arith.constant 0 : i32
    %c0_i32_1 = arith.constant 0 : i32
    return %arg0, %c0_i32, %c0_i32_0 : i32, i32, i32
  }
  func.func @transform_4(%arg0: i32, %arg1: i32) -> (i32, i32) {
    %c0_i32 = arith.constant 0 : i32
    %c0_i32_0 = arith.constant 0 : i32
    %c0_i32_1 = arith.constant 0 : i32
    return %c0_i32, %c0_i32_0 : i32, i32
  }
  func.func @transform_5(%arg0: i32, %arg1: i32) -> (i32, i32) {
    %c0_i32 = arith.constant 0 : i32
    %c0_i32_0 = arith.constant 0 : i32
    %c0_i32_1 = arith.constant 0 : i32
    return %c0_i32, %c0_i32_0 : i32, i32
  }
  func.func @transform_6(%arg0: i32, %arg1: i32) -> (i32, i32) {
    %c0_i32 = arith.constant 0 : i32
    %c0_i32_0 = arith.constant 0 : i32
    %c0_i32_1 = arith.constant 0 : i32
    return %c0_i32, %c0_i32_0 : i32, i32
  }
  func.func @transform_7(%arg0: i32, %arg1: i32) -> (i32, i32) {
    %c0_i32 = arith.constant 0 : i32
    %c0_i32_0 = arith.constant 0 : i32
    %c0_i32_1 = arith.constant 0 : i32
    return %c0_i32, %c0_i32_0 : i32, i32
  }
  func.func @transform_8(%arg0: i32, %arg1: i32) -> (i32, i32, i32, i32) {
    %c0_i32 = arith.constant 0 : i32
    %c0_i32_0 = arith.constant 0 : i32
    %c0_i32_1 = arith.constant 0 : i32
    return %arg0, %arg1, %c0_i32, %c0_i32_0 : i32, i32, i32, i32
  }
}

</mosaic_0001>

<bundles_post_ra>
// kernel: tpu_custom_call.1
= control target key start
LH: loop header
LB: loop body
LE: loop exit
PB: predicated region body
PF: predicated region fallthrough
CT: control target
= control target key end

     0   :  { %s4762_s27 = smov 0   ;;  %s4764_s28 = smov 0   ;;  %s6969_s0 = inlined_call_operand.vmem [shape: f32[2,16,16,4], index: 0, kind: input, shape index: {}]   ;;  %s6970_s1 = inlined_call_operand.vmem [shape: bf16[2,2,12,32,3], index: 1, kind: input, shape index: {}]   ;;  %s6971_s2 = inlined_call_operand.vmem [shape: f32[2,1,1], index: 2, kind: input, shape index: {}]   ;;  %s6972_s3 = inlined_call_operand.vmem [shape: f32[2,1,1], index: 3, kind: input, shape index: {}]   ;;  %s6973_s4 = inlined_call_operand.vmem [shape: bf16[27,4], index: 4, kind: input, shape index: {}]   ;;  %s6974_s5 = inlined_call_operand.vmem [shape: f32[1,4], index: 5, kind: input, shape index: {}]   ;;  %s6975_s6 = inlined_call_operand.vmem [shape: bf16[36,8], index: 6, kind: input, shape index: {}]   ;;  %s6976_s7 = inlined_call_operand.vmem [shape: f32[1,8], index: 7, kind: input, shape index: {}]   ;;  %s6977_s8 = inlined_call_operand.vmem [shape: f32[2,16,16,4], index: 8, kind: output, shape index: {}]  }
   0x1   :  { %s4766_s29 = smov 0   ;;  %s4768_s30 = smov 0  }
   0x2   :  { %s4770_s9 = smov 0  }
   0x3 LB: > { %s27_s10 = sadd.s32 1, %s4690_s29  ;;  %s30_s11 = sadd.s32 1, %s4694_s30  ;;  %s4698_s9 = sphi %s4770_s9, %s18_s9   ;;  %s4694_s30 = sphi %s4768_s30, %s7083_s30   ;;  %s4690_s29 = sphi %s4766_s29, %s7082_s29   ;;  %s4686_s28 = sphi %s4764_s28, %s7081_s28   ;;  %s4682_s27 = sphi %s4762_s27, %s7080_s27  }
   0x4   : > { %p28_p0 = scmp.ge.s32.totalorder %s27_s10, 2  ;;  %p4395_p1 = scmp.ge.s32.totalorder %s4698_s9, 1 }
   0x5   : > { %p316_p2 = scmp.lt.s32.totalorder %s4698_s9, 5 }
   0x6   : > { %s7085_s10 = smov (%p28_p0, %s27_s10), 0  ;;  %s7087_s11 = smov (!%p28_p0, %s30_s11), %s4694_s30 }
   0x7   : > { %p317_p3 = pnand %p4395_p1, %p316_p2  ;;  %p32_p4 = scmp.ge.s32.totalorder %s7087_s11, 2 }
   0x9   : > { %s7089_s11 = smov (%p32_p4, %s7087_s11), 0  ;;  %320 = sbr.rel (%p317_p3) target bundleno = 1419 (0x58b), region = 52 }
   0xe   : > { %p376_p5 = scmp.lt.s32.totalorder %s4686_s28, 1  ;;  %p388_p6 = scmp.lt.s32.totalorder %s4682_s27, 1  ;;  %vm826_vm0 = vsmask.f32 3328  ;;  %vm827_vm1 = vsmask.f32 7440 }
   0xf   : > { %s4700_s20 = smov 3   ;;  %vm4932_vm2 = vmor %vm826_vm0, %vm827_vm1  ;;  %v7012_v51 = vmov 0  ;;  %s4701_s21 = smov 6   ;;  %vm461_vm3 = vsmask.f32 256  ;;  %vm704_vm6 = vcmask 19456  }
  0x10   : > { %s7091_s28 = smov (!%p376_p5, %s4686_s28), 1  ;;  %v7013_v51 = vsel %vm4932_vm2, 4294967295, %v7012_v51  ;;  %vm462_vm4 = vsmask.f32 4368  ;;  %vm805_vm7 = vcmask 44056   ;;  %s4702_s22 = smov 9  }
  0x11   : > { %s389_s12 = scalar_select %p388_p6, %s4682_s27, 1  ;;  %7014 = vst [vmem:[#allocation4_spill] sm:$0xff] %v7013_v51  ;;  %vm5046_vm5 = vmor %vm461_vm3, %vm462_vm4  ;;  %vm1029_vm8 = vcmask 68656   ;;  %vm1132_vm9 = vcmask 93256   ;;  %vm1215_vm10 = vcmask 117856   ;;  %vm1310_vm11 = vcmask 142456  }
  0x12   : > { %s4579_s13 = smul.u32 96, %s7091_s28  ;;  %s4703_s23 = smov 12   ;;  %vm1413_vm12 = vcmask 167056   ;;  %vm1496_vm13 = vcmask 191656   ;;  %vm1732_vm14 = vcmask 1044480   ;;  %vm1733_vm15 = vcmask 1045504  }
  0x13   : > { %s4578_s14 = smul.u32 48, %s389_s12  ;;  %s4704_s24 = smov 15   ;;  %vm1591_vm0 = vcmask 216256   ;;  %vm1701_vm1 = vcmask 220160   ;;  %vm1900_vm4 = vcmask 27651  }
  0x14   : > { %s4705_s25 = smov 18   ;;  %s4706_s26 = smov 21  }
  0x15   : > { %s392_s15 = sadd.s32 %s4579_s13, %s4578_s14  ;;  %s4707_s12 = smov 24  }
  0x16   : > { %s4400_s16 = sshll.u32 %s392_s15, 2  ;;  %s4714_s13 = smov 32  }
  0x17   : > { %s4802_s19 = scalar_lea.vmem %s6970_s1, %s4400_s16  ;;  %s397_s18 = scalar_lea.vmem %s6971_s2, %s7091_s28 }
  0x18   : > { %v4805_v0 = vld [vmem:[%s4802_s19 + $0x14] sm:$0xf]  ;;  %v4808_v1 = vld [vmem:[%s4802_s19 + $0x4] sm:$0xf]  ;;  %v4820_v3 = vld [vmem:[%s4802_s19 + $0x18] sm:$0xf] }
  0x19   : > { %749 = vrot.lane.b32.xlu1 %v4805_v0, %s4700_s20  ;;  %745 = vrot.lane.b32.xlu0 %v4808_v1, %s4700_s20  ;;  %v4815_v2 = vld [vmem:[%s4802_s19 + $0x24] sm:$0xf]  ;;  %v4823_v4 = vld [vmem:[%s4802_s19 + $0x8] sm:$0xf]  ;;  %v470_v14 = vshrl.u32 %v4808_v1, 16  ;;  %v473_v15 = vshll.u32 %v4808_v1, 16 }
  0x1a   : > { %753 = vrot.lane.b32.xlu2 %v4815_v2, %s4700_s20  ;;  %v4830_v5 = vld [vmem:[%s4802_s19 + $0x28] sm:$0xf]  ;;  %v4835_v6 = vld [vmem:[%s4802_s19 + $0x38] sm:$0xf]  ;;  %v4838_v7 = vld [vmem:[%s4802_s19 + $0x34] sm:$0xf] }
  0x1b   : > { %v4845_v8 = vld [vmem:[%s4802_s19 + $0x44] sm:$0xf]  ;;  %v4850_v9 = vld [vmem:[%s4802_s19 + $0x54] sm:$0xf]  ;;  %v4853_v10 = vld [vmem:[%s4802_s19 + $0x48] sm:$0xf] }
  0x1c   : > { %v4860_v11 = vld [vmem:[%s4802_s19 + $0x58] sm:$0xf]  ;;  %v4865_v12 = vld [vmem:[%s4802_s19 + $0x68] sm:$0xf]  ;;  %v4868_v13 = vld [vmem:[%s4802_s19 + $0x64] sm:$0xf] }
  0x1d   : > { %v4877_v16 = vld [vmem:[%s4802_s19 + $0x74] sm:$0xf]  ;;  %v492_v17 = vshrl.u32 %v4805_v0, 16  ;;  %v495_v18 = vshll.u32 %v4805_v0, 16  ;;  %v479_v19 = vshrl.u32 %v4823_v4, 16  ;;  %v482_v20 = vshll.u32 %v4823_v4, 16 }
  0x1e   : > { %v829_v21 = vrot.slane %v470_v14, 4  ;;  %v830_v22 = vrot.slane %v473_v15, 5  ;;  %v4890_v23 = vld [vmem:[%s4802_s19 + $0x84] sm:$0xf]  ;;  %v4893_v24 = vld [vmem:[%s4802_s19 + $0x78] sm:$0xf] }
  0x1f   : > { %v833_v25 = vrot.slane %v482_v20, 5  ;;  %v835_v26 = vrot.slane %v479_v19, 4  ;;  %v843_v27 = vrot.slane %v492_v17, 4  ;;  %v844_v28 = vrot.slane %v495_v18, 5  ;;  %v416_v29 = vld [vmem:[%s4802_s19 + $0xc] sm:$0xf] }
  0x20   : > { %v831_v30 = vor.u32 %v830_v22, %v829_v21  ;;  %v501_v31 = vshrl.u32 %v4820_v3, 16  ;;  %v6979_v32 = vshll.u32 %v4820_v3, 16  ;;  %v4911_v33 = vld [vmem:[%s4802_s19 + $0x88] sm:$0xf]  ;;  %v839_v36 = vshll.u32 %v416_v29, 16 }
  0x21   : > { %751 = vrot.lane.b32.xlu1 %v4820_v3, %s4700_s20  ;;  %747 = vrot.lane.b32.xlu0 %v4823_v4, %s4700_s20  ;;  %v845_v34 = vor.u32 %v844_v28, %v843_v27  ;;  %v836_v35 = vor.u32 %v835_v26, %v833_v25  ;;  %v526_v37 = vshll.u32 %v4830_v5, 16  ;;  %v523_v38 = vshrl.u32 %v4830_v5, 16  ;;  %v4920_v42 = vld [vmem:[%s4802_s19 + $0x98] sm:$0xf]  ;;  %v4923_v43 = vld [vmem:[%s4802_s19 + $0x94] sm:$0xf] }
  0x22   : > { %755 = vrot.lane.b32.xlu2 %v4830_v5, %s4700_s20  ;;  %v514_v39 = vshrl.u32 %v4815_v2, 16  ;;  %v517_v40 = vshll.u32 %v4815_v2, 16  ;;  %v832_v41 = vrot.slane %v831_v30, 4  ;;  %v847_v44 = vrot.slane %v6979_v32, 5  ;;  %v420_v50 = vld [vmem:[%s4802_s19 + $0x1c] sm:$0xf] }
  0x23   : > { %v849_v45 = vrot.slane %v501_v31, 4  ;;  %v846_v46 = vrot.slane %v845_v34, 4  ;;  %v837_v47 = vrot.slane %v836_v35, 4  ;;  %v841_v48 = vrot.slane %v839_v36, 5  ;;  %v424_v56 = vld [vmem:[%s4802_s19 + $0x2c] sm:$0xf] }
  0x24   : > { %v861_v49 = vrot.slane %v526_v37, 5  ;;  %v863_v52 = vrot.slane %v523_v38, 4  ;;  %v857_v53 = vrot.slane %v514_v39, 4  ;;  %v858_v54 = vrot.slane %v517_v40, 5 }
  0x25   : > { %v6997_v55 = vshrl.u32 %v4845_v8, 16  ;;  %v6987_v57 = vshll.u32 %v4845_v8, 16  ;;  %v6989_v58 = vshrl.u32 %v4835_v6, 16  ;;  %v6986_v59 = vshll.u32 %v4835_v6, 16 }
  0x26   : > { %v834_v60 = vsel %vm4932_vm2, %v832_v41, %v833_v25  ;;  %v850_v61 = vor.u32 %v849_v45, %v847_v44  ;;  %v853_v62 = vshll.u32 %v420_v50, 16  ;;  %v6996_v63 = vshrl.u32 %v4838_v7, 16 }
  0x27   : > { %v6978_v21 = vshll.u32 %v4838_v7, 16  ;;  %v4957_v22 = vsel %vm4932_vm2, %v846_v46, %v847_v44  ;;  %v842_v26 = vsel %vm4932_vm2, %v837_v47, %v841_v48  ;;  %v864_v27 = vor.u32 %v863_v52, %v861_v49  ;;  %v428_v46 = vld [vmem:[%s4802_s19 + $0x3c] sm:$0xf] }
  0x28   : > { %v867_v28 = vshll.u32 %v424_v56, 16  ;;  %v859_v29 = vor.u32 %v858_v54, %v857_v53  ;;  %v885_v25 = vrot.slane %v6997_v55, 4  ;;  %v886_v30 = vrot.slane %v6987_v57, 5  ;;  %v448_v55 = vld [vmem:[%s4802_s19 + $0x8c] sm:$0xf] }
  0x29   : > { %759 = vrot.lane.b32.xlu1 %v4835_v6, %s4700_s20  ;;  %757 = vrot.lane.b32.xlu0 %v4838_v7, %s4700_s20  ;;  %v871_v34 = vrot.slane %v6996_v63, 4  ;;  %v872_v35 = vrot.slane %v6978_v21, 5  ;;  %v875_v36 = vrot.slane %v6986_v59, 5  ;;  %v877_v41 = vrot.slane %v6989_v58, 4 }
  0x2a   : > { %761 = vrot.lane.b32.xlu2 %v4845_v8, %s4700_s20  ;;  %v851_v44 = vrot.slane %v850_v61, 4  ;;  %v855_v45 = vrot.slane %v853_v62, 5  ;;  %v6982_v47 = vshrl.u32 %v4860_v11, 16  ;;  %v6981_v48 = vshll.u32 %v4860_v11, 16 }
  0x2b   : > { %v865_v50 = vrot.slane %v864_v27, 4  ;;  %v869_v52 = vrot.slane %v867_v28, 5  ;;  %v860_v53 = vrot.slane %v859_v29, 4  ;;  %v6980_v54 = vshll.u32 %v4853_v10, 16 }
  0x2c   : > { %v887_v56 = vor.u32 %v886_v30, %v885_v25  ;;  %v873_v21 = vor.u32 %v872_v35, %v871_v34  ;;  %v878_v61 = vor.u32 %v877_v41, %v875_v36  ;;  %v881_v62 = vshll.u32 %v428_v46, 16 }
  0x2d   : > { %v4984_v32 = vsel %vm4932_vm2, %v851_v44, %v855_v45  ;;  %v6983_v27 = vshrl.u32 %v4853_v10, 16  ;;  %v4989_v28 = vrot.slane %v6981_v48, 5  ;;  %v6985_v29 = vshrl.u32 %v4850_v9, 16 }
  0x2e   : > { %v6984_v25 = vshll.u32 %v4850_v9, 16  ;;  %v4997_v30 = vrot.slane %v470_v14, 7  ;;  %v5001_v35 = vrot.slane %v501_v31, 7  ;;  %v888_v41 = vrot.slane %v887_v56, 4 }
  0x2f   : > { %v889_v44 = vrot.slane %v6980_v54, 5  ;;  %v874_v45 = vrot.slane %v873_v21, 4  ;;  %v5009_v46 = vsel %vm4932_vm2, %v865_v50, %v869_v52  ;;  %v5013_v14 = vsel %vm4932_vm2, %v860_v53, %v861_v49  ;;  %v432_v50 = vld [vmem:[%s4802_s19 + $0x4c] sm:$0xf] }
  0x30   : > { %v891_v31 = vrot.slane %v6983_v27, 4  ;;  %v879_v56 = vrot.slane %v878_v61, 4  ;;  %v899_v48 = vrot.slane %v6985_v29, 4  ;;  %v900_v21 = vrot.slane %v6984_v25, 5 }
  0x31   : > { %765 = vrot.lane.b32.xlu1 %v4850_v9, %s4700_s20  ;;  %763 = vrot.lane.b32.xlu0 %v4853_v10, %s4700_s20  ;;  %v6992_v49 = vshll.u32 %v4877_v16, 16  ;;  %v6994_v53 = vshrl.u32 %v4868_v13, 16  ;;  %v5032_v61 = vsel %vm4932_vm2, %v888_v41, %v889_v44  ;;  %v895_v27 = vshll.u32 %v432_v50, 16 }
  0x32   : > { %767 = vrot.lane.b32.xlu2 %v4860_v11, %s4700_s20  ;;  %v5041_v29 = vrot.slane %v492_v17, 7  ;;  %v901_v59 = vor.u32 %v900_v21, %v899_v48  ;;  %v6993_v57 = vshrl.u32 %v4865_v12, 16  ;;  %v6991_v41 = vshll.u32 %v4865_v12, 16 }
  0x33   : > { %v913_v50 = vrot.slane %v6994_v53, 4  ;;  %v7004_v4 = vshrl.u32 %v4923_v43, 16 }
  0x34   : > { %v497_v17 = vor.u32 %v495_v18, %v5041_v29  ;;  %v928_v18 = vrot.slane %v6992_v49, 5  ;;  %v919_v58 = vrot.slane %v6993_v57, 4  ;;  %v7000_v57 = vshll.u32 %v4911_v33, 16 }
  0x39   : > { %771 = vrot.lane.b32.xlu1 %v4865_v12, %s4700_s20  ;;  %769 = vrot.lane.b32.xlu0 %v4868_v13, %s4700_s20 }
  0x3a   : > { %773 = vrot.lane.b32.xlu2 %v4877_v16, %s4700_s20 }
  0x41   : > { %777 = vrot.lane.b32.xlu1 %v4890_v23, %s4700_s20  ;;  %775 = vrot.lane.b32.xlu0 %v4893_v24, %s4700_s20 }
  0x42   : > { %779 = vrot.lane.b32.xlu2 %v4911_v33, %s4700_s20 }
  0x49   : > { %783 = vrot.lane.b32.xlu1 %v4920_v42, %s4700_s20  ;;  %781 = vrot.lane.b32.xlu0 %v4923_v43, %s4700_s20  ;;  %s5889_s20 = sshll.u32 %s4682_s27, 3  ;;  %s4709_s27 = smov 4  }
  0x4a   : > { %969 = vrot.lane.b32.xlu2 %v834_v60, %s4701_s21  ;;  %v436_v60 = vld [vmem:[%s4802_s19 + $0x5c] sm:$0xf]  ;;  %p378_p7 = scmp.lt.s32.totalorder %s5889_s20, 15 }
  0x4b   : > { %v909_v34 = vshll.u32 %v436_v60, 16  ;;  %v883_v60 = vrot.slane %v881_v62, 5  ;;  %v5036_v62 = vsel %vm4932_vm2, %v874_v45, %v875_v36  ;;  %v6990_v45 = vshll.u32 %v4868_v13, 16  ;;  %v4640_v36 = vld [vmem:[%s397_s18] ss:$0 sm:$0xff] }
  0x4d   : > { %v911_v52 = vrot.slane %v909_v34, 5  ;;  %v892_v34 = vor.u32 %v891_v31, %v889_v44  ;;  %v5056_v48 = vsel %vm4932_vm2, %v879_v56, %v883_v60  ;;  %v440_v56 = vld [vmem:[%s4802_s19 + $0x6c] sm:$0xf] }
  0x51   : > { %973 = vrot.lane.b32.xlu1 %v4957_v22, %s4701_s21  ;;  %971 = vrot.lane.b32.xlu0 %v842_v26, %s4701_s21  ;;  %v905_v26 = vrot.slane %v6982_v47, 4  ;;  %v6988_v47 = vshrl.u32 %v4877_v16, 16 }
  0x52   : > { %975 = vrot.lane.b32.xlu2 %v4984_v32, %s4701_s21 }
  0x53   : > { %v906_v54 = vor.u32 %v905_v26, %v4989_v28  ;;  %v417_v26 = vld [vmem:[%s4802_s19 + $0x10] sm:$0xf]  ;;  %v927_v21 = vrot.slane %v6988_v47, 4  ;;  %v917_v47 = vrot.slane %v6991_v41, 5 }
  0x54   : > { %v487_v25 = vshrl.u32 %v417_v26, 16  ;;  %v897_v26 = vrot.slane %v895_v27, 5  ;;  %v481_v27 = vrot.slane %v479_v19, 7  ;;  %v525_v19 = vrot.slane %v523_v38, 7 }
  0x55   : > { %v907_v44 = vrot.slane %v906_v54, 4  ;;  %v914_v54 = vrot.slane %v6990_v45, 5  ;;  %v5082_v45 = vor.u32 %v473_v15, %v4997_v30  ;;  %v516_v15 = vrot.slane %v514_v39, 7  ;;  %v421_v39 = vld [vmem:[%s4802_s19 + $0x20] sm:$0xf] }
  0x56   : > { %v4406_v31 = vrot.slane %v487_v25, 11  ;;  %v893_v25 = vrot.slane %v892_v34, 4  ;;  %v929_v41 = vor.u32 %v928_v18, %v927_v21  ;;  %v920_v49 = vor.u32 %v919_v58, %v917_v47 }
  0x57   : > { %v5088_v34 = vsel %vm4932_vm2, %v907_v44, %v911_v52  ;;  %v915_v1 = vor.u32 %v914_v54, %v913_v50  ;;  %v923_v52 = vshll.u32 %v440_v56, 16  ;;  %v6998_v44 = vshrl.u32 %v4893_v24, 16  ;;  %v413_v56 = vld [vmem:[%s4802_s19] sm:$0xf] }
  0x58   : > { %v5070_v60 = vsel %vm5046_vm5, %v4406_v31, %v497_v17  ;;  %v902_v31 = vrot.slane %v901_v59, 4  ;;  %v6995_v17 = vshll.u32 %v4893_v24, 16  ;;  %v5101_v59 = vsel %vm4932_vm2, %v893_v25, %v897_v26 }
  0x59   : > { %979 = vrot.lane.b32.xlu1 %v5009_v46, %s4701_s21  ;;  %977 = vrot.lane.b32.xlu0 %v5013_v14, %s4701_s21  ;;  %707 = vst.msk [vmem:[#allocation3 + $0x8] sm:$0xf] %vm704_vm6, %v5070_v60  ;;  %v521_v53 = vrot.slane %v516_v15, 4  ;;  %v528_v50 = vor.u32 %v526_v37, %v525_v19  ;;  %v7001_v54 = vshrl.u32 %v4911_v33, 16  ;;  %v7002_v38 = vshrl.u32 %v4890_v23, 16 }
  0x5a   : > { %981 = vrot.lane.b32.xlu2 %v5036_v62, %s4701_s21  ;;  %v6999_v21 = vshll.u32 %v4890_v23, 16  ;;  %v509_v18 = vshrl.u32 %v421_v39, 16  ;;  %v5114_v25 = vsel %vm4932_vm2, %v902_v31, %v4989_v28  ;;  %v931_v58 = vrot.slane %v6995_v17, 5 }
  0x5b   : > { %v916_v37 = vrot.slane %v915_v1, 4  ;;  %v5122_v26 = vsel %vm5046_vm5, %v521_v53, %v528_v50  ;;  %v930_v19 = vrot.slane %v929_v41, 4  ;;  %v519_v28 = vor.u32 %v517_v40, %v516_v15  ;;  %v444_v53 = vld [vmem:[%s4802_s19 + $0x7c] sm:$0xf] }
  0x5c   : > { %710 = vst.msk [vmem:[#allocation3 + $0x14] sm:$0xf] %vm704_vm6, %v5122_v26  ;;  %v4407_v39 = vrot.slane %v509_v18, 11  ;;  %v933_v31 = vrot.slane %v6998_v44, 4  ;;  %v921_v17 = vrot.slane %v920_v49, 4  ;;  %v925_v63 = vrot.slane %v923_v52, 5 }
  0x5d   : > { %v5133_v1 = vrot.slane %v7000_v57, 5  ;;  %v465_v50 = vshrl.u32 %v413_v56, 16  ;;  %v947_v41 = vrot.slane %v7001_v54, 4  ;;  %v941_v18 = vrot.slane %v7002_v38, 4 }
  0x5e   : > { %v942_v40 = vrot.slane %v6999_v21, 5  ;;  %v5145_v49 = vsel %vm5046_vm5, %v4407_v39, %v519_v28  ;;  %v477_v15 = vrot.slane %v4997_v30, 4  ;;  %v484_v52 = vor.u32 %v482_v20, %v481_v27 }
  0x5f   : > { %v5156_v56 = vsel %vm4932_vm2, %v916_v37, %v917_v47  ;;  %709 = vst.msk [vmem:[#allocation3 + $0x10] sm:$0xf] %vm704_vm6, %v5145_v49  ;;  %v4405_v39 = vrot.slane %v465_v50, 11  ;;  %v934_v28 = vor.u32 %v933_v31, %v931_v58  ;;  %v937_v30 = vshll.u32 %v444_v53, 16 }
  0x60   : > { %v7003_v20 = vshll.u32 %v4923_v43, 16  ;;  %v5164_v27 = vsel %vm4932_vm2, %v930_v19, %v931_v58  ;;  %v5168_v44 = vsel %vm4932_vm2, %v921_v17, %v925_v63  ;;  %v951_v47 = vshll.u32 %v448_v55, 16  ;;  %v429_v58 = vld [vmem:[%s4802_s19 + $0x40] sm:$0xf] }
  0x61   : > { %985 = vrot.lane.b32.xlu1 %v5032_v61, %s4701_s21  ;;  %983 = vrot.lane.b32.xlu0 %v5056_v48, %s4701_s21  ;;  %v476_v37 = vsel %vm5046_vm5, %v4405_v39, %v5082_v45  ;;  %v948_v31 = vor.u32 %v947_v41, %v5133_v1  ;;  %v943_v53 = vor.u32 %v942_v40, %v941_v18  ;;  %v553_v63 = vshrl.u32 %v429_v58, 16 }
  0x62   : > { %987 = vrot.lane.b32.xlu2 %v5101_v59, %s4701_s21  ;;  %705 = vst.msk [vmem:[#allocation3] sm:$0xf] %vm704_vm6, %v476_v37  ;;  %v7017_v55 = vshrl.u32 %v4845_v8, 16  ;;  %v7018_v45 = vshrl.u32 %v4838_v7, 16  ;;  %v7019_v41 = vshrl.u32 %v4835_v6, 16  ;;  %v935_v40 = vrot.slane %v934_v28, 4 }
  0x63   : > { %v939_v39 = vrot.slane %v937_v30, 5  ;;  %v955_v37 = vrot.slane %v7004_v4, 4  ;;  %v956_v57 = vrot.slane %v7003_v20, 5  ;;  %v4409_v58 = vrot.slane %v553_v63, 11 }
  0x64   : > { %v5182_v17 = vrot.slane %v7017_v55, 7  ;;  %v538_v19 = vrot.slane %v7018_v45, 7  ;;  %v547_v18 = vrot.slane %v7019_v41, 7  ;;  %v7020_v55 = vshll.u32 %v4845_v8, 16 }
  0x65   : > { %v7021_v45 = vshll.u32 %v4835_v6, 16  ;;  %v949_v21 = vrot.slane %v948_v31, 4  ;;  %v953_v41 = vrot.slane %v951_v47, 5  ;;  %v944_v28 = vrot.slane %v943_v53, 4  ;;  %v452_v53 = vld [vmem:[%s4802_s19 + $0x9c] sm:$0xf] }
  0x66   : > { %v563_v54 = vor.u32 %v7020_v55, %v5182_v17  ;;  %v543_v38 = vrot.slane %v538_v19, 4  ;;  %v7022_v30 = vshll.u32 %v4920_v42, 16  ;;  %v499_v47 = vrot.slane %v5041_v29, 4 }
  0x67   : > { %v550_v50 = vor.u32 %v7021_v45, %v547_v18  ;;  %v7023_v18 = vshll.u32 %v4820_v3, 16  ;;  %v7024_v45 = vshrl.u32 %v4920_v42, 16  ;;  %v5216_v4 = vsel %vm4932_vm2, %v935_v40, %v939_v39  ;;  %v433_v39 = vld [vmem:[%s4802_s19 + $0x50] sm:$0xf] }
  0x68   : > { %v959_v63 = vrot.slane %v7022_v30, 5  ;;  %v5205_v55 = vsel %vm5046_vm5, %v4409_v58, %v563_v54  ;;  %v957_v58 = vor.u32 %v956_v57, %v955_v37  ;;  %v5232_v40 = vsel %vm4932_vm2, %v949_v21, %v953_v41 }
  0x69   : > { %991 = vrot.lane.b32.xlu1 %v5088_v34, %s4701_s21  ;;  %989 = vrot.lane.b32.xlu0 %v5114_v25, %s4701_s21  ;;  %v506_v31 = vor.u32 %v7023_v18, %v5001_v35  ;;  %v961_v20 = vrot.slane %v7024_v45, 4  ;;  %713 = vst.msk [vmem:[#allocation3 + $0x20] sm:$0xf] %vm704_vm6, %v5205_v55  ;;  %v5222_v54 = vsel %vm5046_vm5, %v543_v38, %v550_v50  ;;  %v965_v38 = vshll.u32 %v452_v53, 16  ;;  %v425_v18 = vld [vmem:[%s4802_s19 + $0x30] sm:$0xf] }
  0x6a   : > { %993 = vrot.lane.b32.xlu2 %v5156_v56, %s4701_s21  ;;  %712 = vst.msk [vmem:[#allocation3 + $0x1c] sm:$0xf] %vm704_vm6, %v5222_v54  ;;  %v485_v35 = vsel %vm5046_vm5, %v477_v15, %v484_v52  ;;  %v7025_v57 = vshrl.u32 %v4850_v9, 16  ;;  %v7026_v37 = vshrl.u32 %v4860_v11, 16  ;;  %v575_v15 = vshrl.u32 %v433_v39, 16 }
  0x6b   : > { %v507_v29 = vsel %vm5046_vm5, %v499_v47, %v506_v31  ;;  %706 = vst.msk [vmem:[#allocation3 + $0x4] sm:$0xf] %vm704_vm6, %v485_v35  ;;  %v5246_v21 = vsel %vm4932_vm2, %v944_v28, %v5133_v1  ;;  %v962_v52 = vor.u32 %v961_v20, %v959_v63  ;;  %v958_v41 = vrot.slane %v957_v58, 4 }
  0x6c   : > { %708 = vst.msk [vmem:[#allocation3 + $0xc] sm:$0xf] %vm704_vm6, %v507_v29  ;;  %v582_v50 = vrot.slane %v7025_v57, 7  ;;  %v591_v30 = vrot.slane %v7026_v37, 7  ;;  %v7027_v53 = vshll.u32 %v4860_v11, 16  ;;  %v4410_v35 = vrot.slane %v575_v15, 11 }
  0x6d   : > { %v7028_v57 = vshll.u32 %v4850_v9, 16  ;;  %v531_v39 = vshrl.u32 %v425_v18, 16  ;;  %v967_v1 = vrot.slane %v965_v38, 5  ;;  %v7029_v28 = vshll.u32 %v4838_v7, 16 }
  0x6e   : > { %v587_v47 = vrot.slane %v582_v50, 4  ;;  %v594_v45 = vor.u32 %v7027_v53, %v591_v30  ;;  %v963_v30 = vrot.slane %v962_v52, 4  ;;  %v7030_v52 = vshrl.u32 %v4877_v16, 16 }
  0x6f   : > { %v585_v37 = vor.u32 %v7028_v57, %v582_v50  ;;  %v541_v58 = vor.u32 %v7029_v28, %v538_v19  ;;  %v5266_v50 = vsel %vm4932_vm2, %v958_v41, %v959_v63  ;;  %v4408_v38 = vrot.slane %v531_v39, 11  ;;  %v441_v19 = vld [vmem:[%s4802_s19 + $0x70] sm:$0xf] }
  0x70   : > { %v5260_v20 = vsel %vm5046_vm5, %v587_v47, %v594_v45  ;;  %v619_v63 = vshrl.u32 %v441_v19, 16  ;;  %v5287_v41 = vrot.slane %v7030_v52, 7  ;;  %v7032_v53 = vshrl.u32 %v4865_v12, 16 }
  0x71   : > { %997 = vrot.lane.b32.xlu1 %v5164_v27, %s4701_s21  ;;  %995 = vrot.lane.b32.xlu0 %v5168_v44, %s4701_s21  ;;  %716 = vst.msk [vmem:[#allocation3 + $0x2c] sm:$0xf] %vm704_vm6, %v5260_v20  ;;  %v5272_v15 = vsel %vm5046_vm5, %v4410_v35, %v585_v37  ;;  %v5278_v18 = vsel %vm5046_vm5, %v4408_v38, %v541_v58  ;;  %v7033_v39 = vshll.u32 %v4877_v16, 16  ;;  %v7034_v38 = vshll.u32 %v4865_v12, 16 }
  0x72   : > { %999 = vrot.lane.b32.xlu2 %v5216_v4, %s4701_s21  ;;  %715 = vst.msk [vmem:[#allocation3 + $0x28] sm:$0xf] %vm704_vm6, %v5272_v15  ;;  %v613_v45 = vrot.slane %v7032_v53, 7  ;;  %v5295_v35 = vsel %vm4932_vm2, %v963_v30, %v967_v1  ;;  %v4412_v37 = vrot.slane %v619_v63, 11  ;;  %v7035_v52 = vshrl.u32 %v4853_v10, 16 }
  0x73   : > { %711 = vst.msk [vmem:[#allocation3 + $0x18] sm:$0xf] %vm704_vm6, %v5278_v18  ;;  %v629_v28 = vor.u32 %v7033_v39, %v5287_v41  ;;  %v565_v30 = vrot.slane %v5182_v17, 4  ;;  %v7037_v53 = vshll.u32 %v4853_v10, 16  ;;  %v7038_v17 = vshrl.u32 %v4890_v23, 16 }
  0x74   : > { %v754_v31 = vpop.permute.xlu2 %753  ;;  %v616_v19 = vor.u32 %v7034_v38, %v613_v45  ;;  %v7039_v39 = vshrl.u32 %v4911_v33, 16  ;;  %v437_v38 = vld [vmem:[%s4802_s19 + $0x60] sm:$0xf] }
  0x75   : > { %810 = vst.msk [vmem:[#allocation3 + $0x10] sm:$0xf] %vm805_vm7, %v754_v31  ;;  %v7031_v31 = vshrl.u32 %v4868_v13, 16  ;;  %v5311_v1 = vsel %vm5046_vm5, %v4412_v37, %v629_v28  ;;  %v648_v37 = vrot.slane %v7038_v17, 7  ;;  %v597_v51 = vshrl.u32 %v437_v38, 16 }
  0x76   : > { %7036 = vst [vmem:[#allocation5_spill] sm:$0xff] %v5311_v1  ;;  %v657_v28 = vrot.slane %v7039_v39, 7  ;;  %v7042_v17 = vshll.u32 %v4868_v13, 16 }
  0x77   : > { %v604_v47 = vrot.slane %v7031_v31, 7  ;;  %v569_v31 = vrot.slane %v7035_v52, 7  ;;  %719 = vst.msk [vmem:[#allocation3 + $0x38] sm:$0xf] %vm704_vm6, %v5311_v1  ;;  %v653_v52 = vrot.slane %v648_v37, 4 }
  0x79   : > { %1003 = vrot.lane.b32.xlu1 %v5232_v40, %s4701_s21  ;;  %1001 = vrot.lane.b32.xlu0 %v5246_v21, %s4701_s21  ;;  %v609_v58 = vrot.slane %v604_v47, 4  ;;  %v572_v45 = vor.u32 %v7037_v53, %v569_v31  ;;  %v7040_v31 = vshll.u32 %v4911_v33, 16  ;;  %v607_v39 = vor.u32 %v7042_v17, %v604_v47 }
  0x7a   : > { %1005 = vrot.lane.b32.xlu2 %v5266_v50, %s4701_s21  ;;  %v7043_v47 = vshrl.u32 %v4923_v43, 16  ;;  %v7046_v17 = vshll.u32 %v4920_v42, 16 }
  0x7b   : > { %v5318_v63 = vsel %vm5046_vm5, %v609_v58, %v616_v19 }
  0x7c   : > { %v756_v57 = vpop.permute.xlu2 %755  ;;  %718 = vst.msk [vmem:[#allocation3 + $0x34] sm:$0xf] %vm704_vm6, %v5318_v63 }
  0x7d   : > { %811 = vst.msk [vmem:[#allocation3 + $0x14] sm:$0xf] %vm805_vm7, %v756_v57  ;;  %v445_v57 = vld [vmem:[%s4802_s19 + $0x80] sm:$0xf] }
  0x7e   : > { %v641_v58 = vshrl.u32 %v445_v57, 16 }
  0x80   : > { %v4413_v53 = vrot.slane %v641_v58, 11 }
  0x81   : > { %1072 = vrot.lane.b32.xlu1 %v5070_v60, %s4702_s22  ;;  %1007 = vrot.lane.b32.xlu0 %v5295_v35, %s4701_s21  ;;  %v5326_v60 = vsel %vm5046_vm5, %v565_v30, %v572_v45  ;;  %v660_v30 = vor.u32 %v7040_v31, %v657_v28  ;;  %v7041_v45 = vshll.u32 %v4890_v23, 16  ;;  %v4411_v28 = vrot.slane %v597_v51, 11 }
  0x82   : > { %1074 = vrot.lane.b32.xlu2 %v507_v29, %s4702_s22  ;;  %714 = vst.msk [vmem:[#allocation3 + $0x24] sm:$0xf] %vm704_vm6, %v5326_v60  ;;  %v7044_v51 = vshrl.u32 %v4920_v42, 16 }
  0x83   : > { %v651_v29 = vor.u32 %v7041_v45, %v648_v37  ;;  %v5348_v57 = vsel %vm5046_vm5, %v653_v52, %v660_v30  ;;  %v670_v52 = vrot.slane %v7043_v47, 7  ;;  %v7045_v45 = vshrl.u32 %v4893_v24, 16 }
  0x84   : > { %v762_v19 = vpop.permute.xlu2 %761  ;;  %722 = vst.msk [vmem:[#allocation3 + $0x44] sm:$0xf] %vm704_vm6, %v5348_v57  ;;  %v679_v31 = vrot.slane %v7044_v51, 7 }
  0x85   : > { %814 = vst.msk [vmem:[#allocation3 + $0x20] sm:$0xf] %vm805_vm7, %v762_v19  ;;  %v5356_v37 = vsel %vm5046_vm5, %v4413_v53, %v651_v29  ;;  %v5363_v19 = vsel %vm5046_vm5, %v4411_v28, %v607_v39  ;;  %v675_v53 = vrot.slane %v670_v52, 4  ;;  %v635_v29 = vrot.slane %v7045_v45, 7 }
  0x86   : > { %721 = vst.msk [vmem:[#allocation3 + $0x40] sm:$0xf] %vm704_vm6, %v5356_v37  ;;  %v682_v39 = vor.u32 %v7046_v17, %v679_v31  ;;  %v631_v28 = vrot.slane %v5287_v41, 4  ;;  %v449_v41 = vld [vmem:[%s4802_s19 + $0x90] sm:$0xf]  ;;  %v7049_v17 = vshll.u32 %v4923_v43, 16 }
  0x87   : > { %717 = vst.msk [vmem:[#allocation3 + $0x30] sm:$0xf] %vm704_vm6, %v5363_v19  ;;  %v663_v45 = vshrl.u32 %v449_v41, 16 }
  0x88   : > { %v5388_v47 = vsel %vm5046_vm5, %v675_v53, %v682_v39  ;;  %v673_v39 = vor.u32 %v7049_v17, %v670_v52 }
  0x89   : > { %1078 = vrot.lane.b32.xlu1 %v5122_v26, %s4702_s22  ;;  %1076 = vrot.lane.b32.xlu0 %v5145_v49, %s4702_s22  ;;  %724 = vst.msk [vmem:[#allocation3 + $0x4c] sm:$0xf] %vm704_vm6, %v5388_v47 }
  0x8a   : > { %1080 = vrot.lane.b32.xlu2 %v5278_v18, %s4702_s22 }
  0x8b   : > { %v750_v58 = vpop.permute.xlu1 %749  ;;  %v746_v38 = vpop.permute.xlu0 %745 }
  0x8c   : > { %808 = vst.msk [vmem:[#allocation3 + $0x8] sm:$0xf] %vm805_vm7, %v750_v58  ;;  %v768_v30 = vpop.permute.xlu2 %767  ;;  %v7047_v58 = vshll.u32 %v4893_v24, 16 }
  0x8d   : > { %806 = vst.msk [vmem:[#allocation3] sm:$0xf] %vm805_vm7, %v746_v38 }
  0x8e   : > { %817 = vst.msk [vmem:[#allocation3 + $0x2c] sm:$0xf] %vm805_vm7, %v768_v30  ;;  %v638_v38 = vor.u32 %v7047_v58, %v635_v29  ;;  %v4414_v29 = vrot.slane %v663_v45, 11  ;;  %v453_v45 = vld [vmem:[%s4802_s19 + $0xa0] sm:$0xf] }
  0x8f   : > { %v1051_v17 = vshrl.u32 %v453_v45, 16 }
  0x90   : > { %v5394_v31 = vsel %vm5046_vm5, %v631_v28, %v638_v38  ;;  %v5412_v38 = vsel %vm5046_vm5, %v4414_v29, %v673_v39  ;;  %v5431_v29 = vld [vmem:[%s4802_s19 + $0xa8] sm:$0xf] }
  0x91   : > { %1084 = vrot.lane.b32.xlu1 %v5205_v55, %s4702_s22  ;;  %1082 = vrot.lane.b32.xlu0 %v5222_v54, %s4702_s22  ;;  %7048 = vst [vmem:[#allocation6_spill] sm:$0xff] %v5394_v31 }
  0x92   : > { %1086 = vrot.lane.b32.xlu2 %v5326_v60, %s4702_s22  ;;  %720 = vst.msk [vmem:[#allocation3 + $0x3c] sm:$0xf] %vm704_vm6, %v5394_v31 }
  0x93   : > { %v752_v51 = vpop.permute.xlu1 %751  ;;  %v748_v30 = vpop.permute.xlu0 %747  ;;  %723 = vst.msk [vmem:[#allocation3 + $0x48] sm:$0xf] %vm704_vm6, %v5412_v38  ;;  %vm1901_vm6 = vsmask.f32 7950 }
  0x94   : > { %809 = vst.msk [vmem:[#allocation3 + $0xc] sm:$0xf] %vm805_vm7, %v752_v51  ;;  %v774_v53 = vpop.permute.xlu2 %773  ;;  %v5421_v51 = vld [vmem:[%s4802_s19 + $0xa4] sm:$0xf] }
  0x95   : > { %807 = vst.msk [vmem:[#allocation3 + $0x4] sm:$0xf] %vm805_vm7, %v748_v30  ;;  %v7007_v30 = vshrl.u32 %v5421_v51, 16 }
  0x96   : > { %820 = vst.msk [vmem:[#allocation3 + $0x38] sm:$0xf] %vm805_vm7, %v774_v53 }
  0x97   : > { %v1058_v39 = vrot.slane %v7007_v30, 7  ;;  %v1068_v30 = vshll.u32 %v5431_v29, 16 }
  0x99   : > { %1090 = vrot.lane.b32.xlu1 %v5260_v20, %s4702_s22  ;;  %1088 = vrot.lane.b32.xlu0 %v5272_v15, %s4702_s22 }
  0x9a   : > { %1092 = vrot.lane.b32.xlu2 %v5363_v19, %s4702_s22 }
  0x9b   : > { %v760_v28 = vpop.permute.xlu1 %759  ;;  %v758_v58 = vpop.permute.xlu0 %757 }
  0x9c   : > { %813 = vst.msk [vmem:[#allocation3 + $0x1c] sm:$0xf] %vm805_vm7, %v760_v28  ;;  %v780_v52 = vpop.permute.xlu2 %779  ;;  %v7010_v28 = vshll.u32 %v5421_v51, 16 }
  0x9d   : > { %812 = vst.msk [vmem:[#allocation3 + $0x18] sm:$0xf] %vm805_vm7, %v758_v58  ;;  %v7011_v58 = vshrl.u32 %v5431_v29, 16 }
  0x9e   : > { %823 = vst.msk [vmem:[#allocation3 + $0x44] sm:$0xf] %vm805_vm7, %v780_v52 }
  0x9f   : > { %v1067_v45 = vrot.slane %v7011_v58, 7 }
  0xa1   : > { %1096 = vrot.lane.b32.xlu1 %v5311_v1, %s4702_s22  ;;  %1094 = vrot.lane.b32.xlu0 %v5318_v63, %s4702_s22 }
  0xa2   : > { %1098 = vrot.lane.b32.xlu2 %v5394_v31, %s4702_s22 }
  0xa3   : > { %v766_v41 = vpop.permute.xlu1 %765  ;;  %v764_v53 = vpop.permute.xlu0 %763 }
  0xa4   : > { %816 = vst.msk [vmem:[#allocation3 + $0x28] sm:$0xf] %vm805_vm7, %v766_v41  ;;  %v970_v52 = vpop.permute.xlu2 %969  ;;  %v4415_v41 = vrot.slane %v1051_v17, 11 }
  0xa5   : > { %815 = vst.msk [vmem:[#allocation3 + $0x24] sm:$0xf] %vm805_vm7, %v764_v53  ;;  %v1061_v53 = vor.u32 %v7010_v28, %v1058_v39  ;;  %v1070_v28 = vor.u32 %v1068_v30, %v1067_v45 }
  0xa6   : > { %1030 = vst.msk [vmem:[#allocation3] sm:$0xf] %vm1029_vm8, %v970_v52  ;;  %v1063_v52 = vrot.slane %v1058_v39, 4 }
  0xa7   : > { %v5457_v17 = vsel %vm5046_vm5, %v4415_v41, %v1061_v53 }
  0xa9   : > { %1102 = vrot.lane.b32.xlu1 %v5348_v57, %s4702_s22  ;;  %1100 = vrot.lane.b32.xlu0 %v5356_v37, %s4702_s22 }
  0xaa   : > { %1104 = vrot.lane.b32.xlu2 %v5412_v38, %s4702_s22 }
  0xab   : > { %v772_v31 = vpop.permute.xlu1 %771  ;;  %v770_v1 = vpop.permute.xlu0 %769 }
  0xac   : > { %819 = vst.msk [vmem:[#allocation3 + $0x34] sm:$0xf] %vm805_vm7, %v772_v31  ;;  %v976_v58 = vpop.permute.xlu2 %975 }
  0xad   : > { %818 = vst.msk [vmem:[#allocation3 + $0x30] sm:$0xf] %vm805_vm7, %v770_v1  ;;  %v5468_v1 = vsel %vm5046_vm5, %v1063_v52, %v1070_v28 }
  0xae   : > { %1033 = vst.msk [vmem:[#allocation3 + $0xc] sm:$0xf] %vm1029_vm8, %v976_v58 }
  0xb1   : > { %1108 = vrot.lane.b32.xlu1 %v5457_v17, %s4702_s22  ;;  %1106 = vrot.lane.b32.xlu0 %v5388_v47, %s4702_s22 }
  0xb2   : > { %1110 = vrot.lane.b32.xlu2 %v5468_v1, %s4702_s22  ;;  %s400_s22 = scalar_lea.vmem %s6972_s3, %s7091_s28 }
  0xb3   : > { %v778_v31 = vpop.permute.xlu1 %777  ;;  %v776_v41 = vpop.permute.xlu0 %775 }
  0xb4   : > { %822 = vst.msk [vmem:[#allocation3 + $0x40] sm:$0xf] %vm805_vm7, %v778_v31  ;;  %v982_v39 = vpop.permute.xlu2 %981 }
  0xb5   : > { %821 = vst.msk [vmem:[#allocation3 + $0x3c] sm:$0xf] %vm805_vm7, %v776_v41 }
  0xb6   : > { %1036 = vst.msk [vmem:[#allocation3 + $0x18] sm:$0xf] %vm1029_vm8, %v982_v39 }
  0xb9   : > { %1157 = vrot.lane.b32.xlu1 %v4820_v3, %s4703_s23  ;;  %1155 = vrot.lane.b32.xlu0 %v4805_v0, %s4703_s23 }
  0xba   : > { %1159 = vrot.lane.b32.xlu2 %v4815_v2, %s4703_s23 }
  0xbb   : > { %v784_v28 = vpop.permute.xlu1 %783  ;;  %v782_v58 = vpop.permute.xlu0 %781 }
  0xbc   : > { %825 = vst.msk [vmem:[#allocation3 + $0x4c] sm:$0xf] %vm805_vm7, %v784_v28  ;;  %v988_v53 = vpop.permute.xlu2 %987 }
  0xbd   : > { %824 = vst.msk [vmem:[#allocation3 + $0x48] sm:$0xf] %vm805_vm7, %v782_v58  ;;  %vm5865_vm7 = vmand %vm1900_vm4, %vm1901_vm6 }
  0xbe   : > { %1039 = vst.msk [vmem:[#allocation3 + $0x24] sm:$0xf] %vm1029_vm8, %v988_v53 }
  0xc1   : > { %1163 = vrot.lane.b32.xlu1 %v4838_v7, %s4703_s23  ;;  %1161 = vrot.lane.b32.xlu0 %v4830_v5, %s4703_s23 }
  0xc2   : > { %1165 = vrot.lane.b32.xlu2 %v4835_v6, %s4703_s23 }
  0xc3   : > { %v974_v3 = vpop.permute.xlu1 %973  ;;  %v972_v0 = vpop.permute.xlu0 %971 }
  0xc4   : > { %1032 = vst.msk [vmem:[#allocation3 + $0x8] sm:$0xf] %vm1029_vm8, %v974_v3  ;;  %v994_v45 = vpop.permute.xlu2 %993 }
  0xc5   : > { %1031 = vst.msk [vmem:[#allocation3 + $0x4] sm:$0xf] %vm1029_vm8, %v972_v0  ;;  %v7050_v0 = vshrl.u32 %v5421_v51, 16 }
  0xc6   : > { %1042 = vst.msk [vmem:[#allocation3 + $0x30] sm:$0xf] %vm1029_vm8, %v994_v45 }
  0xc7   : > { %v1236_v45 = vrot.slane %v7050_v0, 4 }
  0xc9   : > { %1169 = vrot.lane.b32.xlu1 %v4853_v10, %s4703_s23  ;;  %1167 = vrot.lane.b32.xlu0 %v4845_v8, %s4703_s23 }
  0xca   : > { %1171 = vrot.lane.b32.xlu2 %v4850_v9, %s4703_s23 }
  0xcb   : > { %v980_v2 = vpop.permute.xlu1 %979  ;;  %v978_v5 = vpop.permute.xlu0 %977 }
  0xcc   : > { %1035 = vst.msk [vmem:[#allocation3 + $0x14] sm:$0xf] %vm1029_vm8, %v980_v2  ;;  %v1000_v7 = vpop.permute.xlu2 %999  ;;  %v7051_v2 = vshll.u32 %v5421_v51, 16 }
  0xcd   : > { %1034 = vst.msk [vmem:[#allocation3 + $0x10] sm:$0xf] %vm1029_vm8, %v978_v5 }
  0xce   : > { %1045 = vst.msk [vmem:[#allocation3 + $0x3c] sm:$0xf] %vm1029_vm8, %v1000_v7  ;;  %v1237_v5 = vrot.slane %v7051_v2, 5 }
  0xd1   : > { %1175 = vrot.lane.b32.xlu1 %v4868_v13, %s4703_s23  ;;  %1173 = vrot.lane.b32.xlu0 %v4860_v11, %s4703_s23 }
  0xd2   : > { %1177 = vrot.lane.b32.xlu2 %v4865_v12, %s4703_s23 }
  0xd3   : > { %v986_v6 = vpop.permute.xlu1 %985  ;;  %v984_v8 = vpop.permute.xlu0 %983 }
  0xd4   : > { %1038 = vst.msk [vmem:[#allocation3 + $0x20] sm:$0xf] %vm1029_vm8, %v986_v6  ;;  %v1006_v10 = vpop.permute.xlu2 %1005  ;;  %v1240_v6 = vrot.slane %v1068_v30, 5 }
  0xd5   : > { %1037 = vst.msk [vmem:[#allocation3 + $0x1c] sm:$0xf] %vm1029_vm8, %v984_v8  ;;  %v7052_v8 = vshrl.u32 %v5431_v29, 16 }
  0xd6   : > { %1048 = vst.msk [vmem:[#allocation3 + $0x48] sm:$0xf] %vm1029_vm8, %v1006_v10 }
  0xd7   : > { %v1242_v10 = vrot.slane %v7052_v8, 4 }
  0xd9   : > { %1181 = vrot.lane.b32.xlu1 %v4893_v24, %s4703_s23  ;;  %1179 = vrot.lane.b32.xlu0 %v4877_v16, %s4703_s23 }
  0xda   : > { %1183 = vrot.lane.b32.xlu2 %v4890_v23, %s4703_s23 }
  0xdb   : > { %v992_v9 = vpop.permute.xlu1 %991  ;;  %v990_v11 = vpop.permute.xlu0 %989 }
  0xdc   : > { %1041 = vst.msk [vmem:[#allocation3 + $0x2c] sm:$0xf] %vm1029_vm8, %v992_v9  ;;  %v1075_v12 = vpop.permute.xlu2 %1074  ;;  %v1238_v9 = vor.u32 %v1237_v5, %v1236_v45  ;;  %v457_v5 = vld [vmem:[%s4802_s19 + $0xb0] sm:$0xf] }
  0xdd   : > { %1040 = vst.msk [vmem:[#allocation3 + $0x28] sm:$0xf] %vm1029_vm8, %v990_v11 }
  0xde   : > { %1134 = vst.msk [vmem:[#allocation3 + $0x4] sm:$0xf] %vm1132_vm9, %v1075_v12 }
  0xe1   : > { %1187 = vrot.lane.b32.xlu1 %v4923_v43, %s4703_s23  ;;  %1185 = vrot.lane.b32.xlu0 %v4911_v33, %s4703_s23 }
  0xe2   : > { %1189 = vrot.lane.b32.xlu2 %v4920_v42, %s4703_s23 }
  0xe3   : > { %v998_v13 = vpop.permute.xlu1 %997  ;;  %v996_v16 = vpop.permute.xlu0 %995 }
  0xe4   : > { %1044 = vst.msk [vmem:[#allocation3 + $0x38] sm:$0xf] %vm1029_vm8, %v998_v13  ;;  %v1081_v23 = vpop.permute.xlu2 %1080  ;;  %v456_v13 = vld [vmem:[%s4802_s19 + $0xac] sm:$0xf] }
  0xe5   : > { %1043 = vst.msk [vmem:[#allocation3 + $0x34] sm:$0xf] %vm1029_vm8, %v996_v16  ;;  %v1243_v16 = vor.u32 %v1242_v10, %v1240_v6 }
  0xe6   : > { %1137 = vst.msk [vmem:[#allocation3 + $0x10] sm:$0xf] %vm1132_vm9, %v1081_v23  ;;  %v1246_v23 = vshll.u32 %v456_v13, 16 }
  0xe7   : > { %v1244_v30 = vrot.slane %v1243_v16, 4 }
  0xe9   : > { %1193 = vrot.lane.b32.xlu1 %v5431_v29, %s4703_s23  ;;  %1191 = vrot.lane.b32.xlu0 %v5421_v51, %s4703_s23 }
  0xea   : > { %1250 = vrot.lane.b32.xlu2 %v4957_v22, %s4704_s24 }
  0xeb   : > { %v1004_v24 = vpop.permute.xlu1 %1003  ;;  %v1002_v33 = vpop.permute.xlu0 %1001 }
  0xec   : > { %1047 = vst.msk [vmem:[#allocation3 + $0x44] sm:$0xf] %vm1029_vm8, %v1004_v24  ;;  %v1087_v42 = vpop.permute.xlu2 %1086  ;;  %v1239_v24 = vrot.slane %v1238_v9, 4 }
  0xed   : > { %1046 = vst.msk [vmem:[#allocation3 + $0x40] sm:$0xf] %vm1029_vm8, %v1002_v33 }
  0xee   : > { %1140 = vst.msk [vmem:[#allocation3 + $0x1c] sm:$0xf] %vm1132_vm9, %v1087_v42  ;;  %v1248_v42 = vrot.slane %v1246_v23, 5 }
  0xf1   : > { %1254 = vrot.lane.b32.xlu1 %v5013_v14, %s4704_s24  ;;  %1252 = vrot.lane.b32.xlu0 %v4984_v32, %s4704_s24 }
  0xf2   : > { %1256 = vrot.lane.b32.xlu2 %v5009_v46, %s4704_s24 }
  0xf3   : > { %v1073_v43 = vpop.permute.xlu1 %1072  ;;  %v1008_v52 = vpop.permute.xlu0 %1007 }
  0xf4   : > { %1133 = vst.msk [vmem:[#allocation3] sm:$0xf] %vm1132_vm9, %v1073_v43  ;;  %v1093_v31 = vpop.permute.xlu2 %1092 }
  0xf5   : > { %1049 = vst.msk [vmem:[#allocation3 + $0x4c] sm:$0xf] %vm1029_vm8, %v1008_v52  ;;  %v5598_v52 = vsel %vm4932_vm2, %v1239_v24, %v1240_v6  ;;  %v1332_v6 = vshrl.u32 %v457_v5, 16  ;;  %v4653_v5 = vld [vmem:[%s4802_s19 + $0x68] sm:$0xf]  ;;  %vm1933_vm8 = vcmask 24576  }
  0xf6   : > { %1143 = vst.msk [vmem:[#allocation3 + $0x28] sm:$0xf] %vm1132_vm9, %v1093_v31 }
  0xf9   : > { %1260 = vrot.lane.b32.xlu1 %v5056_v48, %s4704_s24  ;;  %1258 = vrot.lane.b32.xlu0 %v5036_v62, %s4704_s24 }
  0xfa   : > { %1262 = vrot.lane.b32.xlu2 %v5032_v61, %s4704_s24 }
  0xfb   : > { %v1079_v22 = vpop.permute.xlu1 %1078  ;;  %v1077_v32 = vpop.permute.xlu0 %1076 }
  0xfc   : > { %1136 = vst.msk [vmem:[#allocation3 + $0xc] sm:$0xf] %vm1132_vm9, %v1079_v22  ;;  %v1099_v41 = vpop.permute.xlu2 %1098 }
  0xfd   : > { %1135 = vst.msk [vmem:[#allocation3 + $0x8] sm:$0xf] %vm1132_vm9, %v1077_v32  ;;  %v5606_v32 = vsel %vm4932_vm2, %v1244_v30, %v1248_v42 }
  0xfe   : > { %1146 = vst.msk [vmem:[#allocation3 + $0x34] sm:$0xf] %vm1132_vm9, %v1099_v41 }
 0x101   : > { %1266 = vrot.lane.b32.xlu1 %v5114_v25, %s4704_s24  ;;  %1264 = vrot.lane.b32.xlu0 %v5101_v59, %s4704_s24 }
 0x102   : > { %1268 = vrot.lane.b32.xlu2 %v5088_v34, %s4704_s24 }
 0x103   : > { %v1085_v39 = vpop.permute.xlu1 %1084  ;;  %v1083_v28 = vpop.permute.xlu0 %1082 }
 0x104   : > { %1139 = vst.msk [vmem:[#allocation3 + $0x18] sm:$0xf] %vm1132_vm9, %v1085_v39  ;;  %v1105_v58 = vpop.permute.xlu2 %1104 }
 0x105   : > { %1138 = vst.msk [vmem:[#allocation3 + $0x14] sm:$0xf] %vm1132_vm9, %v1083_v28 }
 0x106   : > { %1149 = vst.msk [vmem:[#allocation3 + $0x40] sm:$0xf] %vm1132_vm9, %v1105_v58 }
 0x109   : > { %1272 = vrot.lane.b32.xlu1 %v5168_v44, %s4704_s24  ;;  %1270 = vrot.lane.b32.xlu0 %v5156_v56, %s4704_s24 }
 0x10a   : > { %1274 = vrot.lane.b32.xlu2 %v5164_v27, %s4704_s24 }
 0x10b   : > { %v1091_v53 = vpop.permute.xlu1 %1090  ;;  %v1089_v3 = vpop.permute.xlu0 %1088 }
 0x10c   : > { %1142 = vst.msk [vmem:[#allocation3 + $0x24] sm:$0xf] %vm1132_vm9, %v1091_v53  ;;  %v1111_v7 = vpop.permute.xlu2 %1110 }
 0x10d   : > { %1141 = vst.msk [vmem:[#allocation3 + $0x20] sm:$0xf] %vm1132_vm9, %v1089_v3 }
 0x10e   : > { %1152 = vst.msk [vmem:[#allocation3 + $0x4c] sm:$0xf] %vm1132_vm9, %v1111_v7  ;;  %v5655_v7 = vld [vmem:[%s4802_s19 + $0xb8] sm:$0xf] }
 0x10f   : > { %v1346_v10 = vshrl.u32 %v5655_v7, 16  ;;  %v1349_v13 = vshll.u32 %v5655_v7, 16 }
 0x111   : > { %1278 = vrot.lane.b32.xlu1 %v5246_v21, %s4704_s24  ;;  %1276 = vrot.lane.b32.xlu0 %v5216_v4, %s4704_s24 }
 0x112   : > { %1280 = vrot.lane.b32.xlu2 %v5232_v40, %s4704_s24 }
 0x113   : > { %v1097_v11 = vpop.permute.xlu1 %1096  ;;  %v1095_v12 = vpop.permute.xlu0 %1094 }
 0x114   : > { %1145 = vst.msk [vmem:[#allocation3 + $0x30] sm:$0xf] %vm1132_vm9, %v1097_v11  ;;  %v1160_v33 = vpop.permute.xlu2 %1159  ;;  %v4416_v11 = vrot.slane %v1332_v6, 11 }
 0x115   : > { %1144 = vst.msk [vmem:[#allocation3 + $0x2c] sm:$0xf] %vm1132_vm9, %v1095_v12  ;;  %v1348_v12 = vrot.slane %v1346_v10, 7 }
 0x116   : > { %1218 = vst.msk [vmem:[#allocation3 + $0x8] sm:$0xf] %vm1215_vm10, %v1160_v33 }
 0x117   : > { %v1351_v24 = vor.u32 %v1349_v13, %v1348_v12 }
 0x119   : > { %1284 = vrot.lane.b32.xlu1 %v5295_v35, %s4704_s24  ;;  %1282 = vrot.lane.b32.xlu0 %v5266_v50, %s4704_s24 }
 0x11a   : > { %1286 = vrot.lane.b32.xlu2 %v5598_v52, %s4704_s24 }
 0x11b   : > { %v1103_v31 = vpop.permute.xlu1 %1102  ;;  %v1101_v22 = vpop.permute.xlu0 %1100 }
 0x11c   : > { %1148 = vst.msk [vmem:[#allocation3 + $0x3c] sm:$0xf] %vm1132_vm9, %v1103_v31  ;;  %v1166_v41 = vpop.permute.xlu2 %1165 }
 0x11d   : > { %1147 = vst.msk [vmem:[#allocation3 + $0x38] sm:$0xf] %vm1132_vm9, %v1101_v22  ;;  %v4643_v22 = vld [vmem:[%s4802_s19 + $0x28] sm:$0xf] }
 0x11e   : > { %1221 = vst.msk [vmem:[#allocation3 + $0x14] sm:$0xf] %vm1215_vm10, %v1166_v41 }
 0x121   : > { %1353 = vrot.lane.b32.xlu1 %v5145_v49, %s4705_s25  ;;  %1288 = vrot.lane.b32.xlu0 %v5606_v32, %s4704_s24  ;;  %s4710_s24 = smov 8  }
 0x122   : > { %1355 = vrot.lane.b32.xlu2 %v5122_v26, %s4705_s25 }
 0x123   : > { %v1109_v39 = vpop.permute.xlu1 %1108  ;;  %v1107_v28 = vpop.permute.xlu0 %1106 }
 0x124   : > { %1151 = vst.msk [vmem:[#allocation3 + $0x48] sm:$0xf] %vm1132_vm9, %v1109_v39  ;;  %v1172_v58 = vpop.permute.xlu2 %1171 }
 0x125   : > { %1150 = vst.msk [vmem:[#allocation3 + $0x44] sm:$0xf] %vm1132_vm9, %v1107_v28  ;;  %v4645_v28 = vld [vmem:[%s4802_s19 + $0x34] sm:$0xf]  ;;  %vm5882_vm9 = vmand %vm1933_vm8, %vm461_vm3 }
 0x126   : > { %1224 = vst.msk [vmem:[#allocation3 + $0x20] sm:$0xf] %vm1215_vm10, %v1172_v58 }
 0x129   : > { %1359 = vrot.lane.b32.xlu1 %v5222_v54, %s4705_s25  ;;  %1357 = vrot.lane.b32.xlu0 %v5278_v18, %s4705_s25 }
 0x12a   : > { %1361 = vrot.lane.b32.xlu2 %v5205_v55, %s4705_s25 }
 0x12b   : > { %v1158_v49 = vpop.permute.xlu1 %1157  ;;  %v1156_v53 = vpop.permute.xlu0 %1155 }
 0x12c   : > { %1217 = vst.msk [vmem:[#allocation3 + $0x4] sm:$0xf] %vm1215_vm10, %v1158_v49  ;;  %v1178_v3 = vpop.permute.xlu2 %1177  ;;  %v4646_v49 = vld [vmem:[%s4802_s19 + $0x44] sm:$0xf] }
 0x12d   : > { %1216 = vst.msk [vmem:[#allocation3] sm:$0xf] %vm1215_vm10, %v1156_v53  ;;  %v4647_v53 = vld [vmem:[%s4802_s19 + $0x38] sm:$0xf] }
 0x12e   : > { %1227 = vst.msk [vmem:[#allocation3 + $0x2c] sm:$0xf] %vm1215_vm10, %v1178_v3 }
 0x131   : > { %1365 = vrot.lane.b32.xlu1 %v5272_v15, %s4705_s25  ;;  %1363 = vrot.lane.b32.xlu0 %v5326_v60, %s4705_s25  ;;  %v7054_v60 = vld [vmem:[#allocation5_spill] sm:$0xff] }
 0x132   : > { %1367 = vrot.lane.b32.xlu2 %v5260_v20, %s4705_s25  ;;  %v5645_v20 = vld [vmem:[%s4802_s19 + $0xb4] sm:$0xf] }
 0x133   : > { %v1164_v26 = vpop.permute.xlu1 %1163  ;;  %v1162_v54 = vpop.permute.xlu0 %1161  ;;  %v1340_v8 = vshll.u32 %v5645_v20, 16 }
 0x134   : > { %1220 = vst.msk [vmem:[#allocation3 + $0x10] sm:$0xf] %vm1215_vm10, %v1164_v26  ;;  %v1184_v55 = vpop.permute.xlu2 %1183 }
 0x135   : > { %1219 = vst.msk [vmem:[#allocation3 + $0xc] sm:$0xf] %vm1215_vm10, %v1162_v54  ;;  %v4648_v54 = vld [vmem:[%s4802_s19 + $0x48] sm:$0xf] }
 0x136   : > { %1230 = vst.msk [vmem:[#allocation3 + $0x38] sm:$0xf] %vm1215_vm10, %v1184_v55 }
 0x139   : > { %1371 = vrot.lane.b32.xlu1 %v5318_v63, %s4705_s25  ;;  %1369 = vrot.lane.b32.xlu0 %v5363_v19, %s4705_s25  ;;  %v7055_v63 = vld [vmem:[#allocation6_spill] sm:$0xff]  ;;  %v1337_v19 = vshrl.u32 %v5645_v20, 16 }
 0x13a   : > { %1373 = vrot.lane.b32.xlu2 %v7054_v60, %s4705_s25 }
 0x13b   : > { %v1170_v15 = vpop.permute.xlu1 %1169  ;;  %v1168_v18 = vpop.permute.xlu0 %1167 }
 0x13c   : > { %1223 = vst.msk [vmem:[#allocation3 + $0x1c] sm:$0xf] %vm1215_vm10, %v1170_v15  ;;  %v1190_v0 = vpop.permute.xlu2 %1189  ;;  %v4649_v15 = vld [vmem:[%s4802_s19 + $0x58] sm:$0xf] }
 0x13d   : > { %1222 = vst.msk [vmem:[#allocation3 + $0x18] sm:$0xf] %vm1215_vm10, %v1168_v18  ;;  %v4650_v18 = vld [vmem:[%s4802_s19 + $0x54] sm:$0xf] }
 0x13e   : > { %1233 = vst.msk [vmem:[#allocation3 + $0x44] sm:$0xf] %vm1215_vm10, %v1190_v0 }
 0x141   : > { %1377 = vrot.lane.b32.xlu1 %v5356_v37, %s4705_s25  ;;  %1375 = vrot.lane.b32.xlu0 %v7055_v63, %s4705_s25  ;;  %v1339_v37 = vrot.slane %v1337_v19, 7  ;;  %v4651_v63 = vld [vmem:[%s4802_s19 + $0x64] sm:$0xf] }
 0x142   : > { %1379 = vrot.lane.b32.xlu2 %v5348_v57, %s4705_s25 }
 0x143   : > { %v1176_v45 = vpop.permute.xlu1 %1175  ;;  %v1174_v2 = vpop.permute.xlu0 %1173  ;;  %v1342_v57 = vor.u32 %v1340_v8, %v1339_v37 }
 0x144   : > { %1226 = vst.msk [vmem:[#allocation3 + $0x28] sm:$0xf] %vm1215_vm10, %v1176_v45  ;;  %v1251_v9 = vpop.permute.xlu2 %1250 }
 0x145   : > { %1225 = vst.msk [vmem:[#allocation3 + $0x24] sm:$0xf] %vm1215_vm10, %v1174_v2  ;;  %v4652_v2 = vld [vmem:[%s4802_s19 + $0x74] sm:$0xf] }
 0x146   : > { %1311 = vst.msk [vmem:[#allocation3] sm:$0xf] %vm1310_vm11, %v1251_v9  ;;  %v4654_v9 = vld [vmem:[%s4802_s19 + $0x78] sm:$0xf] }
 0x149   : > { %1383 = vrot.lane.b32.xlu1 %v5388_v47, %s4705_s25  ;;  %1381 = vrot.lane.b32.xlu0 %v5412_v38, %s4705_s25  ;;  %v1343_v47 = vsel %vm5046_vm5, %v4416_v11, %v1342_v57  ;;  %v1344_v38 = vrot.slane %v1339_v37, 4 }
 0x14a   : > { %1385 = vrot.lane.b32.xlu2 %v5457_v17, %s4705_s25 }
 0x14b   : > { %v1182_v16 = vpop.permute.xlu1 %1181  ;;  %v1180_v23 = vpop.permute.xlu0 %1179  ;;  %v1352_v17 = vsel %vm5046_vm5, %v1344_v38, %v1351_v24 }
 0x14c   : > { %1229 = vst.msk [vmem:[#allocation3 + $0x34] sm:$0xf] %vm1215_vm10, %v1182_v16  ;;  %v1257_v33 = vpop.permute.xlu2 %1256  ;;  %v4655_v16 = vld [vmem:[%s4802_s19 + $0x84] sm:$0xf] }
 0x14d   : > { %1228 = vst.msk [vmem:[#allocation3 + $0x30] sm:$0xf] %vm1215_vm10, %v1180_v23 }
 0x14e   : > { %1314 = vst.msk [vmem:[#allocation3 + $0xc] sm:$0xf] %vm1310_vm11, %v1257_v33 }
 0x151   : > { %1389 = vrot.lane.b32.xlu1 %v1343_v47, %s4705_s25  ;;  %1387 = vrot.lane.b32.xlu0 %v5468_v1, %s4705_s25  ;;  %v4644_v1 = vld [vmem:[%s4802_s19 + $0x24] sm:$0xf]  ;;  %v4656_v47 = vld [vmem:[%s4802_s19 + $0x94] sm:$0xf] }
 0x152   : > { %1391 = vrot.lane.b32.xlu2 %v1352_v17, %s4705_s25  ;;  %s4711_s25 = smov 16  }
 0x153   : > { %v1188_v30 = vpop.permute.xlu1 %1187  ;;  %v1186_v42 = vpop.permute.xlu0 %1185 }
 0x154   : > { %1232 = vst.msk [vmem:[#allocation3 + $0x40] sm:$0xf] %vm1215_vm10, %v1188_v30  ;;  %v1263_v31 = vpop.permute.xlu2 %1262 }
 0x155   : > { %1231 = vst.msk [vmem:[#allocation3 + $0x3c] sm:$0xf] %vm1215_vm10, %v1186_v42 }
 0x156   : > { %1317 = vst.msk [vmem:[#allocation3 + $0x18] sm:$0xf] %vm1310_vm11, %v1263_v31 }
 0x159   : > { %1438 = vrot.lane.b32.xlu1 %v4643_v22, %s4706_s26  ;;  %1436 = vrot.lane.b32.xlu0 %v4644_v1, %s4706_s26 }
 0x15a   : > { %1440 = vrot.lane.b32.xlu2 %v4645_v28, %s4706_s26 }
 0x15b   : > { %v1194_v41 = vpop.permute.xlu1 %1193  ;;  %v1192_v39 = vpop.permute.xlu0 %1191 }
 0x15c   : > { %1235 = vst.msk [vmem:[#allocation3 + $0x4c] sm:$0xf] %vm1215_vm10, %v1194_v41  ;;  %v1269_v58 = vpop.permute.xlu2 %1268 }
 0x15d   : > { %1234 = vst.msk [vmem:[#allocation3 + $0x48] sm:$0xf] %vm1215_vm10, %v1192_v39  ;;  %v4562_v39 = vld [vmem:[%s6973_s4 + $0x8] sm:$0x30] }
 0x15e   : > { %1320 = vst.msk [vmem:[#allocation3 + $0x24] sm:$0xf] %vm1310_vm11, %v1269_v58 }
 0x161   : > { %1444 = vrot.lane.b32.xlu1 %v4646_v49, %s4706_s26  ;;  %1442 = vrot.lane.b32.xlu0 %v4647_v53, %s4706_s26  ;;  %v4708_v53 = vmov 65535  }
 0x162   : > { %1446 = vrot.lane.b32.xlu2 %v4648_v54, %s4706_s26 }
 0x163   : > { %v1255_v3 = vpop.permute.xlu1 %1254  ;;  %v1253_v26 = vpop.permute.xlu0 %1252 }
 0x164   : > { %1313 = vst.msk [vmem:[#allocation3 + $0x8] sm:$0xf] %vm1310_vm11, %v1255_v3  ;;  %v1275_v55 = vpop.permute.xlu2 %1274  ;;  %v1734_v3 = vsel %vm1732_vm14, 4294967295, %v4708_v53 }
 0x165   : > { %1312 = vst.msk [vmem:[#allocation3 + $0x4] sm:$0xf] %vm1310_vm11, %v1253_v26  ;;  %v1735_v26 = vsel %vm1733_vm15, %v1734_v3, 0 }
 0x166   : > { %1323 = vst.msk [vmem:[#allocation3 + $0x30] sm:$0xf] %vm1310_vm11, %v1275_v55 }
 0x169   : > { %1450 = vrot.lane.b32.xlu1 %v4649_v15, %s4706_s26  ;;  %1448 = vrot.lane.b32.xlu0 %v4650_v18, %s4706_s26  ;;  %v4561_v15 = vld [vmem:[%s6973_s4] sm:$0xff] }
 0x16a   : > { %1452 = vrot.lane.b32.xlu2 %v4651_v63, %s4706_s26 }
 0x16b   : > { %v1261_v60 = vpop.permute.xlu1 %1260  ;;  %v1259_v0 = vpop.permute.xlu0 %1258 }
 0x16c   : > { %1316 = vst.msk [vmem:[#allocation3 + $0x14] sm:$0xf] %vm1310_vm11, %v1261_v60  ;;  %v1281_v45 = vpop.permute.xlu2 %1280 }
 0x16d   : > { %1315 = vst.msk [vmem:[#allocation3 + $0x10] sm:$0xf] %vm1310_vm11, %v1259_v0 }
 0x16e   : > { %1326 = vst.msk [vmem:[#allocation3 + $0x3c] sm:$0xf] %vm1310_vm11, %v1281_v45 }
 0x171   : > { %1456 = vrot.lane.b32.xlu1 %v4652_v2, %s4706_s26  ;;  %1454 = vrot.lane.b32.xlu0 %v4653_v5, %s4706_s26 }
 0x172   : > { %1458 = vrot.lane.b32.xlu2 %v4654_v9, %s4706_s26 }
 0x173   : > { %v1267_v6 = vpop.permute.xlu1 %1266  ;;  %v1265_v37 = vpop.permute.xlu0 %1264 }
 0x174   : > { %1319 = vst.msk [vmem:[#allocation3 + $0x20] sm:$0xf] %vm1310_vm11, %v1267_v6  ;;  %v1287_v11 = vpop.permute.xlu2 %1286 }
 0x175   : > { %1318 = vst.msk [vmem:[#allocation3 + $0x1c] sm:$0xf] %vm1310_vm11, %v1265_v37 }
 0x176   : > { %1329 = vst.msk [vmem:[#allocation3 + $0x48] sm:$0xf] %vm1310_vm11, %v1287_v11 }
 0x179   : > { %1533 = vrot.lane.b32.xlu1 %v5009_v46, %s4707_s12  ;;  %1531 = vrot.lane.b32.xlu0 %v5013_v14, %s4707_s12  ;;  %v4657_v46 = vld [vmem:[%s4802_s19 + $0x88] sm:$0xf] }
 0x17a   : > { %1460 = vrot.lane.b32.xlu2 %v4655_v16, %s4706_s26 }
 0x17b   : > { %v1273_v57 = vpop.permute.xlu1 %1272  ;;  %v1271_v12 = vpop.permute.xlu0 %1270 }
 0x17c   : > { %1322 = vst.msk [vmem:[#allocation3 + $0x2c] sm:$0xf] %vm1310_vm11, %v1273_v57  ;;  %v1356_v23 = vpop.permute.xlu2 %1355 }
 0x17d   : > { %1321 = vst.msk [vmem:[#allocation3 + $0x28] sm:$0xf] %vm1310_vm11, %v1271_v12 }
 0x17e   : > { %1415 = vst.msk [vmem:[#allocation3 + $0x4] sm:$0xf] %vm1413_vm12, %v1356_v23 }
 0x181   : > { %1464 = vrot.lane.b32.xlu1 %v4656_v47, %s4706_s26  ;;  %1462 = vrot.lane.b32.xlu0 %v4657_v46, %s4706_s26 }
 0x182   : > { %1535 = vrot.lane.b32.xlu2 %v5036_v62, %s4707_s12  ;;  %v4658_v62 = vld [vmem:[%s4802_s19 + $0x98] sm:$0xf] }
 0x183   : > { %v1279_v14 = vpop.permute.xlu1 %1278  ;;  %v1277_v38 = vpop.permute.xlu0 %1276 }
 0x184   : > { %1325 = vst.msk [vmem:[#allocation3 + $0x38] sm:$0xf] %vm1310_vm11, %v1279_v14  ;;  %v1362_v24 = vpop.permute.xlu2 %1361 }
 0x185   : > { %1324 = vst.msk [vmem:[#allocation3 + $0x34] sm:$0xf] %vm1310_vm11, %v1277_v38 }
 0x186   : > { %1418 = vst.msk [vmem:[#allocation3 + $0x10] sm:$0xf] %vm1413_vm12, %v1362_v24 }
 0x189   : > { %1551 = vrot.lane.b32.xlu1 %v5164_v27, %s4707_s12  ;;  %1537 = vrot.lane.b32.xlu0 %v5056_v48, %s4707_s12 }
 0x18a   : > { %1553 = vrot.lane.b32.xlu2 %v5216_v4, %s4707_s12 }
 0x18b   : > { %v1285_v33 = vpop.permute.xlu1 %1284  ;;  %v1283_v17 = vpop.permute.xlu0 %1282 }
 0x18c   : > { %1328 = vst.msk [vmem:[#allocation3 + $0x44] sm:$0xf] %vm1310_vm11, %v1285_v33  ;;  %v1368_v30 = vpop.permute.xlu2 %1367 }
 0x18d   : > { %1327 = vst.msk [vmem:[#allocation3 + $0x40] sm:$0xf] %vm1310_vm11, %v1283_v17 }
 0x18e   : > { %1421 = vst.msk [vmem:[#allocation3 + $0x1c] sm:$0xf] %vm1413_vm12, %v1368_v30 }
 0x191   : > { %1468 = vrot.lane.b32.xlu1 %v5421_v51, %s4706_s26  ;;  %1466 = vrot.lane.b32.xlu0 %v4658_v62, %s4706_s26 }
 0x192   : > { %1539 = vrot.lane.b32.xlu2 %v5032_v61, %s4707_s12 }
 0x193   : > { %v1354_v27 = vpop.permute.xlu1 %1353  ;;  %v1289_v48 = vpop.permute.xlu0 %1288 }
 0x194   : > { %1414 = vst.msk [vmem:[#allocation3] sm:$0xf] %vm1413_vm12, %v1354_v27  ;;  %v1374_v42 = vpop.permute.xlu2 %1373 }
 0x195   : > { %1330 = vst.msk [vmem:[#allocation3 + $0x4c] sm:$0xf] %vm1310_vm11, %v1289_v48 }
 0x196   : > { %1424 = vst.msk [vmem:[#allocation3 + $0x28] sm:$0xf] %vm1413_vm12, %v1374_v42 }
 0x199   : > { %1555 = vrot.lane.b32.xlu1 %v5246_v21, %s4707_s12  ;;  %1541 = vrot.lane.b32.xlu0 %v5101_v59, %s4707_s12 }
 0x19a   : > { %1557 = vrot.lane.b32.xlu2 %v5232_v40, %s4707_s12 }
 0x19b   : > { %v1360_v4 = vpop.permute.xlu1 %1359  ;;  %v1358_v51 = vpop.permute.xlu0 %1357 }
 0x19c   : > { %1417 = vst.msk [vmem:[#allocation3 + $0xc] sm:$0xf] %vm1413_vm12, %v1360_v4  ;;  %v1380_v31 = vpop.permute.xlu2 %1379 }
 0x19d   : > { %1416 = vst.msk [vmem:[#allocation3 + $0x8] sm:$0xf] %vm1413_vm12, %v1358_v51 }
 0x19e   : > { %1427 = vst.msk [vmem:[#allocation3 + $0x34] sm:$0xf] %vm1413_vm12, %v1380_v31 }
 0x1a1   : > { %1543 = vrot.lane.b32.xlu1 %v5114_v25, %s4707_s12  ;;  %1470 = vrot.lane.b32.xlu0 %v5431_v29, %s4706_s26 }
 0x1a2   : > { %1545 = vrot.lane.b32.xlu2 %v5088_v34, %s4707_s12 }
 0x1a3   : > { %v1366_v61 = vpop.permute.xlu1 %1365  ;;  %v1364_v59 = vpop.permute.xlu0 %1363 }
 0x1a4   : > { %1420 = vst.msk [vmem:[#allocation3 + $0x18] sm:$0xf] %vm1413_vm12, %v1366_v61  ;;  %v1386_v21 = vpop.permute.xlu2 %1385 }
 0x1a5   : > { %1419 = vst.msk [vmem:[#allocation3 + $0x14] sm:$0xf] %vm1413_vm12, %v1364_v59 }
 0x1a6   : > { %1430 = vst.msk [vmem:[#allocation3 + $0x40] sm:$0xf] %vm1413_vm12, %v1386_v21 }
 0x1a9   : > { %1561 = vrot.lane.b32.xlu1 %v5295_v35, %s4707_s12  ;;  %1559 = vrot.lane.b32.xlu0 %v5266_v50, %s4707_s12 }
 0x1aa   : > { %1472 = vrot.lane.b32.xlu2 %v5645_v20, %s4706_s26 }
 0x1ab   : > { %v1372_v25 = vpop.permute.xlu1 %1371  ;;  %v1370_v40 = vpop.permute.xlu0 %1369 }
 0x1ac   : > { %1423 = vst.msk [vmem:[#allocation3 + $0x24] sm:$0xf] %vm1413_vm12, %v1372_v25  ;;  %v1392_v29 = vpop.permute.xlu2 %1391 }
 0x1ad   : > { %1422 = vst.msk [vmem:[#allocation3 + $0x20] sm:$0xf] %vm1413_vm12, %v1370_v40 }
 0x1ae   : > { %1433 = vst.msk [vmem:[#allocation3 + $0x4c] sm:$0xf] %vm1413_vm12, %v1392_v29 }
 0x1b1   : > { %1549 = vrot.lane.b32.xlu1 %v5168_v44, %s4707_s12  ;;  %1547 = vrot.lane.b32.xlu0 %v5156_v56, %s4707_s12 }
 0x1b2   : > { %1563 = vrot.lane.b32.xlu2 %v5598_v52, %s4707_s12 }
 0x1b3   : > { %v1378_v34 = vpop.permute.xlu1 %1377  ;;  %v1376_v50 = vpop.permute.xlu0 %1375 }
 0x1b4   : > { %1426 = vst.msk [vmem:[#allocation3 + $0x30] sm:$0xf] %vm1413_vm12, %v1378_v34  ;;  %v1441_v35 = vpop.permute.xlu2 %1440 }
 0x1b5   : > { %1425 = vst.msk [vmem:[#allocation3 + $0x2c] sm:$0xf] %vm1413_vm12, %v1376_v50  ;;  %v1518_v50 = vrot.slane %v1340_v8, 5 }
 0x1b6   : > { %1499 = vst.msk [vmem:[#allocation3 + $0x8] sm:$0xf] %vm1496_vm13, %v1441_v35 }
 0x1b9   : > { %1565 = vrot.lane.b32.xlu0 %v5606_v32, %s4707_s12  ;;  %1474 = vrot.lane.b32.xlu1 %v5655_v7, %s4706_s26  ;;  %v4463_v32 = vld [vmem:[%s6973_s4 + $0x8] sm:$0xf]  ;;  %s4712_s26 = smov 20  }
 0x1ba   : > { %v4464_v49 = vor.u32 %v4562_v39, %v4463_v32  ;;  %v1521_v32 = vrot.slane %v1349_v13, 5  ;;  %v1523_v39 = vrot.slane %v1346_v10, 4  ;;  %v1935_v13 = vld [vmem:[#allocation2 + $0xc] sm:$0x1] }
 0x1bb   : > { %v1384_v44 = vpop.permute.xlu1 %1383  ;;  %v1382_v56 = vpop.permute.xlu0 %1381  ;;  %v1936_v3 = vsel %vm5882_vm9, 0, %v1935_v13 }
 0x1bc   : > { %1429 = vst.msk [vmem:[#allocation3 + $0x3c] sm:$0xf] %vm1413_vm12, %v1384_v44  ;;  %v1447_v22 = vpop.permute.xlu2 %1446  ;;  %v1737_v54 = vand.u32 %v4464_v49, %v1735_v26 }
 0x1bd   : > { %1428 = vst.msk [vmem:[#allocation3 + $0x38] sm:$0xf] %vm1413_vm12, %v1382_v56  ;;  %v1517_v56 = vrot.slane %v1337_v19, 4 }
 0x1be   : > { %1502 = vst.msk [vmem:[#allocation3 + $0x14] sm:$0xf] %vm1496_vm13, %v1447_v22  ;;  %1745 = vmatpush.bf16.msra.mxu0 %v1737_v54  ;;  %4573 = vmatpush.bf16.msra.mxu2 %v1737_v54 }
 0x1bf   : > { %1937 = vst [vmem:[#allocation2 + $0xc] sm:$0x1] %v1936_v3 }
 0x1c2   : > { %1746 = vmatpush.bf16.msra.mxu0 %v4561_v15  ;;  %4574 = vmatpush.bf16.msra.mxu2 %v4561_v15 }
 0x1c3   : > { %v1390_v52 = vpop.permute.xlu1 %1389  ;;  %v1388_v1 = vpop.permute.xlu0 %1387 }
 0x1c4   : > { %1432 = vst.msk [vmem:[#allocation3 + $0x48] sm:$0xf] %vm1413_vm12, %v1390_v52  ;;  %v1453_v41 = vpop.permute.xlu2 %1452  ;;  %v1903_v52 = vld [vmem:[#allocation2] sm:$0x8] }
 0x1c5   : > { %1431 = vst.msk [vmem:[#allocation3 + $0x44] sm:$0xf] %vm1413_vm12, %v1388_v1  ;;  %v1904_v8 = vsel %vm5865_vm7, 0, %v1903_v52  ;;  %v1519_v1 = vor.u32 %v1518_v50, %v1517_v56  ;;  %vm1985_vm12 = vcmask 27648  }
 0x1c6   : > { %1505 = vst.msk [vmem:[#allocation3 + $0x20] sm:$0xf] %vm1496_vm13, %v1453_v41 }
 0x1c7   : > { %1905 = vst [vmem:[#allocation2] sm:$0x8] %v1904_v8  ;;  %v1520_v41 = vrot.slane %v1519_v1, 4 }
 0x1c9   : > { %v1522_v20 = vsel %vm4932_vm2, %v1520_v41, %v1521_v32 }
 0x1ca   : > { %1567 = vrot.lane.b32.xlu2 %v1522_v20, %s4707_s12 }
 0x1cb   : > { %v1439_v28 = vpop.permute.xlu1 %1438  ;;  %v1437_v58 = vpop.permute.xlu0 %1436 }
 0x1cc   : > { %1498 = vst.msk [vmem:[#allocation3 + $0x4] sm:$0xf] %vm1496_vm13, %v1439_v28  ;;  %v1459_v55 = vpop.permute.xlu2 %1458  ;;  %v460_v28 = vld [vmem:[%s4802_s19 + $0xbc] sm:$0xf]  ;;  %s4476_s19 = sadd.s32 4294967295, %s5889_s20  ;;  %s7093_s20 = smov (!%p378_p7, %s5889_s20), 15 }
 0x1cd   : > { %1497 = vst.msk [vmem:[#allocation3] sm:$0xf] %vm1496_vm13, %v1437_v58  ;;  %v1524_v58 = vor.u32 %v1523_v39, %v1521_v32  ;;  %v1527_v49 = vshll.u32 %v460_v28, 16  ;;  %v5895_v10 = vstv %s4476_s19  ;;  %s4716_s19 = smov 124   ;;  %s4397_s21 = sshll.u32 %s7093_s20, 1 }
 0x1ce   : > { %1508 = vst.msk [vmem:[#allocation3 + $0x2c] sm:$0xf] %vm1496_vm13, %v1459_v55  ;;  %v5900_v55 = vld [vmem:[%s6974_s5] ss:$0 sm:$0xff]  ;;  %vm1830_vm3 = vcmp.ge.s32.totalorder %v5895_v10, 0  ;;  %vm1840_vm10 = vcmp.lt.s32.totalorder %v5895_v10, 16 }
 0x1cf   : > { %v1525_v26 = vrot.slane %v1524_v58, 4  ;;  %v1529_v54 = vrot.slane %v1527_v49, 5  ;;  %vm5905_vm11 = vmand %vm1830_vm3, %vm1840_vm10  ;;  %v1953_v58 = vld [vmem:[#allocation2 + $0x6c] sm:$0x1]  ;;  %v1822_v3 = vadd.s32 2, %v5895_v10 }
 0x1d1   : > { %v1530_v7 = vsel %vm4932_vm2, %v1525_v26, %v1529_v54  ;;  %vm1832_vm10 = vcmp.ge.s32.totalorder %v1822_v3, 0 }
 0x1d2   : > { %1569 = vrot.lane.b32.xlu0 %v1530_v7, %s4707_s12  ;;  %v1954_v7 = vsel %vm5882_vm9, 0, %v1953_v58 }
 0x1d3   : > { %v1445_v18 = vpop.permute.xlu1 %1444  ;;  %v1443_v60 = vpop.permute.xlu0 %1442  ;;  %1955 = vst [vmem:[#allocation2 + $0x6c] sm:$0x1] %v1954_v7 }
 0x1d4   : > { %1501 = vst.msk [vmem:[#allocation3 + $0x10] sm:$0xf] %vm1496_vm13, %v1445_v18  ;;  %v1461_v0 = vpop.permute.xlu2 %1460 }
 0x1d5   : > { %1500 = vst.msk [vmem:[#allocation3 + $0xc] sm:$0xf] %vm1496_vm13, %v1443_v60  ;;  %v1906_v60 = vld [vmem:[#allocation2 + $0x10] sm:$0x8] }
 0x1d6   : > { %1509 = vst.msk [vmem:[#allocation3 + $0x30] sm:$0xf] %vm1496_vm13, %v1461_v0 }
 0x1db   : > { %v1451_v63 = vpop.permute.xlu1 %1450  ;;  %v1449_v45 = vpop.permute.xlu0 %1448 }
 0x1dc   : > { %1504 = vst.msk [vmem:[#allocation3 + $0x1c] sm:$0xf] %vm1496_vm13, %v1451_v63  ;;  %v1536_v2 = vpop.permute.xlu2 %1535  ;;  %v1907_v63 = vsel %vm5865_vm7, 0, %v1906_v60 }
 0x1dd   : > { %1503 = vst.msk [vmem:[#allocation3 + $0x18] sm:$0xf] %vm1496_vm13, %v1449_v45 }
 0x1de   : > { %1594 = vst.msk [vmem:[#allocation3 + $0x8] sm:$0xf] %vm1591_vm0, %v1536_v2  ;;  %v1938_v2 = vld [vmem:[#allocation2 + $0x1c] sm:$0x1] }
 0x1df   : > { %1908 = vst [vmem:[#allocation2 + $0x10] sm:$0x8] %v1907_v63 }
 0x1e3   : > { %v1457_v5 = vpop.permute.xlu1 %1456  ;;  %v1455_v6 = vpop.permute.xlu0 %1454 }
 0x1e4   : > { %1507 = vst.msk [vmem:[#allocation3 + $0x28] sm:$0xf] %vm1496_vm13, %v1457_v5  ;;  %v1554_v37 = vpop.permute.xlu2 %1553  ;;  %v1939_v5 = vsel %vm5882_vm9, 0, %v1938_v2 }
 0x1e5   : > { %1506 = vst.msk [vmem:[#allocation3 + $0x24] sm:$0xf] %vm1496_vm13, %v1455_v6 }
 0x1e6   : > { %1603 = vst.msk [vmem:[#allocation3 + $0x2c] sm:$0xf] %vm1591_vm0, %v1554_v37 }
 0x1e7   : > { %1940 = vst [vmem:[#allocation2 + $0x1c] sm:$0x1] %v1939_v5 }
 0x1eb   : > { %v1534_v9 = vpop.permute.xlu1 %1533  ;;  %v1532_v11 = vpop.permute.xlu0 %1531 }
 0x1ec   : > { %1593 = vst.msk [vmem:[#allocation3 + $0x4] sm:$0xf] %vm1591_vm0, %v1534_v9  ;;  %v1540_v57 = vpop.permute.xlu2 %1539 }
 0x1ed   : > { %1592 = vst.msk [vmem:[#allocation3] sm:$0xf] %vm1591_vm0, %v1532_v11 }
 0x1ee   : > { %1596 = vst.msk [vmem:[#allocation3 + $0x10] sm:$0xf] %vm1591_vm0, %v1540_v57  ;;  %v1950_v57 = vld [vmem:[#allocation2 + $0x5c] sm:$0x1] }
 0x1f3   : > { %v1465_v12 = vpop.permute.xlu1 %1464  ;;  %v1463_v16 = vpop.permute.xlu0 %1462 }
 0x1f4   : > { %1511 = vst.msk [vmem:[#allocation3 + $0x38] sm:$0xf] %vm1496_vm13, %v1465_v12  ;;  %v4551_v23 = vld [vmem:[#allocation3] sm:$0xff]  ;;  %v1558_v47 = vpop.permute.xlu2 %1557 }
 0x1f5   : > { %1510 = vst.msk [vmem:[#allocation3 + $0x34] sm:$0xf] %vm1496_vm13, %v1463_v16  ;;  %4465 = vmatmul.msk.bf16.vlgmr.msra.gmra.mxu0 %vm1701_vm1, %v4551_v23  ;;  %v1909_v12 = vld [vmem:[#allocation2 + $0x20] sm:$0x8]  ;;  %v1821_v23 = vadd.s32 1, %v5895_v10 }
 0x1f6   : > { %1605 = vst.msk [vmem:[#allocation3 + $0x34] sm:$0xf] %vm1591_vm0, %v1558_v47  ;;  %v1951_v47 = vsel %vm5882_vm9, 0, %v1950_v57 }
 0x1f7   : > { %1952 = vst [vmem:[#allocation2 + $0x5c] sm:$0x1] %v1951_v47  ;;  %vm1831_vm14 = vcmp.ge.s32.totalorder %v1821_v23, 0  ;;  %vm1841_vm15 = vcmp.lt.s32.totalorder %v1821_v23, 16 }
 0x1f8   : > { %vm5928_vm4 = vmand %vm1831_vm14, %vm1841_vm15 }
 0x1fb   : > { %v1552_v46 = vpop.permute.xlu1 %1551  ;;  %v1538_v14 = vpop.permute.xlu0 %1537 }
 0x1fc   : > { %1602 = vst.msk [vmem:[#allocation3 + $0x28] sm:$0xf] %vm1591_vm0, %v1552_v46  ;;  %v1546_v38 = vpop.permute.xlu2 %1545  ;;  %v1910_v46 = vsel %vm5865_vm7, 0, %v1909_v12 }
 0x1fd   : > { %1595 = vst.msk [vmem:[#allocation3 + $0xc] sm:$0xf] %vm1591_vm0, %v1538_v14  ;;  %v2006_v14 = vld [vmem:[#allocation2] sm:$0x8] }
 0x1fe   : > { %1599 = vst.msk [vmem:[#allocation3 + $0x1c] sm:$0xf] %vm1591_vm0, %v1546_v38 }
 0x1ff   : > { %1911 = vst [vmem:[#allocation2 + $0x20] sm:$0x8] %v1910_v46 }
 0x203   : > { %v1469_v24 = vpop.permute.xlu1 %1468  ;;  %v1467_v33 = vpop.permute.xlu0 %1466  ;;  %v4556_v17 = vld [vmem:[#allocation3 + $0x28] sm:$0xff] }
 0x204   : > { %1513 = vst.msk [vmem:[#allocation3 + $0x40] sm:$0xf] %vm1496_vm13, %v1469_v24  ;;  %v4552_v30 = vld [vmem:[#allocation3 + $0x8] sm:$0xff]  ;;  %4470 = vmatmul.msk.bf16.vlgmr.msra.gmra.mxu2 %vm1701_vm1, %v4556_v17  ;;  %v1473_v31 = vpop.permute.xlu2 %1472  ;;  %v2031_v17 = vshrl.u32 %v2006_v14, 16 }
 0x205   : > { %1512 = vst.msk [vmem:[#allocation3 + $0x3c] sm:$0xf] %vm1496_vm13, %v1467_v33  ;;  %4466 = vmatmul.msk.bf16.gmra.mxu0 %vm1701_vm1, %v4552_v30 }
 0x206   : > { %1515 = vst.msk [vmem:[#allocation3 + $0x48] sm:$0xf] %vm1496_vm13, %v1473_v31 }
 0x20b   : > { %v1556_v62 = vpop.permute.xlu1 %1555  ;;  %v1542_v27 = vpop.permute.xlu0 %1541 }
 0x20c   : > { %1604 = vst.msk [vmem:[#allocation3 + $0x30] sm:$0xf] %vm1591_vm0, %v1556_v62  ;;  %v1564_v44 = vpop.permute.xlu2 %1563  ;;  %v1825_v62 = vadd.s32 5, %v5895_v10 }
 0x20d   : > { %1597 = vst.msk [vmem:[#allocation3 + $0x14] sm:$0xf] %vm1591_vm0, %v1542_v27 }
 0x20e   : > { %1608 = vst.msk [vmem:[#allocation3 + $0x40] sm:$0xf] %vm1591_vm0, %v1564_v44  ;;  %vm1835_vm6 = vcmp.ge.s32.totalorder %v1825_v62, 0  ;;  %vm1845_vm8 = vcmp.lt.s32.totalorder %v1825_v62, 16  ;;  %v1827_v44 = vadd.s32 7, %v5895_v10 }
 0x20f   : > { %vm5937_vm3 = vmand %vm1835_vm6, %vm1845_vm8 }
 0x213   : > { %v1544_v48 = vpop.permute.xlu1 %1543  ;;  %v1471_v42 = vpop.permute.xlu0 %1470  ;;  %v4557_v4 = vld [vmem:[#allocation3 + $0x30] sm:$0xff] }
 0x214   : > { %1598 = vst.msk [vmem:[#allocation3 + $0x18] sm:$0xf] %vm1591_vm0, %v1544_v48  ;;  %v4553_v51 = vld [vmem:[#allocation3 + $0x10] sm:$0xff]  ;;  %4471 = vmatmul.msk.bf16.gmra.mxu2 %vm1701_vm1, %v4557_v4 }
 0x215   : > { %1514 = vst.msk [vmem:[#allocation3 + $0x44] sm:$0xf] %vm1496_vm13, %v1471_v42  ;;  %4467 = vmatmul.msk.bf16.gmra.mxu0 %vm1701_vm1, %v4553_v51 }
 0x21b   : > { %v1562_v61 = vpop.permute.xlu1 %1561  ;;  %v1560_v59 = vpop.permute.xlu0 %1559  ;;  %v4554_v21 = vld [vmem:[#allocation3 + $0x18] sm:$0xff] }
 0x21c   : > { %1607 = vst.msk [vmem:[#allocation3 + $0x3c] sm:$0xf] %vm1591_vm0, %v1562_v61  ;;  %v1941_v61 = vld [vmem:[#allocation2 + $0x2c] sm:$0x1] }
 0x21d   : > { %1606 = vst.msk [vmem:[#allocation3 + $0x38] sm:$0xf] %vm1591_vm0, %v1560_v59  ;;  %v4477_v59 = vrot.slane %v2031_v17, 11 }
 0x223   : > { %v1550_v25 = vpop.permute.xlu1 %1549  ;;  %v1548_v40 = vpop.permute.xlu0 %1547 }
 0x224   : > { %v4558_v29 = vld [vmem:[#allocation3 + $0x38] sm:$0xff]  ;;  %1601 = vst.msk [vmem:[#allocation3 + $0x24] sm:$0xf] %vm1591_vm0, %v1550_v25  ;;  %v1942_v25 = vsel %vm5882_vm9, 0, %v1941_v61 }
 0x225   : > { %1600 = vst.msk [vmem:[#allocation3 + $0x20] sm:$0xf] %vm1591_vm0, %v1548_v40  ;;  %4468 = vmatmul.msk.bf16.gmra.mxu0 %vm1701_vm1, %v4554_v21  ;;  %4472 = vmatmul.msk.bf16.gmra.mxu2 %vm1701_vm1, %v4558_v29 }
 0x226   : > { %1943 = vst [vmem:[#allocation2 + $0x2c] sm:$0x1] %v1942_v25 }
 0x22b   : > { %v1566_v35 = vpop.permute.xlu0 %1565 }
 0x22c   : > { %v4555_v34 = vld [vmem:[#allocation3 + $0x20] sm:$0xff]  ;;  %1609 = vst.msk [vmem:[#allocation3 + $0x44] sm:$0xf] %vm1591_vm0, %v1566_v35 }
 0x233   : > { %v4559_v19 = vld [vmem:[#allocation3 + $0x40] sm:$0xff] }
 0x235   : > { %4469 = vmatmul.msk.bf16.gmra.mxu0 %vm1701_vm1, %v4555_v34  ;;  %4473 = vmatmul.msk.bf16.gmra.mxu2 %vm1701_vm1, %v4559_v19 }
 0x272   : > { %v1748_v15 = vpop.f32.mrf.mxu0 }
 0x273   : > { %v1749_v18 = vadd.f32 %v5900_v55, %v1748_v15 }
 0x275   : > { %v1798_v45 = vmax.f32 %v1749_v18, 0.0 }
 0x277   : > { %v1880_v6 = vsel %vm5905_vm11, %v1798_v45, 0.0 }
 0x278   : > { %v1965_v37 = vpack.c.bf16 %v1880_v6, %v1880_v6  ;;  %v1826_v6 = vadd.s32 6, %v5895_v10 }
 0x27a   : > { %1986 = vst.msk [vmem:[#allocation2 + $0x4] sm:$0xf] %vm1985_vm12, %v1965_v37  ;;  %v1750_v9 = vpop.f32.mrf.mxu0  ;;  %vm1836_vm15 = vcmp.ge.s32.totalorder %v1826_v6, 0 }
 0x27b   : > { %v1751_v11 = vadd.f32 %v5900_v55, %v1750_v9 }
 0x27d   : > { %v1799_v16 = vmax.f32 %v1751_v11, 0.0 }
 0x27f   : > { %v1881_v38 = vsel %vm5905_vm11, %v1799_v16, 0.0  ;;  %vm1842_vm11 = vcmp.lt.s32.totalorder %v1822_v3, 16  ;;  %v1944_v16 = vld [vmem:[#allocation2 + $0x3c] sm:$0x1] }
 0x280   : > { %v1966_v24 = vpack.c.bf16 %v1881_v38, %v1881_v38  ;;  %vm5965_vm14 = vmand %vm1832_vm10, %vm1842_vm11  ;;  %v1945_v23 = vsel %vm5882_vm9, 0, %v1944_v16  ;;  %vm1837_vm11 = vcmp.ge.s32.totalorder %v1827_v44, 0  ;;  %v1824_v16 = vadd.s32 4, %v5895_v10 }
 0x281   : > { %v2238_v33 = vld [vmem:[#allocation2 + $0x4] sm:$0xf]  ;;  %1946 = vst [vmem:[#allocation2 + $0x3c] sm:$0x1] %v1945_v23 }
 0x282   : > { %1987 = vst.msk [vmem:[#allocation2 + $0x8] sm:$0xf] %vm1985_vm12, %v1966_v24  ;;  %v1753_v30 = vpop.f32.mrf.mxu0  ;;  %2270 = vrot.lane.b32.xlu1 %v2238_v33, %s4709_s27  ;;  %v2007_v27 = vld [vmem:[#allocation2 + $0x4] sm:$0xf] }
 0x283   : > { %v1754_v48 = vadd.f32 %v5900_v55, %v1753_v30  ;;  %v2036_v42 = vshrl.u32 %v2007_v27, 16  ;;  %v2039_v21 = vshll.u32 %v2007_v27, 16 }
 0x285   : > { %v1800_v51 = vmax.f32 %v1754_v48, 0.0  ;;  %v2038_v31 = vrot.slane %v2036_v42, 7  ;;  %v1956_v48 = vld [vmem:[#allocation2 + $0x7c] sm:$0x1] }
 0x287   : > { %v1882_v40 = vsel %vm5928_vm4, %v1800_v51, 0.0  ;;  %v1773_v29 = vpop.f32.mrf.mxu2  ;;  %v2041_v34 = vor.u32 %v2039_v21, %v2038_v31  ;;  %v2043_v26 = vrot.slane %v2038_v31, 4  ;;  %v1823_v51 = vadd.s32 3, %v5895_v10 }
 0x288   : > { %v1967_v50 = vpack.c.bf16 %v1882_v40, %v1882_v40  ;;  %v1774_v35 = vadd.f32 %v5900_v55, %v1773_v29  ;;  %v1957_v31 = vsel %vm5882_vm9, 0, %v1956_v48  ;;  %v2012_v29 = vld [vmem:[#allocation2 + $0x20] sm:$0x8] }
 0x289   : > { %v2239_v56 = vld [vmem:[#allocation2 + $0x8] sm:$0xf]  ;;  %v2042_v8 = vsel %vm5046_vm5, %v4477_v59, %v2041_v34  ;;  %1958 = vst [vmem:[#allocation2 + $0x7c] sm:$0x1] %v1957_v31  ;;  %vm1833_vm8 = vcmp.ge.s32.totalorder %v1823_v51, 0 }
 0x28a   : > { %v2008_v52 = vld [vmem:[#allocation2 + $0x8] sm:$0xf]  ;;  %1988 = vst.msk [vmem:[#allocation2 + $0x14] sm:$0xf] %vm1985_vm12, %v1967_v50  ;;  %v1808_v1 = vmax.f32 %v1774_v35, 0.0  ;;  %v1755_v41 = vpop.f32.mrf.mxu0  ;;  %2272 = vrot.lane.b32.xlu2 %v2239_v56, %s4709_s27 }
 0x28b   : > { %v2045_v32 = vshrl.u32 %v2008_v52, 16  ;;  %v1756_v20 = vadd.f32 %v5900_v55, %v1755_v41  ;;  %2222 = vst.msk [vmem:[#allocation3] sm:$0xf] %vm1985_vm12, %v2042_v8  ;;  %v2048_v28 = vshll.u32 %v2008_v52, 16  ;;  %v2009_v52 = vld [vmem:[#allocation2 + $0x10] sm:$0x8] }
 0x28c   : > { %v1890_v19 = vsel %vm5937_vm3, %v1808_v1, 0.0  ;;  %v2075_v41 = vshrl.u32 %v2012_v29, 16  ;;  %v2340_v1 = vld [vmem:[#allocation2 + $0x1c] sm:$0x1] }
 0x28d   : > { %v2047_v39 = vrot.slane %v2045_v32, 7  ;;  %v1975_v49 = vpack.c.bf16 %v1890_v19, %v1890_v19  ;;  %v1801_v13 = vmax.f32 %v1756_v20, 0.0 }
 0x28e   : > { %v4479_v7 = vrot.slane %v2075_v41, 11 }
 0x28f   : > { %v2050_v54 = vor.u32 %v2048_v28, %v2047_v39  ;;  %1996 = vst.msk [vmem:[#allocation2 + $0x54] sm:$0xf] %vm1985_vm12, %v1975_v49  ;;  %v1883_v15 = vsel %vm5928_vm4, %v1801_v13, 0.0  ;;  %v1775_v18 = vpop.f32.mrf.mxu2  ;;  %vm1846_vm4 = vcmp.lt.s32.totalorder %v1826_v6, 16  ;;  %v1947_v28 = vld [vmem:[#allocation2 + $0x4c] sm:$0x1] }
 0x290   : > { %v1968_v60 = vpack.c.bf16 %v1883_v15, %v1883_v15  ;;  %v1776_v0 = vadd.f32 %v5900_v55, %v1775_v18  ;;  %vm5975_vm6 = vmand %vm1836_vm15, %vm1846_vm4  ;;  %v1948_v58 = vsel %vm5882_vm9, 0, %v1947_v28  ;;  %v2053_v49 = vshrl.u32 %v2009_v52, 16  ;;  %v1568_v28 = vpop.permute.xlu2 %1567 }
 0x291   : > { %v2051_v63 = vsel %vm5046_vm5, %v2043_v26, %v2050_v54  ;;  %v2240_v45 = vld [vmem:[#allocation2 + $0x14] sm:$0xf]  ;;  %1949 = vst [vmem:[#allocation2 + $0x4c] sm:$0x1] %v1948_v58  ;;  %vm1834_vm4 = vcmp.ge.s32.totalorder %v1824_v16, 0 }
 0x292   : > { %2223 = vst.msk [vmem:[#allocation3 + $0x4] sm:$0xf] %vm1985_vm12, %v2051_v63  ;;  %v1809_v2 = vmax.f32 %v1776_v0, 0.0  ;;  %v1758_v5 = vpop.f32.mrf.mxu0  ;;  %2274 = vrot.lane.b32.xlu0 %v2240_v45, %s4709_s27  ;;  %v2010_v20 = vld [vmem:[#allocation2 + $0x14] sm:$0xf]  ;;  %v4478_v11 = vrot.slane %v2053_v49, 11 }
 0x293   : > { %1989 = vst.msk [vmem:[#allocation2 + $0x18] sm:$0xf] %vm1985_vm12, %v1968_v60  ;;  %v1759_v37 = vadd.f32 %v5900_v55, %v1758_v5  ;;  %v2058_v3 = vshrl.u32 %v2010_v20, 16  ;;  %v2061_v23 = vshll.u32 %v2010_v20, 16  ;;  %v2343_v58 = vld [vmem:[#allocation2 + $0x2c] sm:$0x1] }
 0x294   : > { %v1891_v9 = vsel %vm5937_vm3, %v1809_v2, 0.0  ;;  %vm1843_vm3 = vcmp.lt.s32.totalorder %v1823_v51, 16  ;;  %v2336_v51 = vld [vmem:[#allocation2 + $0x8] sm:$0xf]  ;;  %v2352_v49 = vld [vmem:[#allocation2 + $0x5c] sm:$0x1] }
 0x295   : > { %v1976_v57 = vpack.c.bf16 %v1891_v9, %v1891_v9  ;;  %v1802_v12 = vmax.f32 %v1759_v37, 0.0  ;;  %vm5997_vm10 = vmand %vm1833_vm8, %vm1843_vm3  ;;  %v6017_v37 = vrot.slane %v2058_v3, 7  ;;  %v2403_v3 = vshll.u32 %v2340_v1, 16  ;;  %1610 = vst.msk [vmem:[#allocation3 + $0x48] sm:$0xf] %vm1591_vm0, %v1568_v28 }
 0x297   : > { %1997 = vst.msk [vmem:[#allocation2 + $0x58] sm:$0xf] %vm1985_vm12, %v1976_v57  ;;  %v1884_v47 = vsel %vm5965_vm14, %v1802_v12, 0.0  ;;  %v1778_v46 = vpop.f32.mrf.mxu2 }
 0x298   : > { %v1969_v14 = vpack.c.bf16 %v1884_v47, %v1884_v47  ;;  %v1779_v38 = vadd.f32 %v5900_v55, %v1778_v46 }
 0x29a   : > { %v2241_v33 = vld [vmem:[#allocation2 + $0x18] sm:$0xf]  ;;  %1990 = vst.msk [vmem:[#allocation2 + $0x24] sm:$0xf] %vm1985_vm12, %v1969_v14  ;;  %v1810_v17 = vmax.f32 %v1779_v38, 0.0  ;;  %v1760_v30 = vpop.f32.mrf.mxu0  ;;  %v2063_v14 = vor.u32 %v2061_v23, %v6017_v37 }
 0x29b   : > { %2276 = vrot.lane.b32.xlu1 %v2241_v33, %s4709_s27  ;;  %v1761_v62 = vadd.f32 %v5900_v55, %v1760_v30 }
 0x29c   : > { %v1892_v27 = vsel %vm5975_vm6, %v1810_v17, 0.0  ;;  %v2064_v30 = vsel %vm5046_vm5, %v4478_v11, %v2063_v14  ;;  %v2427_v11 = vshll.u32 %v2343_v58, 16  ;;  %v6059_v14 = vrot.slane %v2403_v3, 5 }
 0x29d   : > { %v1977_v42 = vpack.c.bf16 %v1892_v27, %v1892_v27  ;;  %v1803_v4 = vmax.f32 %v1761_v62, 0.0  ;;  %2224 = vst.msk [vmem:[#allocation3 + $0x8] sm:$0xf] %vm1985_vm12, %v2064_v30 }
 0x29e   : > { %v6087_v3 = vld [vmem:[#allocation2 + $0x58] sm:$0xf] }
 0x29f   : > { %1998 = vst.msk [vmem:[#allocation2 + $0x64] sm:$0xf] %vm1985_vm12, %v1977_v42  ;;  %v1885_v61 = vsel %vm5965_vm14, %v1803_v4, 0.0  ;;  %v1780_v59 = vpop.f32.mrf.mxu2  ;;  %vm1847_vm14 = vcmp.lt.s32.totalorder %v1827_v44, 16  ;;  %v2335_v42 = vld [vmem:[#allocation2 + $0x4] sm:$0xf] }
 0x2a0   : > { %v1970_v21 = vpack.c.bf16 %v1885_v61, %v1885_v61  ;;  %v1781_v25 = vadd.f32 %v5900_v55, %v1780_v59  ;;  %vm6010_vm15 = vmand %vm1837_vm11, %vm1847_vm14  ;;  %v2337_v59 = vld [vmem:[#allocation2 + $0xc] sm:$0x1]  ;;  %v2363_v29 = vshll.u32 %v2335_v42, 16  ;;  %vm2865_vm11 = vcmask 126048  }
 0x2a1   : > { %v2242_v40 = vld [vmem:[#allocation2 + $0x24] sm:$0xf]  ;;  %v2379_v44 = vshll.u32 %v2337_v59, 16  ;;  %v2355_v4 = vld [vmem:[#allocation2 + $0x6c] sm:$0x1]  ;;  %vm2962_vm14 = vcmask 158848  }
 0x2a2   : > { %1991 = vst.msk [vmem:[#allocation2 + $0x28] sm:$0xf] %vm1985_vm12, %v1970_v21  ;;  %v1811_v34 = vmax.f32 %v1781_v25, 0.0  ;;  %v1763_v50 = vpop.f32.mrf.mxu0  ;;  %2278 = vrot.lane.b32.xlu2 %v2242_v40, %s4709_s27  ;;  %v2013_v56 = vld [vmem:[#allocation2 + $0x24] sm:$0xf]  ;;  %v2360_v25 = vshrl.u32 %v2335_v42, 16 }
 0x2a3   : > { %v1764_v35 = vadd.f32 %v5900_v55, %v1763_v50  ;;  %v2080_v32 = vshrl.u32 %v2013_v56, 16  ;;  %v2083_v18 = vshll.u32 %v2013_v56, 16  ;;  %v2373_v50 = vshrl.u32 %v2336_v51, 16 }
 0x2a4   : > { %v1893_v8 = vsel %vm5975_vm6, %v1811_v34, 0.0  ;;  %vm1844_vm6 = vcmp.lt.s32.totalorder %v1824_v16, 16  ;;  %v2369_v34 = vshll.u32 %v2336_v51, 16  ;;  %v6067_v42 = vrot.slane %v2427_v11, 5 }
 0x2a5   : > { %v1978_v19 = vpack.c.bf16 %v1893_v8, %v1893_v8  ;;  %v1804_v39 = vmax.f32 %v1764_v35, 0.0  ;;  %v6006_v15 = vrot.slane %v2080_v32, 7  ;;  %vm6036_vm8 = vmand %vm1834_vm4, %vm1844_vm6  ;;  %v2362_v8 = vrot.slane %v2360_v25, 4 }
 0x2a6   : > { %v2365_v32 = vrot.slane %v2363_v29, 5  ;;  %v6048_v20 = vrot.slane %v2369_v34, 5  ;;  %v2065_v29 = vrot.slane %v6017_v37, 4 }
 0x2a7   : > { %1999 = vst.msk [vmem:[#allocation2 + $0x68] sm:$0xf] %vm1985_vm12, %v1978_v19  ;;  %v1886_v13 = vsel %vm5997_vm10, %v1804_v39, 0.0  ;;  %v2085_v2 = vor.u32 %v2083_v18, %v6006_v15  ;;  %v2375_v19 = vrot.slane %v2373_v50, 4  ;;  %v6050_v39 = vrot.slane %v2379_v44, 5 }
 0x2a8   : > { %v1971_v26 = vpack.c.bf16 %v1886_v13, %v1886_v13  ;;  %v1783_v54 = vpop.f32.mrf.mxu2  ;;  %v2011_v18 = vld [vmem:[#allocation2 + $0x18] sm:$0xf]  ;;  %v6078_v44 = vld [vmem:[#allocation2 + $0x14] sm:$0xf] }
 0x2a9   : > { %v1784_v60 = vadd.f32 %v5900_v55, %v1783_v54  ;;  %v2243_v0 = vld [vmem:[#allocation2 + $0x28] sm:$0xf]  ;;  %v2086_v9 = vsel %vm5046_vm5, %v4479_v7, %v2085_v2  ;;  %v2339_v54 = vld [vmem:[#allocation2 + $0x18] sm:$0xf]  ;;  %v2350_v7 = vld [vmem:[#allocation2 + $0x54] sm:$0xf]  ;;  %v2376_v63 = vor.u32 %v2375_v19, %v6048_v20 }
 0x2aa   : > { %1992 = vst.msk [vmem:[#allocation2 + $0x34] sm:$0xf] %vm1985_vm12, %v1971_v26  ;;  %v1765_v45 = vpop.f32.mrf.mxu0  ;;  %2280 = vrot.lane.b32.xlu0 %v2243_v0, %s4709_s27  ;;  %v2338_v26 = vld [vmem:[#allocation2 + $0x14] sm:$0xf]  ;;  %v2366_v0 = vor.u32 %v2365_v32, %v2362_v8  ;;  %v2480_v16 = vshrl.u32 %v2350_v7, 16  ;;  %v2483_v23 = vshll.u32 %v2350_v7, 16 }
 0x2ab   : > { %v1812_v5 = vmax.f32 %v1784_v60, 0.0  ;;  %v1766_v6 = vadd.f32 %v5900_v55, %v1765_v45  ;;  %2226 = vst.msk [vmem:[#allocation3 + $0x10] sm:$0xf] %vm1985_vm12, %v2086_v9  ;;  %v2499_v45 = vshll.u32 %v2352_v49, 16  ;;  %v2387_v9 = vshll.u32 %v2338_v26, 16 }
 0x2ac   : > { %v2070_v51 = vshll.u32 %v2011_v18, 16  ;;  %v2485_v59 = vrot.slane %v2483_v23, 5  ;;  %v2523_v8 = vshll.u32 %v2355_v4, 16  ;;  %v2342_v49 = vld [vmem:[#allocation2 + $0x28] sm:$0xf] }
 0x2ad   : > { %v1894_v57 = vsel %vm6010_vm15, %v1812_v5, 0.0  ;;  %v1805_v12 = vmax.f32 %v1766_v6, 0.0  ;;  %v2248_v5 = vld [vmem:[#allocation2 + $0x54] sm:$0xf]  ;;  %v2384_v6 = vshrl.u32 %v2338_v26, 16  ;;  %v2421_v11 = vshrl.u32 %v2342_v49, 16 }
 0x2ae   : > { %v1979_v47 = vpack.c.bf16 %v1894_v57, %v1894_v57  ;;  %v2251_v37 = vld [vmem:[#allocation2 + $0x68] sm:$0xf] }
 0x2af   : > { %v1887_v46 = vsel %vm5997_vm10, %v1805_v12, 0.0  ;;  %v2393_v12 = vshll.u32 %v2339_v54, 16 }
 0x2b0   : > { %2000 = vst.msk [vmem:[#allocation2 + $0x74] sm:$0xf] %vm1985_vm12, %v1979_v47  ;;  %v1972_v38 = vpack.c.bf16 %v1887_v46, %v1887_v46  ;;  %v1785_v24 = vpop.f32.mrf.mxu2  ;;  %v2067_v47 = vshrl.u32 %v2011_v18, 16  ;;  %v2397_v46 = vshrl.u32 %v2339_v54, 16  ;;  %v1475_v18 = vpop.permute.xlu1 %1474 }
 0x2b1   : > { %v1786_v33 = vadd.f32 %v5900_v55, %v1785_v24  ;;  %v2244_v17 = vld [vmem:[#allocation2 + $0x34] sm:$0xf]  ;;  %v6061_v24 = vrot.slane %v2366_v0, 4  ;;  %1516 = vst.msk [vmem:[#allocation3 + $0x4c] sm:$0xf] %vm1496_vm13, %v1475_v18  ;;  %vm2318_vm13 = vcmask 60448  }
 0x2b2   : > { %1993 = vst.msk [vmem:[#allocation2 + $0x38] sm:$0xf] %vm1985_vm12, %v1972_v38  ;;  %v1768_v62 = vpop.f32.mrf.mxu0  ;;  %2282 = vrot.lane.b32.xlu1 %v2244_v17, %s4709_s27  ;;  %v1918_v38 = vld [vmem:[#allocation2 + $0x50] sm:$0x8]  ;;  %v6065_v17 = vrot.slane %v2499_v45, 5  ;;  %v2069_v30 = vrot.slane %v2067_v47, 7 }
 0x2b3   : > { %v1813_v27 = vmax.f32 %v1786_v33, 0.0  ;;  %v1769_v48 = vadd.f32 %v5900_v55, %v1768_v62  ;;  %v6063_v33 = vrot.slane %v2376_v63, 4  ;;  %v1912_v62 = vld [vmem:[#allocation2 + $0x30] sm:$0x8]  ;;  %v6073_v25 = vld [vmem:[#allocation2 + $0x34] sm:$0xf] }
 0x2b4   : > { %v2072_v34 = vor.u32 %v2070_v51, %v2069_v30  ;;  %v1913_v50 = vsel %vm5865_vm7, 0, %v1912_v62  ;;  %v2102_v19 = vshrl.u32 %v6073_v25, 16  ;;  %v6137_v18 = vld [vmem:[#allocation2 + $0x64] sm:$0xf] }
 0x2b5   : > { %v1895_v31 = vsel %vm6010_vm15, %v1813_v27, 0.0  ;;  %v1806_v61 = vmax.f32 %v1769_v48, 0.0  ;;  %v2386_v27 = vrot.slane %v2384_v6, 4  ;;  %v2389_v48 = vrot.slane %v2387_v9, 5  ;;  %1914 = vst [vmem:[#allocation2 + $0x30] sm:$0x8] %v1913_v50 }
 0x2b6   : > { %v1980_v21 = vpack.c.bf16 %v1895_v31, %v1895_v31  ;;  %v6069_v31 = vrot.slane %v2393_v12, 5  ;;  %v2073_v1 = vsel %vm5046_vm5, %v2065_v29, %v2072_v34  ;;  %v6093_v0 = vrot.slane %v2102_v19, 7  ;;  %v2344_v6 = vld [vmem:[#allocation2 + $0x34] sm:$0xf]  ;;  %v1924_v19 = vld [vmem:[#allocation2 + $0x70] sm:$0x8] }
 0x2b7   : > { %v1888_v40 = vsel %vm6036_vm8, %v1806_v61, 0.0  ;;  %v2482_v61 = vrot.slane %v2480_v16, 4  ;;  %2225 = vst.msk [vmem:[#allocation3 + $0xc] sm:$0xf] %vm1985_vm12, %v2073_v1  ;;  %v2417_v9 = vshll.u32 %v2342_v49, 16  ;;  %v2432_v4 = vshrl.u32 %v2344_v6, 16 }
 0x2b8   : > { %2001 = vst.msk [vmem:[#allocation2 + $0x78] sm:$0xf] %vm1985_vm12, %v1980_v21  ;;  %v1973_v35 = vpack.c.bf16 %v1888_v40, %v1888_v40  ;;  %v1919_v21 = vsel %vm5865_vm7, 0, %v1918_v38  ;;  %v2399_v40 = vrot.slane %v2397_v46, 4  ;;  %v2489_v46 = vshll.u32 %v6087_v3, 16 }
 0x2b9   : > { %v2245_v56 = vld [vmem:[#allocation2 + $0x38] sm:$0xf]  ;;  %1920 = vst [vmem:[#allocation2 + $0x50] sm:$0x8] %v1919_v21  ;;  %v2486_v26 = vor.u32 %v2485_v59, %v2482_v61  ;;  %v2109_v62 = vrot.slane %v6093_v0, 4  ;;  %v6116_v29 = vrot.slane %v2417_v9, 5 }
 0x2ba   : > { %1994 = vst.msk [vmem:[#allocation2 + $0x44] sm:$0xf] %vm1985_vm12, %v1973_v35  ;;  %v1770_v52 = vpop.f32.mrf.mxu0  ;;  %2284 = vrot.lane.b32.xlu2 %v2245_v56, %s4709_s27  ;;  %v2341_v35 = vld [vmem:[#allocation2 + $0x24] sm:$0xf]  ;;  %v2249_v56 = vld [vmem:[#allocation2 + $0x58] sm:$0xf]  ;;  %v2400_v58 = vor.u32 %v2399_v40, %v6069_v31 }
 0x2bb   : > { %v1771_v41 = vadd.f32 %v5900_v55, %v1770_v52  ;;  %v2390_v52 = vor.u32 %v2389_v48, %v2386_v27  ;;  %v2017_v32 = vld [vmem:[#allocation2 + $0x38] sm:$0xf]  ;;  %v2411_v7 = vshll.u32 %v2341_v35, 16  ;;  %v6104_v47 = vrot.slane %v2486_v26, 4  ;;  %v2022_v59 = vld [vmem:[#allocation2 + $0x54] sm:$0xf] }
 0x2bc   : > { %v2111_v63 = vshrl.u32 %v2017_v32, 16  ;;  %v2114_v12 = vshll.u32 %v2017_v32, 16  ;;  %v2401_v16 = vrot.slane %v2400_v58, 4  ;;  %v2372_v48 = vsel %vm4932_vm2, %v6061_v24, %v6048_v20  ;;  %v2250_v21 = vld [vmem:[#allocation2 + $0x64] sm:$0xf] }
 0x2bd   : > { %v1807_v13 = vmax.f32 %v1771_v41, 0.0  ;;  %v1915_v41 = vld [vmem:[#allocation2 + $0x40] sm:$0x8]  ;;  %v6095_v45 = vrot.slane %v2390_v52, 4  ;;  %v6107_v38 = vrot.slane %v2411_v7, 5  ;;  %v2435_v40 = vshll.u32 %v2344_v6, 16 }
 0x2be   : > { %v1916_v54 = vsel %vm5865_vm7, 0, %v1915_v41  ;;  %v6118_v34 = vrot.slane %v2421_v11, 4  ;;  %v2252_v20 = vld [vmem:[#allocation2 + $0x74] sm:$0xf]  ;;  %v2345_v24 = vld [vmem:[#allocation2 + $0x38] sm:$0xf]  ;;  %v2382_v26 = vsel %vm4932_vm2, %v6063_v33, %v6050_v39 }
 0x2bf   : > { %v1889_v60 = vsel %vm6036_vm8, %v1807_v13, 0.0  ;;  %v2408_v13 = vshrl.u32 %v2341_v35, 16  ;;  %1917 = vst [vmem:[#allocation2 + $0x40] sm:$0x8] %v1916_v54  ;;  %v2014_v52 = vld [vmem:[#allocation2 + $0x28] sm:$0xf] }
 0x2c0   : > { %v1974_v2 = vpack.c.bf16 %v1889_v60, %v1889_v60  ;;  %v2647_v60 = vshrl.u32 %v6078_v44, 16  ;;  %v2021_v61 = vld [vmem:[#allocation2 + $0x50] sm:$0x8]  ;;  %v2434_v1 = vrot.slane %v2432_v4, 4  ;;  %v2149_v32 = vshll.u32 %v2022_v59, 16 }
 0x2c1   : > { %v2246_v57 = vld [vmem:[#allocation2 + $0x44] sm:$0xf]  ;;  %v6102_v23 = vrot.slane %v2408_v13, 4  ;;  %v2141_v35 = vshrl.u32 %v2021_v61, 16  ;;  %v2406_v13 = vsel %vm4932_vm2, %v2401_v16, %v6059_v14  ;;  %v2089_v54 = vshrl.u32 %v2014_v52, 16 }
 0x2c2   : > { %1995 = vst.msk [vmem:[#allocation2 + $0x48] sm:$0xf] %vm1985_vm12, %v1974_v2  ;;  %2290 = vrot.lane.b32.xlu2 %v2248_v5, %s4709_s27  ;;  %2286 = vrot.lane.b32.xlu0 %v2246_v57, %s4709_s27  ;;  %v6098_v2 = vld [vmem:[#allocation2 + $0x64] sm:$0xf]  ;;  %v6100_v5 = vrot.slane %v2523_v8, 5  ;;  %v2113_v57 = vrot.slane %v2111_v63, 7  ;;  %v2424_v39 = vor.u32 %v6118_v34, %v6116_v29 }
 0x2c3   : > { %v2504_v30 = vshrl.u32 %v6098_v2, 16  ;;  %v2507_v51 = vshll.u32 %v6098_v2, 16  ;;  %v1921_v8 = vld [vmem:[#allocation2 + $0x60] sm:$0x8]  ;;  %v4482_v58 = vrot.slane %v2141_v35, 11  ;;  %v1925_v14 = vsel %vm5865_vm7, 0, %v1924_v19 }
 0x2c4   : > { %v2116_v27 = vor.u32 %v2114_v12, %v2113_v57  ;;  %v1922_v7 = vsel %vm5865_vm7, 0, %v1921_v8  ;;  %v2026_v63 = vld [vmem:[#allocation2 + $0x68] sm:$0xf]  ;;  %v2414_v57 = vor.u32 %v6107_v38, %v6102_v23  ;;  %v2091_v33 = vrot.slane %v2089_v54, 7  ;;  %1926 = vst [vmem:[#allocation2 + $0x70] sm:$0x8] %v1925_v14 }
 0x2c5   : > { %1923 = vst [vmem:[#allocation2 + $0x60] sm:$0x8] %v1922_v7  ;;  %v2092_v12 = vshll.u32 %v2014_v52, 16  ;;  %v2015_v16 = vld [vmem:[#allocation2 + $0x30] sm:$0x8]  ;;  %v2168_v61 = vshrl.u32 %v6137_v18, 16  ;;  %v1570_v52 = vpop.permute.xlu0 %1569 }
 0x2c6   : > { %v2117_v50 = vsel %vm5046_vm5, %v2109_v62, %v2116_v27  ;;  %v2253_v62 = vld [vmem:[#allocation2 + $0x78] sm:$0xf]  ;;  %v2087_v38 = vrot.slane %v6006_v15, 4  ;;  %v2346_v34 = vld [vmem:[#allocation2 + $0x3c] sm:$0x1]  ;;  %v2180_v15 = vshll.u32 %v2026_v63, 16 }
 0x2c7   : > { %2229 = vst.msk [vmem:[#allocation3 + $0x1c] sm:$0xf] %vm1985_vm12, %v2117_v50  ;;  %v6156_v50 = vrot.slane %v2168_v61, 7  ;;  %v2349_v35 = vld [vmem:[#allocation2 + $0x4c] sm:$0x1]  ;;  %v2415_v54 = vrot.slane %v2414_v57, 4 }
 0x2c8   : > { %1611 = vst.msk [vmem:[#allocation3 + $0x4c] sm:$0xf] %vm1591_vm0, %v1570_v52  ;;  %v6172_v7 = vrot.slane %v2504_v30, 4  ;;  %v2354_v57 = vld [vmem:[#allocation2 + $0x68] sm:$0xf]  ;;  %vm3243_vm8 = vcmask 191648  }
 0x2c9   : > { %v2247_v28 = vld [vmem:[#allocation2 + $0x48] sm:$0xf]  ;;  %v2420_v2 = vsel %vm4932_vm2, %v2415_v54, %v6116_v29  ;;  %v2513_v61 = vshll.u32 %v2354_v57, 16 }
 0x2ca   : > { %2296 = vrot.lane.b32.xlu2 %v2251_v37, %s4709_s27  ;;  %2288 = vrot.lane.b32.xlu1 %v2247_v28, %s4709_s27  ;;  %v2348_v41 = vld [vmem:[#allocation2 + $0x48] sm:$0xf]  ;;  %v2437_v37 = vrot.slane %v2435_v40, 5  ;;  %v2441_v28 = vshll.u32 %v2345_v24, 16 }
 0x2cb   : > { %2292 = vrot.lane.b32.xlu0 %v2249_v56, %s4709_s27  ;;  %v2146_v56 = vshrl.u32 %v2022_v59, 16  ;;  %v2465_v6 = vshll.u32 %v2348_v41, 16  ;;  %v2469_v9 = vshrl.u32 %v2348_v41, 16  ;;  %v2094_v59 = vor.u32 %v2092_v12, %v2091_v33 }
 0x2cc   : > { %v2438_v27 = vor.u32 %v2437_v37, %v2434_v1  ;;  %v2443_v23 = vrot.slane %v2441_v28, 5  ;;  %v2451_v28 = vshll.u32 %v2346_v34, 16  ;;  %v6188_v33 = vrot.slane %v2489_v46, 5  ;;  %v2023_v46 = vld [vmem:[#allocation2 + $0x58] sm:$0xf] }
 0x2cd   : > { %v6126_v49 = vrot.slane %v2146_v56, 7  ;;  %v6154_v40 = vrot.slane %v2465_v6, 5  ;;  %v2471_v56 = vrot.slane %v2469_v9, 4  ;;  %v2095_v8 = vsel %vm5046_vm5, %v2087_v38, %v2094_v59 }
 0x2ce   : > { %2227 = vst.msk [vmem:[#allocation3 + $0x14] sm:$0xf] %vm1985_vm12, %v2095_v8  ;;  %v2475_v9 = vshll.u32 %v2349_v35, 16  ;;  %v2517_v38 = vshrl.u32 %v2354_v57, 16  ;;  %v1828_v59 = vadd.s32 8, %v5895_v10  ;;  %v2155_v35 = vshrl.u32 %v2023_v46, 16 }
 0x2cf   : > { %v2151_v11 = vor.u32 %v2149_v32, %v6126_v49  ;;  %v2175_v32 = vrot.slane %v6156_v50, 4  ;;  %v2472_v6 = vor.u32 %v2471_v56, %v6154_v40  ;;  %v2024_v57 = vld [vmem:[#allocation2 + $0x60] sm:$0x8] }
 0x2d0   : > { %vm1838_vm0 = vcmp.ge.s32.totalorder %v1828_v59, 0  ;;  %vm1848_vm3 = vcmp.lt.s32.totalorder %v1828_v59, 16  ;;  %v2519_v54 = vrot.slane %v2517_v38, 4 }
 0x2d1   : > { %v2152_v4 = vsel %vm5046_vm5, %v4482_v58, %v2151_v11  ;;  %v2493_v58 = vshrl.u32 %v6087_v3, 16  ;;  %v2425_v11 = vrot.slane %v2424_v39, 4  ;;  %v2453_v39 = vrot.slane %v2451_v28, 5  ;;  %vm6218_vm10 = vmand %vm1838_vm0, %vm1848_vm3 }
 0x2d2   : > { %2551 = vrot.lane.b32.xlu2 %v2372_v48, %s4710_s24  ;;  %2294 = vrot.lane.b32.xlu1 %v2250_v21, %s4709_s27  ;;  %v2445_v48 = vshrl.u32 %v2345_v24, 16  ;;  %2232 = vst.msk [vmem:[#allocation3 + $0x28] sm:$0xf] %vm1985_vm12, %v2152_v4  ;;  %v2177_v21 = vshrl.u32 %v2026_v63, 16  ;;  %v2105_v24 = vshll.u32 %v6073_v25, 16  ;;  %v2396_v25 = vsel %vm4932_vm2, %v6095_v45, %v6069_v31 }
 0x2d3   : > { %2298 = vrot.lane.b32.xlu0 %v2252_v20, %s4709_s27  ;;  %v2097_v20 = vshrl.u32 %v2015_v16, 16  ;;  %v2347_v63 = vld [vmem:[#allocation2 + $0x44] sm:$0xf]  ;;  %v6179_v31 = vrot.slane %v2507_v51, 5  ;;  %v2357_v16 = vld [vmem:[#allocation2 + $0x78] sm:$0xf]  ;;  %v2430_v29 = vsel %vm4932_vm2, %v2425_v11, %v6067_v42 }
 0x2d4   : > { %v2179_v1 = vrot.slane %v2177_v21, 7  ;;  %v2447_v41 = vrot.slane %v2445_v48, 4  ;;  %v2107_v37 = vor.u32 %v2105_v24, %v6093_v0  ;;  %v2456_v51 = vshrl.u32 %v2347_v63, 16  ;;  %v2019_v24 = vld [vmem:[#allocation2 + $0x44] sm:$0xf] }
 0x2d5   : > { %v4480_v19 = vrot.slane %v2097_v20, 11  ;;  %v2459_v12 = vshll.u32 %v2347_v63, 16  ;;  %v6197_v3 = vrot.slane %v2493_v58, 4  ;;  %v2477_v48 = vrot.slane %v2475_v9, 5  ;;  %v2356_v63 = vld [vmem:[#allocation2 + $0x74] sm:$0xf] }
 0x2d6   : > { %v2448_v14 = vor.u32 %v2447_v41, %v2443_v23  ;;  %v2510_v4 = vor.u32 %v6179_v31, %v6172_v7  ;;  %v2458_v21 = vrot.slane %v2456_v51, 4  ;;  %v2537_v20 = vshll.u32 %v2357_v16, 16  ;;  %v2358_v7 = vld [vmem:[#allocation2 + $0x7c] sm:$0x1] }
 0x2d7   : > { %v2108_v0 = vsel %vm5046_vm5, %v4480_v19, %v2107_v37  ;;  %v2461_v34 = vrot.slane %v2459_v12, 5  ;;  %v2541_v56 = vshrl.u32 %v2357_v16, 16  ;;  %v2124_v52 = vshrl.u32 %v2019_v24, 16  ;;  %v2028_v16 = vld [vmem:[#allocation2 + $0x74] sm:$0xf] }
 0x2d8   : > { %2228 = vst.msk [vmem:[#allocation3 + $0x18] sm:$0xf] %vm1985_vm12, %v2108_v0  ;;  %v2127_v41 = vshll.u32 %v2019_v24, 16  ;;  %v2153_v42 = vrot.slane %v6126_v49, 4  ;;  %v2158_v28 = vshll.u32 %v2023_v46, 16  ;;  %v6228_v11 = vrot.slane %v2537_v20, 5 }
 0x2d9   : > { %v2547_v46 = vshll.u32 %v2358_v7, 16  ;;  %v2531_v38 = vshll.u32 %v2356_v63, 16  ;;  %v2650_v49 = vshll.u32 %v6078_v44, 16  ;;  %v2625_v44 = vld [vmem:[#allocation2 + $0x38] sm:$0xf]  ;;  %vm3606_vm0 = vcmask 257248  }
 0x2da   : > { %2557 = vrot.lane.b32.xlu2 %v2406_v13, %s4710_s24  ;;  %2300 = vrot.lane.b32.xlu1 %v2253_v62, %s4709_s27  ;;  %v2182_v13 = vor.u32 %v2180_v15, %v2179_v1  ;;  %v1788_v1 = vpop.f32.mrf.mxu2  ;;  %v2018_v15 = vld [vmem:[#allocation2 + $0x40] sm:$0x8]  ;;  %vm3984_vm3 = vcmask 293888  }
 0x2db   : > { %2553 = vrot.lane.b32.xlu0 %v2382_v26, %s4710_s24  ;;  %v2439_v26 = vrot.slane %v2438_v27, 4  ;;  %v2473_v27 = vrot.slane %v2472_v6, 4  ;;  %v1789_v19 = vadd.f32 %v5900_v55, %v1788_v1  ;;  %v2119_v37 = vshrl.u32 %v2018_v15, 16 }
 0x2dc   : > { %v2183_v45 = vsel %vm5046_vm5, %v2175_v32, %v2182_v13  ;;  %v2157_v32 = vrot.slane %v2155_v35, 7  ;;  %v2515_v13 = vrot.slane %v2513_v61, 5  ;;  %v2190_v61 = vshrl.u32 %v2028_v16, 16 }
 0x2dd   : > { %v2444_v30 = vsel %vm4932_vm2, %v2439_v26, %v2443_v23  ;;  %2235 = vst.msk [vmem:[#allocation3 + $0x34] sm:$0xf] %vm1985_vm12, %v2183_v45  ;;  %v2449_v23 = vrot.slane %v2448_v14, 4  ;;  %v2478_v8 = vsel %vm4932_vm2, %v2473_v27, %v2477_v48  ;;  %v2462_v26 = vor.u32 %v2461_v34, %v2458_v21  ;;  %v2027_v21 = vld [vmem:[#allocation2 + $0x70] sm:$0x8] }
 0x2de   : > { %v1814_v0 = vmax.f32 %v1789_v19, 0.0  ;;  %v4481_v6 = vrot.slane %v2119_v37, 11  ;;  %v2160_v31 = vor.u32 %v2158_v28, %v2157_v32  ;;  %v2511_v45 = vrot.slane %v2510_v4, 4 }
 0x2df   : > { %v2454_v58 = vsel %vm4932_vm2, %v2449_v23, %v2453_v39  ;;  %v2543_v14 = vrot.slane %v2541_v56, 4  ;;  %v2528_v27 = vshrl.u32 %v2356_v63, 16  ;;  %v2463_v4 = vrot.slane %v2462_v26, 4 }
 0x2e0   : > { %v1896_v51 = vsel %vm6218_vm10, %v1814_v0, 0.0  ;;  %v2161_v39 = vsel %vm5046_vm5, %v2153_v42, %v2160_v31  ;;  %v2193_v34 = vshll.u32 %v2028_v16, 16  ;;  %v2549_v56 = vrot.slane %v2547_v46, 5  ;;  %v2620_v42 = vld [vmem:[#allocation2 + $0x20] sm:$0x8] }
 0x2e1   : > { %v1981_v48 = vpack.c.bf16 %v1896_v51, %v1896_v51  ;;  %2233 = vst.msk [vmem:[#allocation3 + $0x2c] sm:$0xf] %vm1985_vm12, %v2161_v39  ;;  %v2544_v23 = vor.u32 %v2543_v14, %v6228_v11  ;;  %v2468_v20 = vsel %vm4932_vm2, %v2463_v4, %v6154_v40  ;;  %v2185_v1 = vshrl.u32 %v2027_v21, 16  ;;  %v2020_v51 = vld [vmem:[#allocation2 + $0x48] sm:$0xf] }
 0x2e2   : > { %2563 = vrot.lane.b32.xlu2 %v2444_v30, %s4710_s24  ;;  %2555 = vrot.lane.b32.xlu1 %v2396_v25, %s4710_s24  ;;  %v6210_v25 = vrot.slane %v2124_v52, 7  ;;  %v2492_v30 = vsel %vm4932_vm2, %v6104_v47, %v6188_v33  ;;  %v6238_v47 = vld [vmem:[#allocation2 + $0x24] sm:$0xf]  ;;  %v1790_v59 = vpop.f32.mrf.mxu2  ;;  %v6254_v15 = vrot.slane %v2190_v61, 7  ;;  %v2530_v19 = vrot.slane %v2528_v27, 4 }
 0x2e3   : > { %2559 = vrot.lane.b32.xlu0 %v2420_v2, %s4710_s24  ;;  %v2496_v2 = vor.u32 %v6197_v3, %v6188_v33  ;;  %v2163_v33 = vshrl.u32 %v2024_v57, 16  ;;  %v2171_v3 = vshll.u32 %v6137_v18, 16  ;;  %2002 = vst.msk [vmem:[#allocation2 + $0x84] sm:$0xf] %vm1985_vm12, %v1981_v48  ;;  %v1791_v24 = vadd.f32 %v5900_v55, %v1790_v59  ;;  %v2622_v27 = vld [vmem:[#allocation2 + $0x28] sm:$0xf] }
 0x2e4   : > { %v2273_v62 = vpop.permute.xlu2 %2272  ;;  %v2129_v9 = vor.u32 %v2127_v41, %v6210_v25  ;;  %v2669_v40 = vshrl.u32 %v6238_v47, 16  ;;  %v2533_v37 = vrot.slane %v2531_v38, 5  ;;  %v4484_v28 = vrot.slane %v2185_v1, 11 }
 0x2e5   : > { %2320 = vst.msk [vmem:[#allocation3 + $0x4] sm:$0xf] %vm2318_vm13, %v2273_v62  ;;  %v2520_v62 = vor.u32 %v2519_v54, %v2515_v13  ;;  %v4483_v35 = vrot.slane %v2163_v33, 11  ;;  %v2173_v18 = vor.u32 %v2171_v3, %v6156_v50  ;;  %v2497_v52 = vrot.slane %v2496_v2, 4  ;;  %v2029_v54 = vld [vmem:[#allocation2 + $0x78] sm:$0xf] }
 0x2e6   : > { %v2130_v12 = vsel %vm5046_vm5, %v4481_v6, %v2129_v9  ;;  %v1815_v55 = vmax.f32 %v1791_v24, 0.0  ;;  %v2664_v0 = vshrl.u32 %v2620_v42, 16  ;;  %v6273_v31 = vrot.slane %v2647_v60, 7  ;;  %v6290_v33 = vld [vmem:[#allocation2 + $0x34] sm:$0xf] }
 0x2e7   : > { %2230 = vst.msk [vmem:[#allocation3 + $0x20] sm:$0xf] %vm1985_vm12, %v2130_v12  ;;  %v2521_v41 = vrot.slane %v2520_v62, 4  ;;  %v2174_v50 = vsel %vm5046_vm5, %v4483_v35, %v2173_v18  ;;  %v2502_v9 = vsel %vm4932_vm2, %v2497_v52, %v6065_v17  ;;  %v6282_v57 = vrot.slane %v2669_v40, 7  ;;  %v2619_v17 = vld [vmem:[#allocation2 + $0x18] sm:$0xf] }
 0x2e8   : > { %2234 = vst.msk [vmem:[#allocation3 + $0x30] sm:$0xf] %vm1985_vm12, %v2174_v50  ;;  %v1897_v26 = vsel %vm6218_vm10, %v1815_v55, 0.0  ;;  %v2534_v2 = vor.u32 %v2533_v37, %v2530_v19  ;;  %v2133_v60 = vshrl.u32 %v2020_v51, 16  ;;  %v2197_v12 = vrot.slane %v6254_v15, 4 }
 0x2e9   : > { %v1982_v7 = vpack.c.bf16 %v1897_v26, %v1897_v26  ;;  %v2526_v14 = vsel %vm4932_vm2, %v2521_v41, %v6100_v5  ;;  %v2202_v16 = vshll.u32 %v2029_v54, 16  ;;  %v4486_v46 = vrot.slane %v2664_v0, 11  ;;  %v2630_v42 = vld [vmem:[#allocation2 + $0x54] sm:$0xf]  ;;  %v2627_v37 = vld [vmem:[#allocation2 + $0x44] sm:$0xf] }
 0x2ea   : > { %2569 = vrot.lane.b32.xlu2 %v2478_v8, %s4710_s24  ;;  %2561 = vrot.lane.b32.xlu1 %v2430_v29, %s4710_s24  ;;  %v2516_v29 = vsel %vm4932_vm2, %v2511_v45, %v2515_v13  ;;  %v2617_v8 = vld [vmem:[#allocation2 + $0x10] sm:$0x8]  ;;  %v2545_v13 = vrot.slane %v2544_v23, 4  ;;  %v2199_v45 = vshrl.u32 %v2029_v54, 16  ;;  %v2672_v5 = vshll.u32 %v6238_v47, 16 }
 0x2eb   : > { %2565 = vrot.lane.b32.xlu0 %v2454_v58, %s4710_s24  ;;  %v2195_v58 = vor.u32 %v2193_v34, %v6254_v15  ;;  %v2642_v6 = vshrl.u32 %v2617_v8, 16  ;;  %2003 = vst.msk [vmem:[#allocation2 + $0x88] sm:$0xf] %vm1985_vm12, %v1982_v7  ;;  %v2652_v4 = vor.u32 %v2650_v49, %v6273_v31  ;;  %v2135_v3 = vrot.slane %v2133_v60, 7  ;;  %v1927_v47 = vld [vmem:[#allocation2 + $0x80] sm:$0x8] }
 0x2ec   : > { %v2201_v39 = vrot.slane %v2199_v45, 7  ;;  %v2136_v61 = vshll.u32 %v2020_v51, 16  ;;  %v2674_v23 = vor.u32 %v2672_v5, %v6282_v57  ;;  %v2535_v38 = vrot.slane %v2534_v2, 4  ;;  %v2629_v7 = vld [vmem:[#allocation2 + $0x50] sm:$0x8] }
 0x2ed   : > { %v2196_v63 = vsel %vm5046_vm5, %v4484_v28, %v2195_v58  ;;  %v4485_v62 = vrot.slane %v2642_v6, 11  ;;  %v2700_v59 = vshrl.u32 %v2625_v44, 16  ;;  %v2656_v21 = vshrl.u32 %v2619_v17, 16  ;;  %v2626_v49 = vld [vmem:[#allocation2 + $0x40] sm:$0x8] }
 0x2ee   : > { %2236 = vst.msk [vmem:[#allocation3 + $0x38] sm:$0xf] %vm1985_vm12, %v2196_v63  ;;  %v2678_v34 = vshrl.u32 %v2622_v27, 16  ;;  %v2131_v24 = vrot.slane %v6210_v25, 4  ;;  %v2138_v35 = vor.u32 %v2136_v61, %v2135_v3  ;;  %v1928_v52 = vsel %vm5865_vm7, 0, %v1927_v47 }
 0x2ef   : > { %1929 = vst [vmem:[#allocation2 + $0x80] sm:$0x8] %v1928_v52  ;;  %v2675_v25 = vsel %vm5046_vm5, %v4486_v46, %v2674_v23  ;;  %v2540_v1 = vsel %vm4932_vm2, %v2535_v38, %v6228_v11  ;;  %v2702_v15 = vrot.slane %v2700_v59, 7  ;;  %v2658_v41 = vrot.slane %v2656_v21, 7  ;;  %v2623_v63 = vld [vmem:[#allocation2 + $0x30] sm:$0x8] }
 0x2f0   : > { %v2139_v8 = vsel %vm5046_vm5, %v2131_v24, %v2138_v35  ;;  %v2653_v40 = vsel %vm5046_vm5, %v4485_v62, %v2652_v4  ;;  %v2680_v55 = vrot.slane %v2678_v34, 7  ;;  %v2659_v19 = vshll.u32 %v2619_v17, 16  ;;  %v2634_v60 = vld [vmem:[#allocation2 + $0x68] sm:$0xf]  ;;  %v2631_v46 = vld [vmem:[#allocation2 + $0x58] sm:$0xf] }
 0x2f1   : > { %2231 = vst.msk [vmem:[#allocation3 + $0x24] sm:$0xf] %vm1985_vm12, %v2139_v8  ;;  %v2681_v28 = vshll.u32 %v2622_v27, 16  ;;  %v2735_v58 = vshrl.u32 %v2630_v42, 16  ;;  %v2713_v0 = vshrl.u32 %v2627_v37, 16  ;;  %v2676_v45 = vrot.slane %v6282_v57, 4 }
 0x2f2   : > { %2575 = vrot.lane.b32.xlu2 %v2516_v29, %s4710_s24  ;;  %2567 = vrot.lane.b32.xlu1 %v2468_v20, %s4710_s24  ;;  %v2204_v29 = vor.u32 %v2202_v16, %v2201_v39  ;;  %v4560_v20 = vld [vmem:[#allocation3 + $0x48] sm:$0xff]  ;;  %v2661_v26 = vor.u32 %v2659_v19, %v2658_v41  ;;  %v2730_v51 = vshrl.u32 %v2629_v7, 16  ;;  %v2694_v57 = vshll.u32 %v6290_v33, 16  ;;  %v2633_v4 = vld [vmem:[#allocation2 + $0x64] sm:$0xf] }
 0x2f3   : > { %2571 = vrot.lane.b32.xlu0 %v2492_v30, %s4710_s24  ;;  %v2550_v30 = vsel %vm4932_vm2, %v2545_v13, %v2549_v56  ;;  %v2691_v56 = vshrl.u32 %v6290_v33, 16  ;;  %4474 = vmatmul.msk.bf16.gmra.mxu2 %vm1701_vm1, %v4560_v20  ;;  %v2683_v54 = vor.u32 %v2681_v28, %v2680_v55  ;;  %v2715_v39 = vrot.slane %v2713_v0, 7  ;;  %v2628_v16 = vld [vmem:[#allocation2 + $0x48] sm:$0xf]  ;;  %v2639_v34 = vld [vmem:[#allocation2 + $0x84] sm:$0xf] }
 0x2f4   : > { %v2271_v32 = vpop.permute.xlu1 %2270  ;;  %v2205_v18 = vsel %vm5046_vm5, %v2197_v12, %v2204_v29  ;;  %v2708_v12 = vshrl.u32 %v2626_v49, 16  ;;  %v4489_v3 = vrot.slane %v2730_v51, 11  ;;  %v2766_v29 = vshrl.u32 %v2634_v60, 16  ;;  %v2635_v7 = vld [vmem:[#allocation2 + $0x70] sm:$0x8] }
 0x2f5   : > { %2319 = vst.msk [vmem:[#allocation3] sm:$0xf] %vm2318_vm13, %v2271_v32  ;;  %v2693_v50 = vrot.slane %v2691_v56, 7  ;;  %v2703_v32 = vshll.u32 %v2625_v44, 16  ;;  %v2686_v44 = vshrl.u32 %v2623_v63, 16  ;;  %v2722_v23 = vshrl.u32 %v2628_v16, 16 }
 0x2f6   : > { %2237 = vst.msk [vmem:[#allocation3 + $0x3c] sm:$0xf] %vm1985_vm12, %v2205_v18  ;;  %v4488_v38 = vrot.slane %v2708_v12, 11  ;;  %v2744_v59 = vshrl.u32 %v2631_v46, 16  ;;  %v2757_v21 = vshrl.u32 %v2633_v4, 16  ;;  %v2768_v24 = vrot.slane %v2766_v29, 7 }
 0x2f7   : > { %v2705_v13 = vor.u32 %v2703_v32, %v2702_v15  ;;  %v2698_v6 = vrot.slane %v2693_v50, 4  ;;  %v2696_v27 = vor.u32 %v2694_v57, %v2693_v50  ;;  %v4487_v61 = vrot.slane %v2686_v44, 11  ;;  %v2636_v15 = vld [vmem:[#allocation2 + $0x74] sm:$0xf]  ;;  %v2640_v44 = vld [vmem:[#allocation2 + $0x88] sm:$0xf] }
 0x2f8   : > { %v2724_v35 = vrot.slane %v2722_v23, 7  ;;  %v2746_v56 = vrot.slane %v2744_v59, 7  ;;  %v2759_v52 = vrot.slane %v2757_v21, 7  ;;  %v2769_v8 = vshll.u32 %v2634_v60, 16 }
 0x2f9   : > { %v2706_v2 = vsel %vm5046_vm5, %v2698_v6, %v2705_v13  ;;  %v2697_v47 = vsel %vm5046_vm5, %v4487_v61, %v2696_v27  ;;  %v2779_v28 = vshrl.u32 %v2636_v15, 16  ;;  %vm2599_vm1 = vcmask 93248  }
 0x2fa   : > { %2581 = vrot.lane.b32.xlu2 %v2550_v30, %s4710_s24  ;;  %2573 = vrot.lane.b32.xlu1 %v2502_v9, %s4710_s24  ;;  %v2654_v9 = vrot.slane %v6273_v31, 4  ;;  %v6318_v30 = vrot.slane %v2735_v58, 7  ;;  %v2684_v31 = vsel %vm5046_vm5, %v2676_v45, %v2683_v54  ;;  %v2764_v55 = vrot.slane %v2759_v52, 4 }
 0x2fb   : > { %2577 = vrot.lane.b32.xlu0 %v2526_v14, %s4710_s24  ;;  %v2738_v14 = vshll.u32 %v2630_v42, 16  ;;  %v2747_v42 = vshll.u32 %v2631_v46, 16  ;;  %v2771_v50 = vor.u32 %v2769_v8, %v2768_v24  ;;  %v2720_v58 = vrot.slane %v2715_v39, 4  ;;  %v2883_v8 = vld [vmem:[#allocation2 + $0x18] sm:$0xf] }
 0x2fc   : > { %v2279_v48 = vpop.permute.xlu2 %2278  ;;  %v2662_v17 = vsel %vm5046_vm5, %v2654_v9, %v2661_v26  ;;  %v2742_v19 = vrot.slane %v6318_v30, 4  ;;  %v2804_v54 = vshll.u32 %v2639_v34, 16  ;;  %v2760_v9 = vshll.u32 %v2633_v4, 16 }
 0x2fd   : > { %2323 = vst.msk [vmem:[#allocation3 + $0x10] sm:$0xf] %vm2318_vm13, %v2279_v48  ;;  %v2740_v62 = vor.u32 %v2738_v14, %v6318_v30  ;;  %v2716_v48 = vshll.u32 %v2627_v37, 16  ;;  %v2749_v37 = vor.u32 %v2747_v42, %v2746_v56  ;;  %v2772_v63 = vsel %vm5046_vm5, %v2764_v55, %v2771_v50  ;;  %v2981_v56 = vld [vmem:[#allocation2 + $0x1c] sm:$0x1] }
 0x2fe   : > { %v2774_v45 = vshrl.u32 %v2635_v7, 16  ;;  %v2781_v30 = vrot.slane %v2779_v28, 7  ;;  %v2782_v14 = vshll.u32 %v2636_v15, 16  ;;  %v2762_v12 = vor.u32 %v2760_v9, %v2759_v52  ;;  %v2979_v52 = vld [vmem:[#allocation2 + $0x14] sm:$0xf] }
 0x2ff   : > { %v2718_v33 = vor.u32 %v2716_v48, %v2715_v39  ;;  %v2741_v20 = vsel %vm5046_vm5, %v4489_v3, %v2740_v62  ;;  %v2750_v49 = vsel %vm5046_vm5, %v2742_v19, %v2749_v37  ;;  %v2980_v62 = vld [vmem:[#allocation2 + $0x18] sm:$0xf]  ;;  %v3023_v15 = vshll.u32 %v2981_v56, 16  ;;  %v3262_v55 = vld [vmem:[#allocation2 + $0x24] sm:$0xf] }
 0x300   : > { %v2784_v46 = vor.u32 %v2782_v14, %v2781_v30  ;;  %v3013_v3 = vshll.u32 %v2980_v62, 16  ;;  %v3017_v61 = vshrl.u32 %v2980_v62, 16  ;;  %v3004_v42 = vshrl.u32 %v2979_v52, 16  ;;  %v3526_v62 = vld [vmem:[#allocation2 + $0x24] sm:$0xf] }
 0x301   : > { %v2719_v18 = vsel %vm5046_vm5, %v4488_v38, %v2718_v33  ;;  %v2813_v38 = vshll.u32 %v2640_v44, 16  ;;  %v3025_v19 = vrot.slane %v3023_v15, 5  ;;  %v3291_v28 = vshrl.u32 %v3262_v55, 16  ;;  %v2982_v56 = vld [vmem:[#allocation2 + $0x24] sm:$0xf] }
 0x302   : > { %2821 = vrot.lane.b32.xlu2 %v2675_v25, %s4703_s23  ;;  %2579 = vrot.lane.b32.xlu1 %v2540_v1, %s4710_s24  ;;  %v2725_v25 = vshll.u32 %v2628_v16, 16  ;;  %v2801_v1 = vshrl.u32 %v2639_v34, 16  ;;  %v4491_v16 = vrot.slane %v2774_v45, 11  ;;  %v2786_v34 = vrot.slane %v2781_v30, 4  ;;  %v3263_v45 = vld [vmem:[#allocation2 + $0x28] sm:$0xf] }
 0x303   : > { %2817 = vrot.lane.b32.xlu0 %v2653_v40, %s4703_s23  ;;  %v2638_v40 = vld [vmem:[#allocation2 + $0x80] sm:$0x8]  ;;  %v3019_v24 = vrot.slane %v3017_v61, 4  ;;  %v3006_v37 = vrot.slane %v3004_v42, 4 }
 0x304   : > { %v2275_v11 = vpop.permute.xlu0 %2274  ;;  %v2727_v32 = vor.u32 %v2725_v25, %v2724_v35  ;;  %v2796_v13 = vshrl.u32 %v2638_v40, 16  ;;  %v2803_v26 = vrot.slane %v2801_v1, 7  ;;  %v2785_v29 = vsel %vm5046_vm5, %v4491_v16, %v2784_v46 }
 0x305   : > { %2321 = vst.msk [vmem:[#allocation3 + $0x8] sm:$0xf] %vm2318_vm13, %v2275_v11  ;;  %v2632_v11 = vld [vmem:[#allocation2 + $0x60] sm:$0x8]  ;;  %v3007_v40 = vshll.u32 %v2979_v52, 16 }
 0x306   : > { %v2728_v0 = vsel %vm5046_vm5, %v2720_v58, %v2727_v32  ;;  %v2752_v6 = vshrl.u32 %v2632_v11, 16  ;;  %v2806_v51 = vor.u32 %v2804_v54, %v2803_v26  ;;  %v2808_v35 = vrot.slane %v2803_v26, 4  ;;  %v3624_v58 = vld [vmem:[#allocation2 + $0x28] sm:$0xf]  ;;  %v2882_v54 = vld [vmem:[#allocation2 + $0x14] sm:$0xf] }
 0x307   : > { %v3009_v11 = vrot.slane %v3007_v40, 5  ;;  %v3657_v7 = vshll.u32 %v3624_v58, 16  ;;  %v3527_v40 = vld [vmem:[#allocation2 + $0x28] sm:$0xf] }
 0x308   : > { %v4490_v57 = vrot.slane %v2752_v6, 11 }
 0x309   : > { %v3010_v6 = vor.u32 %v3009_v11, %v3006_v37 }
 0x30a   : > { %2827 = vrot.lane.b32.xlu2 %v2706_v2, %s4703_s23  ;;  %2819 = vrot.lane.b32.xlu1 %v2662_v17, %s4703_s23  ;;  %v2637_v2 = vld [vmem:[#allocation2 + $0x78] sm:$0xf]  ;;  %v4492_v17 = vrot.slane %v2796_v13, 11  ;;  %v2763_v48 = vsel %vm5046_vm5, %v4490_v57, %v2762_v12  ;;  %v3261_v13 = vld [vmem:[#allocation2 + $0x20] sm:$0x8] }
 0x30b   : > { %2823 = vrot.lane.b32.xlu0 %v2684_v31, %s4703_s23  ;;  %v2788_v39 = vshrl.u32 %v2637_v2, 16  ;;  %v2791_v33 = vshll.u32 %v2637_v2, 16  ;;  %v3286_v9 = vshrl.u32 %v3261_v13, 16  ;;  %v3294_v2 = vshll.u32 %v3262_v55, 16 }
 0x30c   : > { %v2807_v27 = vsel %vm5046_vm5, %v4492_v17, %v2806_v51  ;;  %v3625_v17 = vld [vmem:[#allocation2 + $0x2c] sm:$0x1]  ;;  %v6382_v51 = vrot.slane %v3657_v7, 5  ;;  %v3028_v55 = vshrl.u32 %v2982_v56, 16 }
 0x30d   : > { %v2277_v5 = vpop.permute.xlu1 %2276  ;;  %v2790_v4 = vrot.slane %v2788_v39, 7  ;;  %v4493_v57 = vrot.slane %v3286_v9, 11  ;;  %v2983_v39 = vld [vmem:[#allocation2 + $0x28] sm:$0xf]  ;;  %v3667_v46 = vshll.u32 %v3625_v17, 16 }
 0x30e   : > { %2322 = vst.msk [vmem:[#allocation3 + $0xc] sm:$0xf] %vm2318_vm13, %v2277_v5  ;;  %v2810_v5 = vshrl.u32 %v2640_v44, 16 }
 0x310   : > { %v2812_v23 = vrot.slane %v2810_v5, 7  ;;  %v3623_v5 = vld [vmem:[#allocation2 + $0x24] sm:$0xf] }
 0x312   : > { %2833 = vrot.lane.b32.xlu2 %v2741_v20, %s4703_s23  ;;  %2825 = vrot.lane.b32.xlu1 %v2697_v47, %s4703_s23  ;;  %v2793_v20 = vor.u32 %v2791_v33, %v2790_v4  ;;  %v6364_v47 = vrot.slane %v3013_v3, 5  ;;  %v3037_v4 = vshll.u32 %v2983_v39, 16  ;;  %v3041_v3 = vshrl.u32 %v2983_v39, 16  ;;  %v3628_v39 = vld [vmem:[#allocation2 + $0x3c] sm:$0x1] }
 0x313   : > { %2829 = vrot.lane.b32.xlu0 %v2719_v18, %s4703_s23  ;;  %v2815_v18 = vor.u32 %v2813_v38, %v2812_v23  ;;  %v3648_v23 = vshrl.u32 %v3623_v5, 16  ;;  %v3651_v38 = vshll.u32 %v3623_v5, 16 }
 0x314   : > { %v2285_v41 = vpop.permute.xlu2 %2284  ;;  %v2794_v25 = vsel %vm5046_vm5, %v2786_v34, %v2793_v20  ;;  %v3020_v1 = vor.u32 %v3019_v24, %v6364_v47  ;;  %v6395_v24 = vrot.slane %v3037_v4, 5  ;;  %v2994_v4 = vld [vmem:[#allocation2 + $0x64] sm:$0xf] }
 0x315   : > { %2326 = vst.msk [vmem:[#allocation3 + $0x1c] sm:$0xf] %vm2318_vm13, %v2285_v41  ;;  %v2816_v41 = vsel %vm5046_vm5, %v2808_v35, %v2815_v18  ;;  %v3043_v35 = vrot.slane %v3041_v3, 4  ;;  %v2984_v18 = vld [vmem:[#allocation2 + $0x2c] sm:$0x1] }
 0x316   : > { %v3021_v32 = vrot.slane %v3020_v1, 4  ;;  %v3047_v42 = vshll.u32 %v2984_v18, 16 }
 0x318   : > { %v3026_v26 = vsel %vm4932_vm2, %v3021_v32, %v3025_v19  ;;  %v3265_v19 = vld [vmem:[#allocation2 + $0x34] sm:$0xf]  ;;  %v3049_v13 = vrot.slane %v3047_v42, 5 }
 0x31a   : > { %2839 = vrot.lane.b32.xlu2 %v2772_v63, %s4703_s23  ;;  %2831 = vrot.lane.b32.xlu1 %v2728_v0, %s4703_s23  ;;  %v3661_v63 = vshrl.u32 %v3624_v58, 16  ;;  %v2884_v0 = vld [vmem:[#allocation2 + $0x24] sm:$0xf] }
 0x31b   : > { %2835 = vrot.lane.b32.xlu0 %v2750_v49, %s4703_s23  ;;  %v3293_v49 = vrot.slane %v3291_v28, 7 }
 0x31c   : > { %v2291_v60 = vpop.permute.xlu2 %2290  ;;  %v2281_v31 = vpop.permute.xlu0 %2280  ;;  %v3663_v44 = vrot.slane %v3661_v63, 4  ;;  %v3313_v63 = vshrl.u32 %v3265_v19, 16 }
 0x31d   : > { %2329 = vst.msk [vmem:[#allocation3 + $0x28] sm:$0xf] %vm2318_vm13, %v2291_v60  ;;  %v3300_v60 = vshrl.u32 %v3263_v45, 16  ;;  %v3296_v12 = vor.u32 %v3294_v2, %v3293_v49  ;;  %v3298_v52 = vrot.slane %v3293_v49, 4 }
 0x31e   : > { %2324 = vst.msk [vmem:[#allocation3 + $0x14] sm:$0xf] %vm2318_vm13, %v2281_v31  ;;  %v3011_v31 = vrot.slane %v3010_v6, 4  ;;  %v3264_v6 = vld [vmem:[#allocation2 + $0x30] sm:$0x8] }
 0x31f   : > { %v3297_v61 = vsel %vm5046_vm5, %v4493_v57, %v3296_v12  ;;  %v3308_v17 = vshrl.u32 %v3264_v6, 16  ;;  %v3316_v12 = vshll.u32 %v3265_v19, 16 }
 0x320   : > { %v3016_v16 = vsel %vm4932_vm2, %v3011_v31, %v6364_v47 }
 0x322   : > { %2845 = vrot.lane.b32.xlu2 %v2807_v27, %s4703_s23  ;;  %2837 = vrot.lane.b32.xlu1 %v2763_v48, %s4703_s23  ;;  %v3664_v27 = vor.u32 %v3663_v44, %v6382_v51  ;;  %v3302_v48 = vrot.slane %v3300_v60, 7  ;;  %v3315_v44 = vrot.slane %v3313_v63, 7  ;;  %v3266_v60 = vld [vmem:[#allocation2 + $0x38] sm:$0xf] }
 0x323   : > { %2841 = vrot.lane.b32.xlu0 %v2785_v29, %s4703_s23  ;;  %v3303_v29 = vshll.u32 %v3263_v45, 16  ;;  %v3322_v5 = vshrl.u32 %v3266_v60, 16 }
 0x324   : > { %v2297_v59 = vpop.permute.xlu2 %2296  ;;  %v2283_v21 = vpop.permute.xlu1 %2282  ;;  %v3665_v20 = vrot.slane %v3664_v27, 4  ;;  %v4494_v27 = vrot.slane %v3308_v17, 11  ;;  %v3320_v42 = vrot.slane %v3315_v44, 4  ;;  %v1959_v17 = vld [vmem:[#allocation2 + $0x8c] sm:$0x1] }
 0x325   : > { %2332 = vst.msk [vmem:[#allocation3 + $0x34] sm:$0xf] %vm2318_vm13, %v2297_v59  ;;  %v3305_v47 = vor.u32 %v3303_v29, %v3302_v48  ;;  %v3318_v48 = vor.u32 %v3316_v12, %v3315_v44  ;;  %v3626_v29 = vld [vmem:[#allocation2 + $0x34] sm:$0xf] }
 0x326   : > { %2325 = vst.msk [vmem:[#allocation3 + $0x18] sm:$0xf] %vm2318_vm13, %v2283_v21  ;;  %v3669_v21 = vrot.slane %v3667_v46, 5 }
 0x327   : > { %v3306_v15 = vsel %vm5046_vm5, %v3298_v52, %v3305_v47  ;;  %v3672_v47 = vshrl.u32 %v3626_v29, 16 }
 0x328   : > { %v3670_v1 = vsel %vm4932_vm2, %v3665_v20, %v3669_v21  ;;  %v3127_v21 = vshll.u32 %v2994_v4, 16  ;;  %v3325_v20 = vshll.u32 %v3266_v60, 16  ;;  %v1960_v60 = vsel %vm5882_vm9, 0, %v1959_v17 }
 0x329   : > { %1961 = vst [vmem:[#allocation2 + $0x8c] sm:$0x1] %v1960_v60  ;;  %v3537_v60 = vld [vmem:[#allocation2 + $0x78] sm:$0xf] }
 0x32a   : > { %2916 = vrot.lane.b32.xlu2 %v2883_v8, %s4711_s25  ;;  %2843 = vrot.lane.b32.xlu1 %v2794_v25, %s4703_s23  ;;  %v3650_v8 = vrot.slane %v3648_v23, 4  ;;  %v3653_v25 = vrot.slane %v3651_v38, 5  ;;  %v3528_v23 = vld [vmem:[#allocation2 + $0x34] sm:$0xf] }
 0x32b   : > { %2847 = vrot.lane.b32.xlu0 %v2816_v41, %s4703_s23  ;;  %s4713_s23 = smov 28   ;;  %v3044_v41 = vor.u32 %v3043_v35, %v6395_v24 }
 0x32c   : > { %v2552_v50 = vpop.permute.xlu2 %2551  ;;  %v3654_v32 = vor.u32 %v3653_v25, %v3650_v8 }
 0x32d   : > { %2600 = vst.msk [vmem:[#allocation3] sm:$0xf] %vm2599_vm1, %v2552_v50  ;;  %v3031_v50 = vshll.u32 %v2982_v56, 16  ;;  %v3045_v58 = vrot.slane %v3044_v41, 4  ;;  %v2995_v41 = vld [vmem:[#allocation2 + $0x68] sm:$0xf] }
 0x32f   : > { %v3033_v7 = vrot.slane %v3031_v50, 5  ;;  %v3050_v9 = vsel %vm4932_vm2, %v3045_v58, %v3049_v13  ;;  %v3137_v58 = vshrl.u32 %v2995_v41, 16 }
 0x332   : > { %3197 = vrot.lane.b32.xlu2 %v3026_v26, %s4712_s26  ;;  %2914 = vrot.lane.b32.xlu1 %v2882_v54, %s4711_s25  ;;  %v3627_v26 = vld [vmem:[#allocation2 + $0x38] sm:$0xf]  ;;  %v3030_v54 = vrot.slane %v3028_v55, 4 }
 0x333   : > { %2918 = vrot.lane.b32.xlu0 %v2884_v0, %s4711_s25  ;;  %v3655_v0 = vrot.slane %v3654_v32, 4  ;;  %v3681_v45 = vshll.u32 %v3627_v26, 16 }
 0x334   : > { %v2558_v30 = vpop.permute.xlu2 %2557  ;;  %v2287_v14 = vpop.permute.xlu0 %2286  ;;  %v3034_v2 = vor.u32 %v3033_v7, %v3030_v54 }
 0x335   : > { %2603 = vst.msk [vmem:[#allocation3 + $0xc] sm:$0xf] %vm2599_vm1, %v2558_v30  ;;  %v3660_v49 = vsel %vm4932_vm2, %v3655_v0, %v6382_v51  ;;  %v3685_v30 = vshrl.u32 %v3627_v26, 16  ;;  %v6442_v26 = vld [vmem:[#allocation2 + $0x74] sm:$0xf] }
 0x336   : > { %2327 = vst.msk [vmem:[#allocation3 + $0x20] sm:$0xf] %vm2318_vm13, %v2287_v14  ;;  %v2885_v14 = vld [vmem:[#allocation2 + $0x28] sm:$0xf] }
 0x337   : > { %v3687_v46 = vrot.slane %v3685_v30, 4  ;;  %v3139_v30 = vrot.slane %v3137_v58, 4 }
 0x33a   : > { %3558 = vrot.lane.b32.xlu2 %v3526_v62, %s4713_s23  ;;  %3195 = vrot.lane.b32.xlu1 %v3016_v16, %s4712_s26  ;;  %v6419_v16 = vrot.slane %v3681_v45, 5  ;;  %v3035_v62 = vrot.slane %v3034_v2, 4  ;;  %v3401_v45 = vshrl.u32 %v6442_v26, 16 }
 0x33b   : > { %3461 = vrot.lane.b32.xlu0 %v3297_v61, %s4707_s12  ;;  %v3691_v61 = vshll.u32 %v3628_v39, 16 }
 0x33c   : > { %v2564_v33 = vpop.permute.xlu2 %2563  ;;  %v2289_v59 = vpop.permute.xlu1 %2288  ;;  %v3040_v3 = vsel %vm4932_vm2, %v3035_v62, %v6395_v24  ;;  %v3688_v38 = vor.u32 %v3687_v46, %v6419_v16  ;;  %v3675_v24 = vshll.u32 %v3626_v29, 16  ;;  %v3403_v46 = vrot.slane %v3401_v45, 7  ;;  %v3639_v29 = vld [vmem:[#allocation2 + $0x78] sm:$0xf] }
 0x33d   : > { %2606 = vst.msk [vmem:[#allocation3 + $0x18] sm:$0xf] %vm2599_vm1, %v2564_v33  ;;  %v2293_v34 = vpop.permute.xlu0 %2292  ;;  %v3324_v33 = vrot.slane %v3322_v5, 7  ;;  %v3693_v56 = vrot.slane %v3691_v61, 5 }
 0x33e   : > { %2328 = vst.msk [vmem:[#allocation3 + $0x24] sm:$0xf] %vm2318_vm13, %v2289_v59  ;;  %v3124_v59 = vshrl.u32 %v2994_v4, 16  ;;  %v3689_v8 = vrot.slane %v3688_v38, 4  ;;  %v3677_v55 = vrot.slane %v3675_v24, 5  ;;  %v3777_v24 = vshll.u32 %v3639_v29, 16 }
 0x33f   : > { %2330 = vst.msk [vmem:[#allocation3 + $0x2c] sm:$0xf] %vm2318_vm13, %v2293_v34  ;;  %v3319_v34 = vsel %vm5046_vm5, %v4494_v27, %v3318_v48  ;;  %v3327_v25 = vor.u32 %v3325_v20, %v3324_v33  ;;  %v2893_v20 = vld [vmem:[#allocation2 + $0x68] sm:$0xf] }
 0x340   : > { %v3694_v50 = vsel %vm4932_vm2, %v3689_v8, %v3693_v56 }
 0x341   : > { %v3328_v32 = vsel %vm5046_vm5, %v3320_v42, %v3327_v25 }
 0x342   : > { %3841 = vrot.lane.b32.xlu2 %v3670_v1, %s4714_s13  ;;  %3463 = vrot.lane.b32.xlu1 %v3306_v15, %s4707_s12  ;;  %v3126_v1 = vrot.slane %v3124_v59, 4  ;;  %v3129_v15 = vrot.slane %v3127_v21, 5  ;;  %v3276_v21 = vld [vmem:[#allocation2 + $0x70] sm:$0x8] }
 0x343   : > { %3560 = vrot.lane.b32.xlu0 %v3527_v40, %s4713_s23  ;;  %v3674_v40 = vrot.slane %v3672_v47, 4 }
 0x344   : > { %v2570_v37 = vpop.permute.xlu2 %2569  ;;  %v2295_v11 = vpop.permute.xlu1 %2294  ;;  %v3130_v19 = vor.u32 %v3129_v15, %v3126_v1 }
 0x345   : > { %2609 = vst.msk [vmem:[#allocation3 + $0x24] sm:$0xf] %vm2599_vm1, %v2570_v37  ;;  %v2299_v28 = vpop.permute.xlu0 %2298  ;;  %v3133_v37 = vshll.u32 %v2995_v41, 16  ;;  %v3678_v13 = vor.u32 %v3677_v55, %v3674_v40  ;;  %v3779_v41 = vrot.slane %v3777_v24, 5  ;;  %v3629_v24 = vld [vmem:[#allocation2 + $0x44] sm:$0xf] }
 0x346   : > { %2331 = vst.msk [vmem:[#allocation3 + $0x30] sm:$0xf] %vm2318_vm13, %v2295_v11  ;;  %v3278_v11 = vld [vmem:[#allocation2 + $0x78] sm:$0xf]  ;;  %v3131_v6 = vrot.slane %v3130_v19, 4 }
 0x347   : > { %2333 = vst.msk [vmem:[#allocation3 + $0x38] sm:$0xf] %vm2318_vm13, %v2299_v28  ;;  %v3529_v28 = vld [vmem:[#allocation2 + $0x38] sm:$0xf]  ;;  %v3410_v63 = vshrl.u32 %v3278_v11, 16  ;;  %v3679_v2 = vrot.slane %v3678_v13, 4 }
 0x348   : > { %v3413_v5 = vshll.u32 %v3278_v11, 16  ;;  %v3536_v11 = vld [vmem:[#allocation2 + $0x74] sm:$0xf]  ;;  %v3268_v13 = vld [vmem:[#allocation2 + $0x44] sm:$0xf] }
 0x349   : > { %v3412_v44 = vrot.slane %v3410_v63, 7 }
 0x34a   : > { %3201 = vrot.lane.b32.xlu2 %v3050_v9, %s4712_s26  ;;  %3839 = vrot.lane.b32.xlu1 %v3660_v49, %s4714_s13  ;;  %v3135_v9 = vrot.slane %v3133_v37, 5  ;;  %v2996_v49 = vld [vmem:[#allocation2 + $0x6c] sm:$0x1]  ;;  %v2985_v37 = vld [vmem:[#allocation2 + $0x34] sm:$0xf] }
 0x34b   : > { %2920 = vrot.lane.b32.xlu0 %v2885_v14, %s4711_s25  ;;  %v3638_v14 = vld [vmem:[#allocation2 + $0x74] sm:$0xf]  ;;  %v3143_v27 = vshll.u32 %v2996_v49, 16  ;;  %v3415_v61 = vor.u32 %v3413_v5, %v3412_v44  ;;  %v3055_v63 = vshll.u32 %v2985_v37, 16 }
 0x34c   : > { %v2576_v31 = vpop.permute.xlu2 %2575  ;;  %v2301_v57 = vpop.permute.xlu1 %2300  ;;  %v3768_v12 = vshrl.u32 %v3638_v14, 16  ;;  %v3771_v39 = vshll.u32 %v3638_v14, 16  ;;  %v3140_v62 = vor.u32 %v3139_v30, %v3135_v9  ;;  %v2986_v30 = vld [vmem:[#allocation2 + $0x38] sm:$0xf] }
 0x34d   : > { %2612 = vst.msk [vmem:[#allocation3 + $0x30] sm:$0xf] %vm2599_vm1, %v2576_v31  ;;  %v2554_v51 = vpop.permute.xlu0 %2553  ;;  %v3136_v31 = vsel %vm4932_vm2, %v3131_v6, %v3135_v9  ;;  %v3145_v59 = vrot.slane %v3143_v27, 5  ;;  %v3267_v6 = vld [vmem:[#allocation2 + $0x40] sm:$0x8]  ;;  %v3335_v9 = vshrl.u32 %v3268_v13, 16 }
 0x34e   : > { %2334 = vst.msk [vmem:[#allocation3 + $0x3c] sm:$0xf] %vm2318_vm13, %v2301_v57  ;;  %v3684_v57 = vsel %vm4932_vm2, %v3679_v2, %v6419_v16  ;;  %v3773_v38 = vrot.slane %v3771_v39, 5  ;;  %v3141_v33 = vrot.slane %v3140_v62, 4  ;;  %v2887_v14 = vld [vmem:[#allocation2 + $0x38] sm:$0xf] }
 0x34f   : > { %2601 = vst.msk [vmem:[#allocation3 + $0x4] sm:$0xf] %vm2599_vm1, %v2554_v51  ;;  %v2892_v51 = vld [vmem:[#allocation2 + $0x64] sm:$0xf]  ;;  %v3330_v2 = vshrl.u32 %v3267_v6, 16  ;;  %v3057_v44 = vrot.slane %v3055_v63, 5 }
 0x350   : > { %v3146_v56 = vsel %vm4932_vm2, %v3141_v33, %v3145_v59  ;;  %vm3509_vm13 = vcmask 224448  }
 0x351   : > { %v4495_v27 = vrot.slane %v3330_v2, 11 }
 0x352   : > { %3562 = vrot.lane.b32.xlu2 %v3528_v23, %s4713_s23  ;;  %3199 = vrot.lane.b32.xlu1 %v3040_v3, %s4712_s26  ;;  %v3408_v3 = vrot.slane %v3403_v46, 4  ;;  %v3770_v23 = vrot.slane %v3768_v12, 4  ;;  %v3065_v12 = vshrl.u32 %v2986_v30, 16 }
 0x353   : > { %3465 = vrot.lane.b32.xlu0 %v3319_v34, %s4707_s12 }
 0x354   : > { %v2582_v35 = vpop.permute.xlu2 %2581  ;;  %v2556_v18 = vpop.permute.xlu1 %2555  ;;  %v3416_v34 = vsel %vm5046_vm5, %v3408_v3, %v3415_v61  ;;  %v3774_v47 = vor.u32 %v3773_v38, %v3770_v23  ;;  %v2987_v23 = vld [vmem:[#allocation2 + $0x3c] sm:$0x1]  ;;  %v1829_v38 = vadd.s32 9, %v5895_v10 }
 0x355   : > { %2615 = vst.msk [vmem:[#allocation3 + $0x3c] sm:$0xf] %vm2599_vm1, %v2582_v35  ;;  %v2560_v52 = vpop.permute.xlu0 %2559  ;;  %v3396_v35 = vshrl.u32 %v3276_v21, 16  ;;  %v2886_v21 = vld [vmem:[#allocation2 + $0x34] sm:$0xf] }
 0x356   : > { %2602 = vst.msk [vmem:[#allocation3 + $0x8] sm:$0xf] %vm2599_vm1, %v2556_v18  ;;  %v3404_v18 = vshll.u32 %v6442_v26, 16  ;;  %v3775_v15 = vrot.slane %v3774_v47, 4  ;;  %vm1839_vm15 = vcmp.ge.s32.totalorder %v1829_v38, 0  ;;  %vm1849_vm4 = vcmp.lt.s32.totalorder %v1829_v38, 16 }
 0x357   : > { %2604 = vst.msk [vmem:[#allocation3 + $0x10] sm:$0xf] %vm2599_vm1, %v2560_v52  ;;  %v3781_v52 = vshrl.u32 %v3639_v29, 16  ;;  %v4498_v42 = vrot.slane %v3396_v35, 11  ;;  %vm6507_vm6 = vmand %vm1839_vm15, %vm1849_vm4 }
 0x358   : > { %v3406_v40 = vor.u32 %v3404_v18, %v3403_v46  ;;  %v3338_v46 = vshll.u32 %v3268_v13, 16 }
 0x359   : > { %v3783_v55 = vrot.slane %v3781_v52, 4 }
 0x35a   : > { %3845 = vrot.lane.b32.xlu2 %v3694_v50, %s4714_s13  ;;  %3467 = vrot.lane.b32.xlu1 %v3328_v32, %s4707_s12  ;;  %v3640_v50 = vld [vmem:[#allocation2 + $0x7c] sm:$0x1]  ;;  %v3780_v32 = vsel %vm4932_vm2, %v3775_v15, %v3779_v41  ;;  %v3407_v19 = vsel %vm5046_vm5, %v4498_v42, %v3406_v40  ;;  %v4659_v15 = vld [vmem:[%s6974_s5] ss:$0 sm:$0xff] }
 0x35b   : > { %3564 = vrot.lane.b32.xlu0 %v3529_v28, %s4713_s23  ;;  %v3784_v28 = vor.u32 %v3783_v55, %v3779_v41  ;;  %v3787_v58 = vshll.u32 %v3640_v50, 16 }
 0x35c   : > { %v2822_v54 = vpop.permute.xlu2 %2821  ;;  %v2562_v7 = vpop.permute.xlu1 %2561 }
 0x35d   : > { %2868 = vst.msk [vmem:[#allocation3 + $0x8] sm:$0xf] %vm2865_vm11, %v2822_v54  ;;  %v2566_v0 = vpop.permute.xlu0 %2565  ;;  %v3785_v49 = vrot.slane %v3784_v28, 4  ;;  %v3789_v45 = vrot.slane %v3787_v58, 5 }
 0x35e   : > { %2605 = vst.msk [vmem:[#allocation3 + $0x14] sm:$0xf] %vm2599_vm1, %v2562_v7  ;;  %v3052_v7 = vshrl.u32 %v2985_v37, 16 }
 0x35f   : > { %2607 = vst.msk [vmem:[#allocation3 + $0x1c] sm:$0xf] %vm2599_vm1, %v2566_v0  ;;  %v3790_v39 = vsel %vm4932_vm2, %v3785_v49, %v3789_v45 }
 0x360   : > { %v3054_v17 = vrot.slane %v3052_v7, 4  ;;  %v3531_v7 = vld [vmem:[#allocation2 + $0x48] sm:$0xf] }
 0x362   : > { %3215 = vrot.lane.b32.xlu2 %v3136_v31, %s4712_s26  ;;  %3843 = vrot.lane.b32.xlu1 %v3684_v57, %s4714_s13  ;;  %v6482_v31 = vrot.slane %v3335_v9, 7  ;;  %v3061_v57 = vshll.u32 %v2986_v30, 16 }
 0x363   : > { %2934 = vrot.lane.b32.xlu0 %v2892_v51, %s4711_s25  ;;  %v3269_v51 = vld [vmem:[#allocation2 + $0x48] sm:$0xf] }
 0x364   : > { %v2828_v48 = vpop.permute.xlu2 %2827  ;;  %v2568_v4 = vpop.permute.xlu1 %2567  ;;  %v3340_v3 = vor.u32 %v3338_v46, %v6482_v31  ;;  %v3063_v61 = vrot.slane %v3061_v57, 5  ;;  %v3344_v29 = vshrl.u32 %v3269_v51, 16  ;;  %v3347_v52 = vshll.u32 %v3269_v51, 16  ;;  %v3631_v46 = vld [vmem:[#allocation2 + $0x4c] sm:$0x1] }
 0x365   : > { %2871 = vst.msk [vmem:[#allocation3 + $0x14] sm:$0xf] %vm2865_vm11, %v2828_v48  ;;  %v2572_v16 = vpop.permute.xlu0 %2571  ;;  %v3058_v48 = vor.u32 %v3057_v44, %v3054_v17  ;;  %v2999_v17 = vld [vmem:[#allocation2 + $0x7c] sm:$0x1]  ;;  %v2997_v44 = vld [vmem:[#allocation2 + $0x74] sm:$0xf] }
 0x366   : > { %2608 = vst.msk [vmem:[#allocation3 + $0x20] sm:$0xf] %vm2599_vm1, %v2568_v4  ;;  %v3341_v59 = vsel %vm5046_vm5, %v4495_v27, %v3340_v3  ;;  %v3346_v47 = vrot.slane %v3344_v29, 7  ;;  %v3715_v38 = vshll.u32 %v3631_v46, 16 }
 0x367   : > { %2610 = vst.msk [vmem:[#allocation3 + $0x28] sm:$0xf] %vm2599_vm1, %v2572_v16  ;;  %v3067_v16 = vrot.slane %v3065_v12, 4  ;;  %v3059_v33 = vrot.slane %v3058_v48, 4  ;;  %v3148_v48 = vshrl.u32 %v2997_v44, 16 }
 0x369   : > { %v3064_v35 = vsel %vm4932_vm2, %v3059_v33, %v3063_v61 }
 0x36a   : > { %3483 = vrot.lane.b32.xlu2 %v3416_v34, %s4707_s12  ;;  %2936 = vrot.lane.b32.xlu1 %v2893_v20, %s4711_s25  ;;  %v3068_v34 = vor.u32 %v3067_v16, %v3063_v61  ;;  %v3071_v20 = vshll.u32 %v2987_v23, 16  ;;  %v2894_v61 = vld [vmem:[#allocation2 + $0x74] sm:$0xf]  ;;  %v3530_v16 = vld [vmem:[#allocation2 + $0x44] sm:$0xf] }
 0x36b   : > { %3217 = vrot.lane.b32.xlu0 %v3146_v56, %s4712_s26 }
 0x36c   : > { %v2834_v8 = vpop.permute.xlu2 %2833  ;;  %v2574_v25 = vpop.permute.xlu1 %2573  ;;  %v3069_v40 = vrot.slane %v3068_v34, 4  ;;  %v3073_v55 = vrot.slane %v3071_v20, 5 }
 0x36d   : > { %2874 = vst.msk [vmem:[#allocation3 + $0x20] sm:$0xf] %vm2865_vm11, %v2834_v8  ;;  %v2578_v1 = vpop.permute.xlu0 %2577  ;;  %v3630_v8 = vld [vmem:[#allocation2 + $0x48] sm:$0xf] }
 0x36e   : > { %2611 = vst.msk [vmem:[#allocation3 + $0x2c] sm:$0xf] %vm2599_vm1, %v2574_v25  ;;  %v3696_v25 = vshrl.u32 %v3629_v24, 16  ;;  %v3705_v28 = vshll.u32 %v3630_v8, 16  ;;  %v3074_v63 = vsel %vm4932_vm2, %v3069_v40, %v3073_v55  ;;  %v2895_v40 = vld [vmem:[#allocation2 + $0x78] sm:$0xf] }
 0x36f   : > { %2613 = vst.msk [vmem:[#allocation3 + $0x34] sm:$0xf] %vm2599_vm1, %v2578_v1  ;;  %v3699_v1 = vshll.u32 %v3629_v24, 16 }
 0x370   : > { %v3698_v58 = vrot.slane %v3696_v25, 4  ;;  %v3707_v57 = vrot.slane %v3705_v28, 5  ;;  %v3642_v25 = vld [vmem:[#allocation2 + $0x88] sm:$0xf]  ;;  %v3924_v28 = vld [vmem:[%s6975_s6 + $0x10] sm:$0x3] }
 0x371   : > { %v3701_v13 = vrot.slane %v3699_v1, 5  ;;  %v3279_v1 = vld [vmem:[#allocation2 + $0x80] sm:$0x8]  ;;  %v3801_v55 = vshll.u32 %v3642_v25, 16  ;;  %v3805_v50 = vshrl.u32 %v3642_v25, 16 }
 0x372   : > { %3859 = vrot.lane.b32.xlu2 %v3780_v32, %s4714_s13  ;;  %3481 = vrot.lane.b32.xlu1 %v3407_v19, %s4707_s12  ;;  %v3349_v32 = vor.u32 %v3347_v52, %v3346_v47  ;;  %v2998_v19 = vld [vmem:[#allocation2 + $0x78] sm:$0xf]  ;;  %v3150_v47 = vrot.slane %v3148_v48, 4  ;;  %v3717_v52 = vrot.slane %v3715_v38, 5 }
 0x373   : > { %3578 = vrot.lane.b32.xlu0 %v3536_v11, %s4713_s23  ;;  %v3342_v11 = vrot.slane %v6482_v31, 4  ;;  %v3161_v6 = vshrl.u32 %v2998_v19, 16  ;;  %v3702_v2 = vor.u32 %v3701_v13, %v3698_v58 }
 0x374   : > { %v2840_v26 = vpop.permute.xlu2 %2839  ;;  %v2580_v54 = vpop.permute.xlu1 %2579 }
 0x375   : > { %2877 = vst.msk [vmem:[#allocation3 + $0x2c] sm:$0xf] %vm2865_vm11, %v2840_v26  ;;  %v2818_v0 = vpop.permute.xlu0 %2817  ;;  %v3709_v26 = vshrl.u32 %v3630_v8, 16  ;;  %v3350_v49 = vsel %vm5046_vm5, %v3342_v11, %v3349_v32  ;;  %v3703_v27 = vrot.slane %v3702_v2, 4  ;;  %v3418_v32 = vshrl.u32 %v3279_v1, 16 }
 0x376   : > { %2614 = vst.msk [vmem:[#allocation3 + $0x38] sm:$0xf] %vm2599_vm1, %v2580_v54  ;;  %v1793_v10 = vpop.f32.mrf.mxu2  ;;  %v3281_v11 = vld [vmem:[#allocation2 + $0x88] sm:$0xf]  ;;  %v2988_v2 = vld [vmem:[#allocation2 + $0x44] sm:$0xf] }
 0x377   : > { %2866 = vst.msk [vmem:[#allocation3] sm:$0xf] %vm2865_vm11, %v2818_v0  ;;  %v1794_v41 = vadd.f32 %v4659_v15, %v1793_v10  ;;  %v3157_v0 = vshll.u32 %v2998_v19, 16  ;;  %v3711_v51 = vrot.slane %v3709_v26, 4  ;;  %v3079_v48 = vshll.u32 %v2988_v2, 16 }
 0x379   : > { %v1816_v37 = vmax.f32 %v1794_v41, 0.0  ;;  %v6533_v12 = vrot.slane %v3157_v0, 5  ;;  %v3712_v23 = vor.u32 %v3711_v51, %v3707_v57  ;;  %v6563_v0 = vrot.slane %v3801_v55, 5 }
 0x37a   : > { %2924 = vrot.lane.b32.xlu2 %v2887_v14, %s4711_s25  ;;  %3580 = vrot.lane.b32.xlu1 %v3537_v60, %s4713_s23 }
 0x37b   : > { %3861 = vrot.lane.b32.xlu0 %v3790_v39, %s4714_s13  ;;  %v1898_v54 = vsel %vm6507_vm6, %v1816_v37, 0.0  ;;  %v3163_v39 = vrot.slane %v3161_v6, 4  ;;  %v3807_v6 = vrot.slane %v3805_v50, 4 }
 0x37c   : > { %v2846_v5 = vpop.permute.xlu2 %2845  ;;  %v2820_v62 = vpop.permute.xlu1 %2819  ;;  %v1983_v9 = vpack.c.bf16 %v1898_v54, %v1898_v54  ;;  %v3641_v54 = vld [vmem:[#allocation2 + $0x84] sm:$0xf] }
 0x37d   : > { %2880 = vst.msk [vmem:[#allocation3 + $0x38] sm:$0xf] %vm2865_vm11, %v2846_v5  ;;  %v2824_v4 = vpop.permute.xlu0 %2823  ;;  %v3164_v29 = vor.u32 %v3163_v39, %v6533_v12  ;;  %v3808_v39 = vor.u32 %v3807_v6, %v6563_v0 }
 0x37e   : > { %2867 = vst.msk [vmem:[#allocation3 + $0x4] sm:$0xf] %vm2865_vm11, %v2820_v62  ;;  %v1795_v45 = vpop.f32.mrf.mxu2  ;;  %v3167_v62 = vshll.u32 %v2999_v17, 16 }
 0x37f   : > { %2869 = vst.msk [vmem:[#allocation3 + $0xc] sm:$0xf] %vm2865_vm11, %v2824_v4  ;;  %v1796_v60 = vadd.f32 %v4659_v15, %v1795_v45  ;;  %v3151_v4 = vshll.u32 %v2997_v44, 16  ;;  %v3165_v10 = vrot.slane %v3164_v29, 4  ;;  %v3792_v44 = vshrl.u32 %v3641_v54, 16 }
 0x380   : > { %2004 = vst.msk [vmem:[#allocation2 + $0x94] sm:$0xf] %vm1985_vm12, %v1983_v9  ;;  %v3432_v9 = vshrl.u32 %v3281_v11, 16 }
 0x381   : > { %v1817_v5 = vmax.f32 %v1796_v60, 0.0  ;;  %v3153_v24 = vrot.slane %v3151_v4, 5  ;;  %v3795_v60 = vshll.u32 %v3641_v54, 16 }
 0x382   : > { %3469 = vrot.lane.b32.xlu2 %v3341_v59, %s4707_s12  ;;  %2922 = vrot.lane.b32.xlu1 %v2886_v21, %s4711_s25  ;;  %v3708_v59 = vsel %vm4932_vm2, %v3703_v27, %v3707_v57  ;;  %v3280_v21 = vld [vmem:[#allocation2 + $0x84] sm:$0xf]  ;;  %v3434_v46 = vrot.slane %v3432_v9, 7  ;;  %v3076_v27 = vshrl.u32 %v2988_v2, 16 }
 0x383   : > { %3203 = vrot.lane.b32.xlu0 %v3064_v35, %s4712_s26  ;;  %v1899_v3 = vsel %vm6507_vm6, %v1817_v5, 0.0  ;;  %v3423_v8 = vshrl.u32 %v3280_v21, 16  ;;  %v3154_v15 = vor.u32 %v3153_v24, %v3150_v47  ;;  %v3426_v37 = vshll.u32 %v3280_v21, 16  ;;  %v3538_v57 = vld [vmem:[#allocation2 + $0x84] sm:$0xf] }
 0x384   : > { %v2917_v18 = vpop.permute.xlu2 %2916  ;;  %v2826_v56 = vpop.permute.xlu1 %2825  ;;  %v1984_v33 = vpack.c.bf16 %v1899_v3, %v1899_v3  ;;  %v3435_v5 = vshll.u32 %v3281_v11, 16  ;;  %v4571_v21 = vld [vmem:[%s6975_s6] sm:$0xff]  ;;  %v3078_v47 = vrot.slane %v3076_v27, 4  ;;  %v3081_v24 = vrot.slane %v3079_v48, 5  ;;  %v2889_v27 = vld [vmem:[#allocation2 + $0x48] sm:$0xf] }
 0x385   : > { %2964 = vst.msk [vmem:[#allocation3 + $0x4] sm:$0xf] %vm2962_vm14, %v2917_v18  ;;  %v2830_v42 = vpop.permute.xlu0 %2829  ;;  %v3169_v18 = vrot.slane %v3167_v62, 5  ;;  %v3425_v19 = vrot.slane %v3423_v8, 7  ;;  %v3155_v26 = vrot.slane %v3154_v15, 4  ;;  %v4572_v62 = vld [vmem:[%s6975_s6 + $0x8] sm:$0xff] }
 0x386   : > { %2870 = vst.msk [vmem:[#allocation3 + $0x10] sm:$0xf] %vm2865_vm11, %v2826_v56  ;;  %v3713_v56 = vrot.slane %v3712_v23, 4  ;;  %v3809_v23 = vrot.slane %v3808_v39, 4  ;;  %v3539_v8 = vld [vmem:[#allocation2 + $0x88] sm:$0xf]  ;;  %v3082_v25 = vor.u32 %v3081_v24, %v3078_v47 }
 0x387   : > { %2872 = vst.msk [vmem:[#allocation3 + $0x18] sm:$0xf] %vm2865_vm11, %v2830_v42  ;;  %v3170_v41 = vsel %vm4932_vm2, %v3165_v10, %v3169_v18  ;;  %v3428_v45 = vor.u32 %v3426_v37, %v3425_v19  ;;  %v3160_v17 = vsel %vm4932_vm2, %v3155_v26, %v6533_v12  ;;  %v6592_v15 = vld [vmem:[#allocation2 + $0x54] sm:$0xf]  ;;  %v1930_v26 = vld [vmem:[#allocation2 + $0x90] sm:$0x8] }
 0x388   : > { %2005 = vst.msk [vmem:[#allocation2 + $0x98] sm:$0xf] %vm1985_vm12, %v1984_v33  ;;  %v3718_v42 = vsel %vm4932_vm2, %v3713_v56, %v3717_v52  ;;  %vm4009_vm12 = vcmask 1041408   ;;  %v3430_v33 = vrot.slane %v3425_v19, 4  ;;  %v3272_v52 = vld [vmem:[#allocation2 + $0x58] sm:$0xf] }
 0x389   : > { %v3632_v19 = vld [vmem:[#allocation2 + $0x54] sm:$0xf]  ;;  %v3083_v37 = vrot.slane %v3082_v25, 4  ;;  %v3357_v11 = vshrl.u32 %v6592_v15, 16  ;;  %v3000_v47 = vld [vmem:[#allocation2 + $0x84] sm:$0xf] }
 0x38a   : > { %3568 = vrot.lane.b32.xlu2 %v3531_v7, %s4713_s23  ;;  %3205 = vrot.lane.b32.xlu1 %v3074_v63, %s4712_s26  ;;  %v3978_v7 = vunpack.c.l.b16 %v3924_v28  ;;  %v3720_v9 = vshrl.u32 %v3632_v19, 16  ;;  %v3644_v53 = vld [vmem:[#allocation2 + $0x94] sm:$0xf] }
 0x38b   : > { %3471 = vrot.lane.b32.xlu0 %v3350_v49, %s4707_s12  ;;  %v4499_v49 = vrot.slane %v3418_v32, 11  ;;  %v3359_v22 = vrot.slane %v3357_v11, 7 }
 0x38c   : > { %v3198_v30 = vpop.permute.xlu2 %3197  ;;  %v2832_v14 = vpop.permute.xlu1 %2831 }
 0x38d   : > { %3245 = vst.msk [vmem:[#allocation3 + $0x4] sm:$0xf] %vm3243_vm8, %v3198_v30  ;;  %v2836_v31 = vpop.permute.xlu0 %2835  ;;  %v3643_v30 = vld [vmem:[#allocation2 + $0x8c] sm:$0x1]  ;;  %v3429_v12 = vsel %vm5046_vm5, %v4499_v49, %v3428_v45  ;;  %v3723_v49 = vshll.u32 %v3632_v19, 16 }
 0x38e   : > { %2873 = vst.msk [vmem:[#allocation3 + $0x1c] sm:$0xf] %vm2865_vm11, %v2832_v14  ;;  %v3981_v14 = vpack.c.b16 %v3978_v7, %v3978_v7  ;;  %v3811_v51 = vshll.u32 %v3643_v30, 16  ;;  %v1931_v7 = vsel %vm5865_vm7, 0, %v1930_v26  ;;  %vm3887_vm7 = vcmask 290048  }
 0x38f   : > { %2875 = vst.msk [vmem:[#allocation3 + $0x24] sm:$0xf] %vm2865_vm11, %v2836_v31  ;;  %v3725_v39 = vrot.slane %v3723_v49, 5  ;;  %v3533_v26 = vld [vmem:[#allocation2 + $0x58] sm:$0xf] }
 0x390   : > { %v4011_v31 = vsel %vm4009_vm12, %v3981_v14, 0  ;;  %v3813_v38 = vrot.slane %v3811_v51, 5  ;;  %1932 = vst [vmem:[#allocation2 + $0x90] sm:$0x8] %v1931_v7  ;;  %v3369_v14 = vshll.u32 %v3272_v52, 16 }
 0x391   : > { %4018 = vmatpush.bf16.msra.mxu1 %v4011_v31  ;;  %4575 = vmatpush.bf16.msra.mxu3 %v4011_v31 }
 0x392   : > { %2938 = vrot.lane.b32.xlu2 %v2894_v61, %s4711_s25  ;;  %3566 = vrot.lane.b32.xlu1 %v3530_v16, %s4713_s23  ;;  %v3794_v61 = vrot.slane %v3792_v44, 4  ;;  %v3797_v16 = vrot.slane %v3795_v60, 5  ;;  %v3633_v44 = vld [vmem:[#allocation2 + $0x58] sm:$0xf]  ;;  %v3364_v60 = vrot.slane %v3359_v22, 4 }
 0x393   : > { %3847 = vrot.lane.b32.xlu0 %v3708_v59, %s4714_s13  ;;  %v3437_v59 = vor.u32 %v3435_v5, %v3434_v46  ;;  %v3270_v5 = vld [vmem:[#allocation2 + $0x50] sm:$0x8] }
 0x394   : > { %v6546_v34 = vpop.permute.xlu2 %3558  ;;  %v2838_v20 = vpop.permute.xlu1 %2837  ;;  %v3798_v56 = vor.u32 %v3797_v16, %v3794_v61  ;;  %v3360_v61 = vshll.u32 %v6592_v15, 16  ;;  %v3283_v15 = vld [vmem:[#allocation2 + $0x94] sm:$0xf] }
 0x395   : > { %2876 = vst.msk [vmem:[#allocation3 + $0x28] sm:$0xf] %vm2865_vm11, %v2838_v20  ;;  %v2842_v35 = vpop.permute.xlu0 %2841  ;;  %4019 = vmatpush.bf16.msra.mxu1 %v4572_v62  ;;  %4576 = vmatpush.bf16.msra.mxu3 %v4572_v62  ;;  %v2989_v20 = vld [vmem:[#allocation2 + $0x48] sm:$0xf]  ;;  %v3438_v10 = vsel %vm5046_vm5, %v3430_v33, %v3437_v59  ;;  %v3729_v62 = vshll.u32 %v3633_v44, 16  ;;  %v3445_v19 = vshrl.u32 %v3283_v15, 16 }
 0x396   : > { %2878 = vst.msk [vmem:[#allocation3 + $0x30] sm:$0xf] %vm2865_vm11, %v2842_v35  ;;  %v3814_v35 = vsel %vm4932_vm2, %v3809_v23, %v3813_v38  ;;  %v3085_v18 = vshll.u32 %v2989_v20, 16  ;;  %v3089_v1 = vshrl.u32 %v2989_v20, 16  ;;  %v3799_v32 = vrot.slane %v3798_v56, 4 }
 0x397   : > { %v3731_v38 = vrot.slane %v3729_v62, 5  ;;  %v3362_v20 = vor.u32 %v3360_v61, %v3359_v22  ;;  %v3448_v49 = vshll.u32 %v3283_v15, 16  ;;  %v3284_v22 = vld [vmem:[#allocation2 + $0x98] sm:$0xf]  ;;  %v2896_v62 = vld [vmem:[#allocation2 + $0x84] sm:$0xf] }
 0x398   : > { %v3087_v50 = vrot.slane %v3085_v18, 5  ;;  %v3091_v28 = vrot.slane %v3089_v1, 4  ;;  %v3804_v6 = vsel %vm4932_vm2, %v3799_v32, %v6563_v0  ;;  %v3175_v18 = vshll.u32 %v3000_v47, 16 }
 0x399   : > { %4020 = vmatpush.bf16.msra.mxu1 %v4571_v21  ;;  %4577 = vmatpush.bf16.msra.mxu3 %v4571_v21  ;;  %v3457_v61 = vshll.u32 %v3284_v22, 16 }
 0x39a   : > { %3221 = vrot.lane.b32.xlu2 %v3170_v41, %s4712_s26  ;;  %3849 = vrot.lane.b32.xlu1 %v3718_v42, %s4714_s13  ;;  %v3092_v45 = vor.u32 %v3091_v28, %v3087_v50 }
 0x39b   : > { %2940 = vrot.lane.b32.xlu0 %v2895_v40, %s4711_s25  ;;  %v3366_v40 = vshrl.u32 %v3272_v52, 16 }
 0x39c   : > { %v6560_v58 = vpop.permute.xlu2 %3841  ;;  %v2844_v13 = vpop.permute.xlu1 %2843  ;;  %v3093_v51 = vrot.slane %v3092_v45, 4 }
 0x39d   : > { %2879 = vst.msk [vmem:[#allocation3 + $0x34] sm:$0xf] %vm2865_vm11, %v2844_v13  ;;  %v2848_v63 = vpop.permute.xlu0 %2847  ;;  %v2990_v13 = vld [vmem:[#allocation2 + $0x4c] sm:$0x1]  ;;  %v3368_v54 = vrot.slane %v3366_v40, 7 }
 0x39e   : > { %2881 = vst.msk [vmem:[#allocation3 + $0x3c] sm:$0xf] %vm2865_vm11, %v2848_v63  ;;  %v3088_v63 = vsel %vm4932_vm2, %v3083_v37, %v3087_v50  ;;  %v3095_v30 = vshll.u32 %v2990_v13, 16  ;;  %v3177_v50 = vrot.slane %v3175_v18, 5  ;;  %v3001_v37 = vld [vmem:[#allocation2 + $0x88] sm:$0xf] }
 0x39f   : > { %v3371_v31 = vor.u32 %v3369_v14, %v3368_v54  ;;  %v3282_v13 = vld [vmem:[#allocation2 + $0x90] sm:$0x8]  ;;  %v3181_v7 = vshll.u32 %v3001_v37, 16 }
 0x3a0   : > { %v3097_v46 = vrot.slane %v3095_v30, 5  ;;  %v1962_v30 = vld [vmem:[#allocation2 + $0x9c] sm:$0x1] }
 0x3a2   : > { %3582 = vrot.lane.b32.xlu2 %v3538_v57, %s4713_s23  ;;  %3219 = vrot.lane.b32.xlu1 %v3160_v17, %s4712_s26  ;;  %v3722_v57 = vrot.slane %v3720_v9, 4  ;;  %v3098_v16 = vsel %vm4932_vm2, %v3093_v51, %v3097_v46  ;;  %v3447_v9 = vrot.slane %v3445_v19, 7  ;;  %v3002_v51 = vld [vmem:[#allocation2 + $0x8c] sm:$0x1]  ;;  %v3454_v46 = vshrl.u32 %v3284_v22, 16 }
 0x3a3   : > { %3485 = vrot.lane.b32.xlu0 %v3429_v12, %s4707_s12  ;;  %v3372_v12 = vsel %vm5046_vm5, %v3364_v60, %v3371_v31 }
 0x3a4   : > { %v6578_v4 = vpop.permute.xlu2 %3201  ;;  %v2915_v3 = vpop.permute.xlu1 %2914  ;;  %v3726_v48 = vor.u32 %v3725_v39, %v3722_v57  ;;  %v3450_v31 = vor.u32 %v3448_v49, %v3447_v9  ;;  %v3183_v57 = vrot.slane %v3181_v7, 5 }
 0x3a5   : > { %2963 = vst.msk [vmem:[#allocation3] sm:$0xf] %vm2962_vm14, %v2915_v3  ;;  %v2919_v29 = vpop.permute.xlu0 %2918  ;;  %v3352_v3 = vshrl.u32 %v3270_v5, 16 }
 0x3a6   : > { %2965 = vst.msk [vmem:[#allocation3 + $0x8] sm:$0xf] %vm2962_vm14, %v2919_v29  ;;  %v3733_v29 = vshrl.u32 %v3633_v44, 16  ;;  %v3727_v59 = vrot.slane %v3726_v48, 4  ;;  %v3191_v48 = vshll.u32 %v3002_v51, 16 }
 0x3a7   : > { %v4496_v21 = vrot.slane %v3352_v3, 11  ;;  %v3456_v3 = vrot.slane %v3454_v46, 7 }
 0x3a8   : > { %v3735_v24 = vrot.slane %v3733_v29, 4  ;;  %v3732_v56 = vsel %vm4932_vm2, %v3727_v59, %v3731_v38  ;;  %v3819_v29 = vshll.u32 %v3644_v53, 16 }
 0x3a9   : > { %v3363_v52 = vsel %vm5046_vm5, %v4496_v21, %v3362_v20  ;;  %v3193_v21 = vrot.slane %v3191_v48, 5  ;;  %v3452_v20 = vrot.slane %v3447_v9, 4  ;;  %v3540_v9 = vld [vmem:[#allocation2 + $0x94] sm:$0xf] }
 0x3aa   : > { %3865 = vrot.lane.b32.xlu2 %v3814_v35, %s4714_s13  ;;  %3487 = vrot.lane.b32.xlu1 %v3438_v10, %s4707_s12  ;;  %v3634_v35 = vld [vmem:[#allocation2 + $0x5c] sm:$0x1]  ;;  %v3172_v10 = vshrl.u32 %v3000_v47, 16  ;;  %v3736_v25 = vor.u32 %v3735_v24, %v3731_v38  ;;  %v2992_v38 = vld [vmem:[#allocation2 + $0x58] sm:$0xf]  ;;  %v3459_v47 = vor.u32 %v3457_v61, %v3456_v3 }
 0x3ab   : > { %3584 = vrot.lane.b32.xlu0 %v3539_v8, %s4713_s23  ;;  %v3532_v8 = vld [vmem:[#allocation2 + $0x54] sm:$0xf]  ;;  %v3739_v1 = vshll.u32 %v3634_v35, 16  ;;  %v3645_v24 = vld [vmem:[#allocation2 + $0x98] sm:$0xf]  ;;  %v3109_v18 = vshll.u32 %v2992_v38, 16 }
 0x3ac   : > { %v6594_v41 = vpop.permute.xlu2 %3562  ;;  %v3196_v42 = vpop.permute.xlu1 %3195  ;;  %v3737_v11 = vrot.slane %v3736_v25, 4  ;;  %v3829_v25 = vshrl.u32 %v3645_v24, 16  ;;  %v3460_v15 = vsel %vm5046_vm5, %v3452_v20, %v3459_v47  ;;  %v2891_v61 = vld [vmem:[#allocation2 + $0x58] sm:$0xf] }
 0x3ad   : > { %3244 = vst.msk [vmem:[#allocation3] sm:$0xf] %vm3243_vm8, %v3196_v42  ;;  %v3462_v55 = vpop.permute.xlu0 %3461  ;;  %v3741_v28 = vrot.slane %v3739_v1, 5  ;;  %v3113_v1 = vshrl.u32 %v2992_v38, 16 }
 0x3ae   : > { %3510 = vst.msk [vmem:[#allocation3] sm:$0xf] %vm3509_vm13, %v3462_v55  ;;  %v3174_v55 = vrot.slane %v3172_v10, 4  ;;  %v3821_v10 = vrot.slane %v3819_v29, 5 }
 0x3af   : > { %3607 = vst.msk [vmem:[#allocation3] sm:$0xf] %vm3606_vm0, %v6546_v34  ;;  %v2888_v34 = vld [vmem:[#allocation2 + $0x44] sm:$0xf]  ;;  %v3742_v45 = vsel %vm4932_vm2, %v3737_v11, %v3741_v28  ;;  %v3115_v28 = vrot.slane %v3113_v1, 4 }
 0x3b0   : > { %v3178_v54 = vor.u32 %v3177_v50, %v3174_v55  ;;  %v2993_v55 = vld [vmem:[#allocation2 + $0x5c] sm:$0x1]  ;;  %v6679_v50 = vrot.slane %v3109_v18, 5 }
 0x3b1   : > { %v3119_v7 = vshll.u32 %v2993_v55, 16 }
 0x3b2   : > { %3207 = vrot.lane.b32.xlu2 %v3088_v63, %s4712_s26  ;;  %3863 = vrot.lane.b32.xlu1 %v3804_v6, %s4714_s13  ;;  %v2897_v63 = vld [vmem:[#allocation2 + $0x88] sm:$0xf]  ;;  %v3440_v6 = vshrl.u32 %v3282_v13, 16  ;;  %v3179_v44 = vrot.slane %v3178_v54, 4  ;;  %v3831_v13 = vrot.slane %v3829_v25, 4  ;;  %v3116_v49 = vor.u32 %v3115_v28, %v6679_v50 }
 0x3b3   : > { %2926 = vrot.lane.b32.xlu0 %v2888_v34, %s4711_s25  ;;  %v3185_v34 = vshrl.u32 %v3001_v37, 16  ;;  %v3534_v25 = vld [vmem:[#allocation2 + $0x64] sm:$0xf] }
 0x3b4   : > { %v6611_v2 = vpop.permute.xlu2 %3845  ;;  %v3464_v17 = vpop.permute.xlu1 %3463  ;;  %v4500_v60 = vrot.slane %v3440_v6, 11  ;;  %v2890_v6 = vld [vmem:[#allocation2 + $0x54] sm:$0xf] }
 0x3b5   : > { %3511 = vst.msk [vmem:[#allocation3 + $0x4] sm:$0xf] %vm3509_vm13, %v3464_v17  ;;  %v3561_v0 = vpop.permute.xlu0 %3560  ;;  %v3187_v39 = vrot.slane %v3185_v34, 4 }
 0x3b6   : > { %3608 = vst.msk [vmem:[#allocation3 + $0x4] sm:$0xf] %vm3606_vm0, %v3561_v0  ;;  %v3451_v5 = vsel %vm5046_vm5, %v4500_v60, %v3450_v31  ;;  %v3636_v60 = vld [vmem:[#allocation2 + $0x68] sm:$0xf] }
 0x3b7   : > { %3889 = vst.msk [vmem:[#allocation3 + $0x4] sm:$0xf] %vm3887_vm7, %v6560_v58 }
 0x3ba   : > { %3475 = vrot.lane.b32.xlu2 %v3372_v12, %s4707_s12  ;;  %2928 = vrot.lane.b32.xlu1 %v2889_v27, %s4711_s25  ;;  %v3184_v12 = vsel %vm4932_vm2, %v3179_v44, %v3183_v57  ;;  %v3188_v27 = vor.u32 %v3187_v39, %v3183_v57  ;;  %v3121_v44 = vrot.slane %v3119_v7, 5  ;;  %v3117_v57 = vrot.slane %v3116_v49, 4 }
 0x3bb   : > { %3209 = vrot.lane.b32.xlu0 %v3098_v16, %s4712_s26  ;;  %v3816_v16 = vshrl.u32 %v3644_v53, 16 }
 0x3bc   : > { %v6625_v58 = vpop.permute.xlu2 %3215  ;;  %v3840_v23 = vpop.permute.xlu1 %3839  ;;  %v3189_v59 = vrot.slane %v3188_v27, 4  ;;  %v3757_v27 = vshrl.u32 %v3636_v60, 16  ;;  %v3122_v48 = vsel %vm4932_vm2, %v3117_v57, %v3121_v44 }
 0x3bd   : > { %3888 = vst.msk [vmem:[#allocation3] sm:$0xf] %vm3887_vm7, %v3840_v23  ;;  %v2921_v33 = vpop.permute.xlu0 %2920  ;;  %v3818_v35 = vrot.slane %v3816_v16, 4 }
 0x3be   : > { %2966 = vst.msk [vmem:[#allocation3 + $0xc] sm:$0xf] %vm2962_vm14, %v2921_v33 }
 0x3bf   : > { %3247 = vst.msk [vmem:[#allocation3 + $0xc] sm:$0xf] %vm3243_vm8, %v6578_v4 }
 0x3c2   : > { %3851 = vrot.lane.b32.xlu2 %v3732_v56, %s4714_s13  ;;  %3473 = vrot.lane.b32.xlu1 %v3363_v52, %s4707_s12  ;;  %v3541_v56 = vld [vmem:[#allocation2 + $0x98] sm:$0xf]  ;;  %v3194_v52 = vsel %vm4932_vm2, %v3189_v59, %v3193_v21  ;;  %v3759_v21 = vrot.slane %v3757_v27, 4 }
 0x3c3   : > { %3570 = vrot.lane.b32.xlu0 %v3532_v8, %s4713_s23  ;;  %v3825_v8 = vshll.u32 %v3645_v24, 16  ;;  %v3637_v24 = vld [vmem:[#allocation2 + $0x6c] sm:$0x1] }
 0x3c4   : > { %v6638_v4 = vpop.permute.xlu2 %3483  ;;  %v3200_v42 = vpop.permute.xlu1 %3199  ;;  %v4563_v40 = vld [vmem:[#allocation3] sm:$0xff] }
 0x3c5   : > { %3246 = vst.msk [vmem:[#allocation3 + $0x8] sm:$0xf] %vm3243_vm8, %v3200_v42  ;;  %v3466_v32 = vpop.permute.xlu0 %3465  ;;  %4541 = vmatmul.msk.bf16.vlgmr.msra.gmra.mxu1 %vm3984_vm3, %v4563_v40  ;;  %v3822_v42 = vor.u32 %v3821_v10, %v3818_v35  ;;  %v3827_v11 = vrot.slane %v3825_v8, 5  ;;  %v3763_v8 = vshll.u32 %v3637_v24, 16 }
 0x3c6   : > { %3512 = vst.msk [vmem:[#allocation3 + $0x8] sm:$0xf] %vm3509_vm13, %v3466_v32  ;;  %v2991_v32 = vld [vmem:[#allocation2 + $0x54] sm:$0xf] }
 0x3c7   : > { %3609 = vst.msk [vmem:[#allocation3 + $0x8] sm:$0xf] %vm3606_vm0, %v6594_v41  ;;  %v1963_v41 = vsel %vm5882_vm9, 0, %v1962_v30  ;;  %v3832_v34 = vor.u32 %v3831_v13, %v3827_v11  ;;  %v3103_v30 = vshll.u32 %v2991_v32, 16 }
 0x3c8   : > { %1964 = vst [vmem:[#allocation2 + $0x9c] sm:$0x1] %v1963_v41 }
 0x3c9   : > { %v3833_v39 = vrot.slane %v3832_v34, 4  ;;  %v3105_v46 = vrot.slane %v3103_v30, 5  ;;  %v3535_v34 = vld [vmem:[#allocation2 + $0x68] sm:$0xf] }
 0x3ca   : > { %2944 = vrot.lane.b32.xlu2 %v2897_v63, %s4711_s25  ;;  %3572 = vrot.lane.b32.xlu1 %v3533_v26, %s4713_s23  ;;  %v3823_v26 = vrot.slane %v3822_v42, 4  ;;  %v3100_v63 = vshrl.u32 %v2991_v32, 16 }
 0x3cb   : > { %3853 = vrot.lane.b32.xlu0 %v3742_v45, %s4714_s13 }
 0x3cc   : > { %v6652_v14 = vpop.permute.xlu2 %3859  ;;  %v3468_v17 = vpop.permute.xlu1 %3467  ;;  %v3828_v22 = vsel %vm4932_vm2, %v3823_v26, %v3827_v11  ;;  %v3765_v11 = vrot.slane %v3763_v8, 5 }
 0x3cd   : > { %3513 = vst.msk [vmem:[#allocation3 + $0xc] sm:$0xf] %vm3509_vm13, %v3468_v17  ;;  %v3565_v0 = vpop.permute.xlu0 %3564 }
 0x3ce   : > { %3610 = vst.msk [vmem:[#allocation3 + $0xc] sm:$0xf] %vm3606_vm0, %v3565_v0  ;;  %v3102_v0 = vrot.slane %v3100_v63, 4 }
 0x3cf   : > { %3891 = vst.msk [vmem:[#allocation3 + $0xc] sm:$0xf] %vm3887_vm7, %v6611_v2  ;;  %v3646_v54 = vld [vmem:[#allocation2 + $0x9c] sm:$0x1] }
 0x3d0   : > { %v3835_v45 = vshll.u32 %v3646_v54, 16  ;;  %v3106_v16 = vor.u32 %v3105_v46, %v3102_v0 }
 0x3d2   : > { %3489 = vrot.lane.b32.xlu2 %v3451_v5, %s4707_s12  ;;  %2942 = vrot.lane.b32.xlu1 %v2896_v62, %s4711_s25  ;;  %v3837_v51 = vrot.slane %v3835_v45, 5  ;;  %v3273_v5 = vld [vmem:[#allocation2 + $0x60] sm:$0x8]  ;;  %v4715_v62 = vmov 0   ;;  %v3107_v47 = vrot.slane %v3106_v16, 4 }
 0x3d3   : > { %3223 = vrot.lane.b32.xlu0 %v3184_v12, %s4712_s26  ;;  %4638 = vset.pattern.permute.xlu1 %v4715_v62  ;;  %v3753_v12 = vshll.u32 %v3636_v60, 16  ;;  %v3374_v29 = vshrl.u32 %v3273_v5, 16 }
 0x3d4   : > { %v2925_v2 = vpop.permute.xlu2 %2924  ;;  %v3844_v23 = vpop.permute.xlu1 %3843  ;;  %4637 = vset.pattern.permute.xlu0 %v4715_v62  ;;  %v3838_v3 = vsel %vm4932_vm2, %v3833_v39, %v3837_v51  ;;  %v3112_v1 = vsel %vm4932_vm2, %v3107_v47, %v6679_v50 }
 0x3d5   : > { %2968 = vst.msk [vmem:[#allocation3 + $0x14] sm:$0xf] %vm2962_vm14, %v2925_v2  ;;  %v2935_v33 = vpop.permute.xlu0 %2934  ;;  %v3755_v59 = vrot.slane %v3753_v12, 5  ;;  %v4497_v10 = vrot.slane %v3374_v29, 11 }
 0x3d6   : > { %3890 = vst.msk [vmem:[#allocation3 + $0x8] sm:$0xf] %vm3887_vm7, %v3844_v23  ;;  %v3275_v23 = vld [vmem:[#allocation2 + $0x68] sm:$0xf] }
 0x3d7   : > { %2973 = vst.msk [vmem:[#allocation3 + $0x28] sm:$0xf] %vm2962_vm14, %v2935_v33  ;;  %v3388_v35 = vshrl.u32 %v3275_v23, 16  ;;  %v3391_v32 = vshll.u32 %v3275_v23, 16 }
 0x3d8   : > { %3254 = vst.msk [vmem:[#allocation3 + $0x28] sm:$0xf] %vm3243_vm8, %v6625_v58 }
 0x3da   : > { %3588 = vrot.lane.b32.xlu2 %v3541_v56, %s4713_s23  ;;  %3225 = vrot.lane.b32.xlu1 %v3194_v52, %s4712_s26  ;;  %v3635_v56 = vld [vmem:[#allocation2 + $0x64] sm:$0xf]  ;;  %v3760_v52 = vor.u32 %v3759_v21, %v3755_v59  ;;  %v6774_v21 = vld [vmem:[%s6976_s7] ss:$0 sm:$0xff] }
 0x3db   : > { %3491 = vrot.lane.b32.xlu0 %v3460_v15, %s4707_s12  ;;  %v3390_v15 = vrot.slane %v3388_v35, 7  ;;  %v3744_v42 = vshrl.u32 %v3635_v56, 16 }
 0x3dc   : > { %v6677_v40 = vpop.permute.xlu2 %3469  ;;  %v2937_v58 = vpop.permute.xlu1 %2936  ;;  %v3761_v13 = vrot.slane %v3760_v52, 4 }
 0x3dd   : > { %2974 = vst.msk [vmem:[#allocation3 + $0x2c] sm:$0xf] %vm2962_vm14, %v2937_v58  ;;  %v3218_v19 = vpop.permute.xlu0 %3217  ;;  %v4564_v37 = vld [vmem:[#allocation3 + $0x8] sm:$0xff]  ;;  %v3747_v58 = vshll.u32 %v3635_v56, 16  ;;  %v3393_v26 = vor.u32 %v3391_v32, %v3390_v15  ;;  %v3746_v54 = vrot.slane %v3744_v42, 4 }
 0x3de   : > { %3255 = vst.msk [vmem:[#allocation3 + $0x2c] sm:$0xf] %vm3243_vm8, %v3218_v19  ;;  %4542 = vmatmul.msk.bf16.gmra.mxu1 %vm3984_vm3, %v4564_v37 }
 0x3df   : > { %3521 = vst.msk [vmem:[#allocation3 + $0x2c] sm:$0xf] %vm3509_vm13, %v6638_v4  ;;  %v3274_v4 = vld [vmem:[#allocation2 + $0x64] sm:$0xf]  ;;  %v3749_v7 = vrot.slane %v3747_v58, 5 }
 0x3e0   : > { %v3379_v53 = vshrl.u32 %v3274_v4, 16  ;;  %v3382_v2 = vshll.u32 %v3274_v4, 16 }
 0x3e1   : > { %v3750_v49 = vor.u32 %v3749_v7, %v3746_v54 }
 0x3e2   : > { %2930 = vrot.lane.b32.xlu2 %v2890_v6, %s4711_s25  ;;  %3586 = vrot.lane.b32.xlu1 %v3540_v9, %s4713_s23  ;;  %v3766_v6 = vsel %vm4932_vm2, %v3761_v13, %v3765_v11 }
 0x3e3   : > { %3867 = vrot.lane.b32.xlu0 %v3828_v22, %s4714_s13  ;;  %v3751_v22 = vrot.slane %v3750_v49, 4 }
 0x3e4   : > { %v6692_v41 = vpop.permute.xlu2 %3568  ;;  %v3482_v17 = vpop.permute.xlu1 %3481 }
 0x3e5   : > { %3520 = vst.msk [vmem:[#allocation3 + $0x28] sm:$0xf] %vm3509_vm13, %v3482_v17  ;;  %v3579_v31 = vpop.permute.xlu0 %3578  ;;  %v3756_v4 = vsel %vm4932_vm2, %v3751_v22, %v3755_v59  ;;  %vm4236_vm2 = vcmask 31744  }
 0x3e6   : > { %3617 = vst.msk [vmem:[#allocation3 + $0x28] sm:$0xf] %vm3606_vm0, %v3579_v31 }
 0x3e7   : > { %3898 = vst.msk [vmem:[#allocation3 + $0x28] sm:$0xf] %vm3887_vm7, %v6652_v14  ;;  %v3381_v14 = vrot.slane %v3379_v53, 7 }
 0x3e9   : > { %v3384_v18 = vor.u32 %v3382_v2, %v3381_v14  ;;  %v3386_v28 = vrot.slane %v3381_v14, 4 }
 0x3ea   : > { %3213 = vrot.lane.b32.xlu2 %v3122_v48, %s4712_s26  ;;  %3869 = vrot.lane.b32.xlu1 %v3838_v3, %s4714_s13 }
 0x3eb   : > { %2932 = vrot.lane.b32.xlu0 %v2891_v61, %s4711_s25  ;;  %v3385_v55 = vsel %vm5046_vm5, %v4497_v10, %v3384_v18  ;;  %v3394_v9 = vsel %vm5046_vm5, %v3386_v28, %v3393_v26 }
 0x3ec   : > { %v2939_v38 = vpop.permute.xlu2 %2938  ;;  %v3581_v33 = vpop.permute.xlu1 %3580 }
 0x3ed   : > { %2975 = vst.msk [vmem:[#allocation3 + $0x30] sm:$0xf] %vm2962_vm14, %v2939_v38  ;;  %v3862_v20 = vpop.permute.xlu0 %3861 }
 0x3ee   : > { %3618 = vst.msk [vmem:[#allocation3 + $0x2c] sm:$0xf] %vm3606_vm0, %v3581_v33 }
 0x3ef   : > { %3899 = vst.msk [vmem:[#allocation3 + $0x2c] sm:$0xf] %vm3887_vm7, %v3862_v20 }
 0x3f2   : > { %3574 = vrot.lane.b32.xlu2 %v3534_v25, %s4713_s23  ;;  %3211 = vrot.lane.b32.xlu1 %v3112_v1, %s4712_s26 }
 0x3f3   : > { %3477 = vrot.lane.b32.xlu0 %v3385_v55, %s4707_s12 }
 0x3f4   : > { %v3222_v19 = vpop.permute.xlu2 %3221  ;;  %v2923_v37 = vpop.permute.xlu1 %2922 }
 0x3f5   : > { %2967 = vst.msk [vmem:[#allocation3 + $0x10] sm:$0xf] %vm2962_vm14, %v2923_v37  ;;  %v3204_v50 = vpop.permute.xlu0 %3203 }
 0x3f6   : > { %3248 = vst.msk [vmem:[#allocation3 + $0x10] sm:$0xf] %vm3243_vm8, %v3204_v50  ;;  %v4568_v63 = vld [vmem:[#allocation3 + $0x28] sm:$0xff] }
 0x3f7   : > { %3514 = vst.msk [vmem:[#allocation3 + $0x10] sm:$0xf] %vm3509_vm13, %v6677_v40  ;;  %4546 = vmatmul.msk.bf16.vlgmr.msra.gmra.mxu3 %vm3984_vm3, %v4568_v63 }
 0x3fa   : > { %3857 = vrot.lane.b32.xlu2 %v3766_v6, %s4714_s13  ;;  %3479 = vrot.lane.b32.xlu1 %v3394_v9, %s4707_s12 }
 0x3fb   : > { %3576 = vrot.lane.b32.xlu0 %v3535_v34, %s4713_s23 }
 0x3fc   : > { %v3583_v45 = vpop.permute.xlu2 %3582  ;;  %v3206_v40 = vpop.permute.xlu1 %3205 }
 0x3fd   : > { %3249 = vst.msk [vmem:[#allocation3 + $0x14] sm:$0xf] %vm3243_vm8, %v3206_v40  ;;  %v3472_v30 = vpop.permute.xlu0 %3471 }
 0x3fe   : > { %3515 = vst.msk [vmem:[#allocation3 + $0x14] sm:$0xf] %vm3509_vm13, %v3472_v30 }
 0x3ff   : > { %3612 = vst.msk [vmem:[#allocation3 + $0x14] sm:$0xf] %vm3606_vm0, %v6692_v41  ;;  %v4641_v41 = vld [vmem:[%s400_s22] ss:$0 sm:$0xff]  ;;  %s4398_s22 = sshll.u32 %s7091_s28, 5 }
 0x400   : > { %s382_s27 = sadd.s32 %s4398_s22, %s4397_s21 }
 0x401   : > { %s4399_s24 = sshll.u32 %s382_s27, 3 }
 0x402   : > { %3855 = vrot.lane.b32.xlu1 %v3756_v4, %s4714_s13  ;;  %s6820_s16 = scalar_lea.vmem %s6969_s0, %s4399_s24  ;;  %s6840_s17 = scalar_lea.vmem %s6977_s8, %s4399_s24 }
 0x403   : > { %4082 = vperm.xlu0 %4637, %v4640_v36  }
 0x404   : > { %v3866_v17 = vpop.permute.xlu2 %3865  ;;  %v3567_v44 = vpop.permute.xlu1 %3566 }
 0x405   : > { %3611 = vst.msk [vmem:[#allocation3 + $0x10] sm:$0xf] %vm3606_vm0, %v3567_v44  ;;  %v3848_v0 = vpop.permute.xlu0 %3847 }
 0x406   : > { %3892 = vst.msk [vmem:[#allocation3 + $0x10] sm:$0xf] %vm3887_vm7, %v3848_v0 }
 0x40a   : > { %4105 = vperm.xlu1 %4638, %v4641_v41  }
 0x40c   : > { %v3208_v60 = vpop.permute.xlu2 %3207  ;;  %v3850_v31 = vpop.permute.xlu1 %3849 }
 0x40d   : > { %3893 = vst.msk [vmem:[#allocation3 + $0x14] sm:$0xf] %vm3887_vm7, %v3850_v31  ;;  %v2941_v43 = vpop.permute.xlu0 %2940 }
 0x40e   : > { %2976 = vst.msk [vmem:[#allocation3 + $0x34] sm:$0xf] %vm2962_vm14, %v2941_v43 }
 0x40f   : > { %3257 = vst.msk [vmem:[#allocation3 + $0x34] sm:$0xf] %vm3243_vm8, %v3222_v19 }
 0x414   : > { %v3476_v57 = vpop.permute.xlu2 %3475  ;;  %v3220_v39 = vpop.permute.xlu1 %3219  ;;  %v4565_v51 = vld [vmem:[#allocation3 + $0x10] sm:$0xff] }
 0x415   : > { %3256 = vst.msk [vmem:[#allocation3 + $0x30] sm:$0xf] %vm3243_vm8, %v3220_v39  ;;  %v3486_v46 = vpop.permute.xlu0 %3485  ;;  %4543 = vmatmul.msk.bf16.gmra.mxu1 %vm3984_vm3, %v4565_v51 }
 0x416   : > { %3522 = vst.msk [vmem:[#allocation3 + $0x30] sm:$0xf] %vm3509_vm13, %v3486_v46 }
 0x417   : > { %3619 = vst.msk [vmem:[#allocation3 + $0x30] sm:$0xf] %vm3606_vm0, %v3583_v45  ;;  %v4062_v45 = vld [vmem:[%s6820_s16] sm:$0xff] }
 0x41c   : > { %v3852_v53 = vpop.permute.xlu2 %3851  ;;  %v3488_v5 = vpop.permute.xlu1 %3487 }
 0x41d   : > { %3523 = vst.msk [vmem:[#allocation3 + $0x34] sm:$0xf] %vm3509_vm13, %v3488_v5  ;;  %v3585_v62 = vpop.permute.xlu0 %3584 }
 0x41e   : > { %3620 = vst.msk [vmem:[#allocation3 + $0x34] sm:$0xf] %vm3606_vm0, %v3585_v62 }
 0x41f   : > { %3901 = vst.msk [vmem:[#allocation3 + $0x34] sm:$0xf] %vm3887_vm7, %v3866_v17 }
 0x424   : > { %v2945_v12 = vpop.permute.xlu2 %2944  ;;  %v3864_v27 = vpop.permute.xlu1 %3863 }
 0x425   : > { %2978 = vst.msk [vmem:[#allocation3 + $0x3c] sm:$0xf] %vm2962_vm14, %v2945_v12  ;;  %v2927_v48 = vpop.permute.xlu0 %2926 }
 0x426   : > { %3900 = vst.msk [vmem:[#allocation3 + $0x30] sm:$0xf] %vm3887_vm7, %v3864_v27 }
 0x427   : > { %2969 = vst.msk [vmem:[#allocation3 + $0x18] sm:$0xf] %vm2962_vm14, %v2927_v48 }
 0x428   : > { %3250 = vst.msk [vmem:[#allocation3 + $0x18] sm:$0xf] %vm3243_vm8, %v3208_v60  ;;  %v4064_v60 = vld [vmem:[%s6820_s16 + $0x10] sm:$0xff] }
 0x42c   : > { %v3490_v3 = vpop.permute.xlu2 %3489  ;;  %v2929_v61 = vpop.permute.xlu1 %2928 }
 0x42d   : > { %2970 = vst.msk [vmem:[#allocation3 + $0x1c] sm:$0xf] %vm2962_vm14, %v2929_v61  ;;  %v3210_v16 = vpop.permute.xlu0 %3209  ;;  %v4569_v29 = vld [vmem:[#allocation3 + $0x30] sm:$0xff] }
 0x42e   : > { %3251 = vst.msk [vmem:[#allocation3 + $0x1c] sm:$0xf] %vm3243_vm8, %v3210_v16  ;;  %4547 = vmatmul.msk.bf16.gmra.mxu3 %vm3984_vm3, %v4569_v29 }
 0x42f   : > { %3517 = vst.msk [vmem:[#allocation3 + $0x1c] sm:$0xf] %vm3509_vm13, %v3476_v57  ;;  %v4063_v57 = vld [vmem:[%s6820_s16 + $0x8] sm:$0xff] }
 0x434   : > { %v3589_v14 = vpop.permute.xlu2 %3588  ;;  %v3474_v2 = vpop.permute.xlu1 %3473 }
 0x435   : > { %3516 = vst.msk [vmem:[#allocation3 + $0x18] sm:$0xf] %vm3509_vm13, %v3474_v2  ;;  %v3571_v23 = vpop.permute.xlu0 %3570 }
 0x436   : > { %3613 = vst.msk [vmem:[#allocation3 + $0x18] sm:$0xf] %vm3606_vm0, %v3571_v23  ;;  %v4065_v23 = vld [vmem:[%s6820_s16 + $0x18] sm:$0xff] }
 0x437   : > { %3894 = vst.msk [vmem:[#allocation3 + $0x18] sm:$0xf] %vm3887_vm7, %v3852_v53 }
 0x43c   : > { %v2931_v38 = vpop.permute.xlu2 %2930  ;;  %v3573_v33 = vpop.permute.xlu1 %3572 }
 0x43d   : > { %2971 = vst.msk [vmem:[#allocation3 + $0x20] sm:$0xf] %vm2962_vm14, %v2931_v38  ;;  %v3854_v59 = vpop.permute.xlu0 %3853 }
 0x43e   : > { %3614 = vst.msk [vmem:[#allocation3 + $0x1c] sm:$0xf] %vm3606_vm0, %v3573_v33 }
 0x43f   : > { %3895 = vst.msk [vmem:[#allocation3 + $0x1c] sm:$0xf] %vm3887_vm7, %v3854_v59 }
 0x442   : > { %v4022_v20 = vpop.f32.mrf.mxu1 }
 0x443   : > { %v6777_v24 = vadd.f32 %v6774_v21, %v4022_v20 }
 0x444   : > { %v2943_v47 = vpop.permute.xlu1 %2942  ;;  %v3214_v15 = vpop.permute.xlu2 %3213 }
 0x445   : > { %2977 = vst.msk [vmem:[#allocation3 + $0x38] sm:$0xf] %vm2962_vm14, %v2943_v47  ;;  %v3224_v35 = vpop.permute.xlu0 %3223  ;;  %4172 = vrot.lane.b32.xlu2 %v6777_v24, %s4716_s19  ;;  %v4124_v17 = vadd.f32 1.0, %v6777_v24 }
 0x446   : > { %3258 = vst.msk [vmem:[#allocation3 + $0x38] sm:$0xf] %vm3243_vm8, %v3224_v35  ;;  %v4566_v10 = vld [vmem:[#allocation3 + $0x18] sm:$0xff] }
 0x447   : > { %3524 = vst.msk [vmem:[#allocation3 + $0x38] sm:$0xf] %vm3509_vm13, %v3490_v3  ;;  %4544 = vmatmul.msk.bf16.gmra.mxu1 %vm3984_vm3, %v4566_v10 }
 0x44a   : > { %v4024_v18 = vpop.f32.mrf.mxu1 }
 0x44b   : > { %v6786_v52 = vadd.f32 %v6774_v21, %v4024_v18 }
 0x44c   : > { %v3226_v56 = vpop.permute.xlu1 %3225  ;;  %v3575_v19 = vpop.permute.xlu2 %3574 }
 0x44d   : > { %3259 = vst.msk [vmem:[#allocation3 + $0x3c] sm:$0xf] %vm3243_vm8, %v3226_v56  ;;  %v3492_v8 = vpop.permute.xlu0 %3491  ;;  %4174 = vrot.lane.b32.xlu1 %v6786_v52, %s4716_s19  ;;  %v4125_v12 = vadd.f32 1.0, %v6786_v52 }
 0x44e   : > { %3525 = vst.msk [vmem:[#allocation3 + $0x3c] sm:$0xf] %vm3509_vm13, %v3492_v8  ;;  %v4067_v8 = vld [vmem:[%s6820_s16 + $0x28] sm:$0xff] }
 0x44f   : > { %3622 = vst.msk [vmem:[#allocation3 + $0x3c] sm:$0xf] %vm3606_vm0, %v3589_v14 }
 0x454   : > { %v3587_v25 = vpop.permute.xlu1 %3586  ;;  %v3858_v7 = vpop.permute.xlu2 %3857 }
 0x455   : > { %3621 = vst.msk [vmem:[#allocation3 + $0x38] sm:$0xf] %vm3606_vm0, %v3587_v25  ;;  %v3868_v1 = vpop.permute.xlu0 %3867 }
 0x456   : > { %3902 = vst.msk [vmem:[#allocation3 + $0x38] sm:$0xf] %vm3887_vm7, %v3868_v1 }
 0x45b   : > { %v4027_v58 = vpop.f32.mrf.mxu1 }
 0x45c   : > { %v3870_v42 = vpop.permute.xlu1 %3869  ;;  %v4028_v32 = vadd.f32 %v6774_v21, %v4027_v58 }
 0x45d   : > { %3903 = vst.msk [vmem:[#allocation3 + $0x3c] sm:$0xf] %vm3887_vm7, %v3870_v42  ;;  %v2933_v55 = vpop.permute.xlu0 %2932 }
 0x45e   : > { %2972 = vst.msk [vmem:[#allocation3 + $0x24] sm:$0xf] %vm2962_vm14, %v2933_v55  ;;  %4176 = vrot.lane.b32.xlu2 %v4028_v32, %s4716_s19  ;;  %v4126_v39 = vadd.f32 1.0, %v4028_v32 }
 0x45f   : > { %3253 = vst.msk [vmem:[#allocation3 + $0x24] sm:$0xf] %vm3243_vm8, %v3214_v15 }
 0x463   : > { %v4029_v11 = vpop.f32.mrf.mxu1 }
 0x464   : > { %v3212_v37 = vpop.permute.xlu1 %3211  ;;  %v4570_v28 = vld [vmem:[#allocation3 + $0x38] sm:$0xff]  ;;  %v6802_v13 = vadd.f32 %v6774_v21, %v4029_v11 }
 0x465   : > { %3252 = vst.msk [vmem:[#allocation3 + $0x20] sm:$0xf] %vm3243_vm8, %v3212_v37  ;;  %v3478_v50 = vpop.permute.xlu0 %3477  ;;  %4548 = vmatmul.msk.bf16.gmra.mxu3 %vm3984_vm3, %v4570_v28  ;;  %v4066_v37 = vld [vmem:[%s6820_s16 + $0x20] sm:$0xff] }
 0x466   : > { %3518 = vst.msk [vmem:[#allocation3 + $0x20] sm:$0xf] %vm3509_vm13, %v3478_v50  ;;  %4178 = vrot.lane.b32.xlu0 %v6802_v13, %s4716_s19  ;;  %v4127_v47 = vadd.f32 1.0, %v6802_v13 }
 0x467   : > { %3615 = vst.msk [vmem:[#allocation3 + $0x20] sm:$0xf] %vm3606_vm0, %v3575_v19 }
 0x46c   : > { %v3480_v26 = vpop.permute.xlu1 %3479 }
 0x46d   : > { %3519 = vst.msk [vmem:[#allocation3 + $0x24] sm:$0xf] %vm3509_vm13, %v3480_v26  ;;  %v3577_v54 = vpop.permute.xlu0 %3576 }
 0x46e   : > { %3616 = vst.msk [vmem:[#allocation3 + $0x24] sm:$0xf] %vm3606_vm0, %v3577_v54 }
 0x46f   : > { %3897 = vst.msk [vmem:[#allocation3 + $0x24] sm:$0xf] %vm3887_vm7, %v3858_v7 }
 0x474   : > { %v3856_v63 = vpop.permute.xlu1 %3855 }
 0x475   : > { %3896 = vst.msk [vmem:[#allocation3 + $0x20] sm:$0xf] %vm3887_vm7, %v3856_v63  ;;  %v6822_v49 = vpop.permute.xlu0 %4082 }
 0x476   : > { %v4085_v40 = vsub.f32 %v4062_v45, %v6822_v49  ;;  %v4087_v31 = vsub.f32 %v4064_v60, %v6822_v49  ;;  %v4086_v51 = vsub.f32 %v4063_v57, %v6822_v49  ;;  %v4088_v33 = vsub.f32 %v4065_v23, %v6822_v49 }
 0x477   : > { %v4090_v25 = vsub.f32 %v4067_v8, %v6822_v49  ;;  %v4089_v11 = vsub.f32 %v4066_v37, %v6822_v49 }
 0x47a   : > { %v4047_v27 = vpop.f32.mrf.mxu3 }
 0x47b   : > { %v4048_v24 = vadd.f32 %v6774_v21, %v4047_v27  ;;  %v4075_v27 = vld [vmem:[%s6820_s16 + $0x68] sm:$0xff] }
 0x47c   : > { %v4567_v6 = vld [vmem:[#allocation3 + $0x20] sm:$0xff]  ;;  %v6831_v30 = vpop.permute.xlu1 %4105 }
 0x47d   : > { %4545 = vmatmul.msk.bf16.gmra.mxu1 %vm3984_vm3, %v4567_v6  ;;  %v4108_v36 = vmul.f32 %v6831_v30, %v4085_v40  ;;  %v4110_v43 = vmul.f32 %v6831_v30, %v4087_v31  ;;  %v4109_v62 = vmul.f32 %v6831_v30, %v4086_v51  ;;  %v4111_v20 = vmul.f32 %v6831_v30, %v4088_v33 }
 0x47e   : > { %v4113_v15 = vmul.f32 %v6831_v30, %v4090_v25  ;;  %v4112_v13 = vmul.f32 %v6831_v30, %v4089_v11  ;;  %v4076_v25 = vld [vmem:[%s6820_s16 + $0x70] sm:$0xff] }
 0x47f   : > { %v4140_v44 = vmul.f32 %v4124_v17, %v4108_v36  ;;  %v4142_v46 = vmul.f32 %v4126_v39, %v4110_v43  ;;  %v4141_v48 = vmul.f32 %v4125_v12, %v4109_v62  ;;  %v4143_v35 = vmul.f32 %v4127_v47, %v4111_v20  ;;  %v4068_v36 = vld [vmem:[%s6820_s16 + $0x30] sm:$0xff] }
 0x480   : > { %v4072_v39 = vld [vmem:[%s6820_s16 + $0x50] sm:$0xff]  ;;  %v4134_v62 = vadd.f32 1.0, %v4048_v24 }
 0x482   : > { %v4049_v14 = vpop.f32.mrf.mxu3 }
 0x483   : > { %v4050_v26 = vadd.f32 %v6774_v21, %v4049_v14 }
 0x492   : > { %v4032_v9 = vpop.f32.mrf.mxu1 }
 0x493   : > { %v6825_v34 = vadd.f32 %v6774_v21, %v4032_v9 }
 0x495   : > { %4180 = vrot.lane.b32.xlu1 %v6825_v34, %s4716_s19  ;;  %v4128_v28 = vadd.f32 1.0, %v6825_v34 }
 0x497   : > { %v4144_v63 = vmul.f32 %v4128_v28, %v4112_v13  ;;  %v4071_v28 = vld [vmem:[%s6820_s16 + $0x48] sm:$0xff] }
 0x49a   : > { %v4034_v22 = vpop.f32.mrf.mxu1 }
 0x49b   : > { %v4035_v4 = vadd.f32 %v6774_v21, %v4034_v22 }
 0x49d   : > { %4182 = vrot.lane.b32.xlu2 %v4035_v4, %s4716_s19  ;;  %v4129_v1 = vadd.f32 1.0, %v4035_v4  ;;  %v4091_v4 = vsub.f32 %v4068_v36, %v6822_v49 }
 0x49f   : > { %v4173_v0 = vpop.permute.xlu2 %4172  ;;  %v4145_v42 = vmul.f32 %v4129_v1, %v4113_v15  ;;  %v4099_v15 = vsub.f32 %v4076_v25, %v6822_v49 }
 0x4a0   : > { %v4220_v41 = vadd.f32 %v4173_v0, %v4140_v44  ;;  %v4114_v44 = vmul.f32 %v6831_v30, %v4091_v4  ;;  %v4069_v0 = vld [vmem:[%s6820_s16 + $0x38] sm:$0xff] }
 0x4a1   : > { %v4092_v60 = vsub.f32 %v4069_v0, %v6822_v49  ;;  %v4077_v4 = vld [vmem:[%s6820_s16 + $0x78] sm:$0xff] }
 0x4a2   : > { %4237 = vst.msk [vmem:[%s6840_s17] sm:$0xff] %vm4236_vm2, %v4220_v41 }
 0x4b1   : > { %v4052_v59 = vpop.f32.mrf.mxu3 }
 0x4b2   : > { %v6890_v34 = vadd.f32 %v6774_v21, %v4052_v59 }
 0x4b8   : > { %v4177_v53 = vpop.permute.xlu2 %4176 }
 0x4b9   : > { %v4222_v5 = vadd.f32 %v4177_v53, %v4142_v46  ;;  %v4054_v56 = vpop.f32.mrf.mxu3  ;;  %v4095_v46 = vsub.f32 %v4072_v39, %v6822_v49 }
 0x4ba   : > { %v4055_v52 = vadd.f32 %v6774_v21, %v4054_v56 }
 0x4bb   : > { %4239 = vst.msk [vmem:[%s6840_s17 + $0x10] sm:$0xff] %vm4236_vm2, %v4222_v5  ;;  %v4118_v12 = vmul.f32 %v6831_v30, %v4095_v46 }
 0x4bc   : > { %v4137_v14 = vadd.f32 1.0, %v4055_v52 }
 0x4bf   : > { %v4175_v3 = vpop.permute.xlu1 %4174 }
 0x4c0   : > { %v4221_v61 = vadd.f32 %v4175_v3, %v4141_v48  ;;  %v4150_v48 = vmul.f32 %v4134_v62, %v4118_v12  ;;  %v4098_v3 = vsub.f32 %v4075_v27, %v6822_v49 }
 0x4c2   : > { %4238 = vst.msk [vmem:[%s6840_s17 + $0x8] sm:$0xff] %vm4236_vm2, %v4221_v61 }
 0x4c4   : > { %v4037_v16 = vpop.f32.mrf.mxu1 }
 0x4c5   : > { %v4038_v29 = vadd.f32 %v6774_v21, %v4037_v16 }
 0x4c7   : > { %4184 = vrot.lane.b32.xlu0 %v4038_v29, %s4716_s19  ;;  %v4130_v17 = vadd.f32 1.0, %v4038_v29  ;;  %v4070_v29 = vld [vmem:[%s6820_s16 + $0x40] sm:$0xff] }
 0x4c8   : > { %v4093_v23 = vsub.f32 %v4070_v29, %v6822_v49 }
 0x4c9   : > { %v4146_v41 = vmul.f32 %v4130_v17, %v4114_v44 }
 0x4ca   : > { %v4116_v47 = vmul.f32 %v6831_v30, %v4093_v23 }
 0x4cc   : > { %v4039_v2 = vpop.f32.mrf.mxu1 }
 0x4cd   : > { %v4040_v38 = vadd.f32 %v6774_v21, %v4039_v2  ;;  %v4121_v2 = vmul.f32 %v6831_v30, %v4098_v3 }
 0x4cf   : > { %4186 = vrot.lane.b32.xlu1 %v4040_v38, %s4716_s19  ;;  %v4131_v57 = vadd.f32 1.0, %v4040_v38  ;;  %v4153_v38 = vmul.f32 %v4137_v14, %v4121_v2 }
 0x4d7   : > { %4192 = vrot.lane.b32.xlu1 %v4048_v24, %s4716_s19  ;;  %v4073_v24 = vld [vmem:[%s6820_s16 + $0x58] sm:$0xff] }
 0x4d8   : > { %v4179_v10 = vpop.permute.xlu0 %4178 }
 0x4d9   : > { %v4223_v18 = vadd.f32 %v4179_v10, %v4143_v35  ;;  %v4096_v10 = vsub.f32 %v4073_v24, %v6822_v49 }
 0x4db   : > { %4240 = vst.msk [vmem:[%s6840_s17 + $0x18] sm:$0xff] %vm4236_vm2, %v4223_v18  ;;  %v4119_v8 = vmul.f32 %v6831_v30, %v4096_v10 }
 0x4df   : > { %4198 = vrot.lane.b32.xlu1 %v4055_v52, %s4716_s19  ;;  %v4135_v52 = vadd.f32 1.0, %v4050_v26 }
 0x4e1   : > { %v4151_v1 = vmul.f32 %v4135_v52, %v4119_v8 }
 0x4e8   : > { %v4057_v7 = vpop.f32.mrf.mxu3 }
 0x4e9   : > { %v4058_v45 = vadd.f32 %v6774_v21, %v4057_v7  ;;  %v4074_v7 = vld [vmem:[%s6820_s16 + $0x60] sm:$0xff] }
 0x4f0   : > { %v4059_v40 = vpop.f32.mrf.mxu3 }
 0x4f1   : > { %v6897_v22 = vadd.f32 %v6774_v21, %v4059_v40  ;;  %v4136_v40 = vadd.f32 1.0, %v6890_v34 }
 0x4f7   : > { %v4183_v58 = vpop.permute.xlu2 %4182 }
 0x4f8   : > { %v4225_v55 = vadd.f32 %v4183_v58, %v4145_v42 }
 0x4fa   : > { %4242 = vst.msk [vmem:[%s6840_s17 + $0x28] sm:$0xff] %vm4236_vm2, %v4225_v55  ;;  %v4042_v32 = vpop.f32.mrf.mxu1  ;;  %v4138_v55 = vadd.f32 1.0, %v4058_v45 }
 0x4fb   : > { %v4043_v19 = vadd.f32 %v6774_v21, %v4042_v32  ;;  %v4122_v32 = vmul.f32 %v6831_v30, %v4099_v15 }
 0x4fd   : > { %4188 = vrot.lane.b32.xlu2 %v4043_v19, %s4716_s19  ;;  %v4132_v59 = vadd.f32 1.0, %v4043_v19  ;;  %v4154_v19 = vmul.f32 %v4138_v55, %v4122_v32 }
 0x4ff   : > { %v4148_v35 = vmul.f32 %v4132_v59, %v4116_v47 }
 0x502   : > { %v4044_v50 = vpop.f32.mrf.mxu1 }
 0x503   : > { %v6882_v54 = vadd.f32 %v6774_v21, %v4044_v50  ;;  %v4115_v21 = vmul.f32 %v6831_v30, %v4092_v60  ;;  %v4094_v50 = vsub.f32 %v4071_v28, %v6822_v49 }
 0x505   : > { %4190 = vrot.lane.b32.xlu0 %v6882_v54, %s4716_s19  ;;  %4194 = vrot.lane.b32.xlu2 %v4050_v26, %s4716_s19  ;;  %v4147_v51 = vmul.f32 %v4131_v57, %v4115_v21  ;;  %v4133_v13 = vadd.f32 1.0, %v6882_v54  ;;  %v4117_v26 = vmul.f32 %v6831_v30, %v4094_v50  ;;  %v4100_v54 = vsub.f32 %v4077_v4, %v6822_v49 }
 0x507   : > { %v4181_v6 = vpop.permute.xlu1 %4180  ;;  %v4123_v60 = vmul.f32 %v6831_v30, %v4100_v54 }
 0x508   : > { %v4224_v9 = vadd.f32 %v4181_v6, %v4144_v63  ;;  %v4149_v63 = vmul.f32 %v4133_v13, %v4117_v26  ;;  %v4097_v6 = vsub.f32 %v4074_v7, %v6822_v49 }
 0x50a   : > { %4241 = vst.msk [vmem:[%s6840_s17 + $0x20] sm:$0xff] %vm4236_vm2, %v4224_v9  ;;  %v4120_v36 = vmul.f32 %v6831_v30, %v4097_v6 }
 0x50c   : > { %v4152_v17 = vmul.f32 %v4136_v40, %v4120_v36 }
 0x50d   : > { %4196 = vrot.lane.b32.xlu0 %v6890_v34, %s4716_s19  ;;  %4200 = vrot.lane.b32.xlu2 %v4058_v45, %s4716_s19 }
 0x515   : > { %4202 = vrot.lane.b32.xlu0 %v6897_v22, %s4716_s19 }
 0x539   : > { %v4185_v31 = vpop.permute.xlu0 %4184 }
 0x53a   : > { %v4226_v43 = vadd.f32 %v4185_v31, %v4146_v41  ;;  %v4139_v41 = vadd.f32 1.0, %v6897_v22 }
 0x53c   : > { %4243 = vst.msk [vmem:[%s6840_s17 + $0x30] sm:$0xff] %vm4236_vm2, %v4226_v43  ;;  %v4155_v31 = vmul.f32 %v4139_v41, %v4123_v60 }
 0x541   : > { %v4187_v53 = vpop.permute.xlu1 %4186 }
 0x542   : > { %v4227_v5 = vadd.f32 %v4187_v53, %v4147_v51 }
 0x544   : > { %4244 = vst.msk [vmem:[%s6840_s17 + $0x38] sm:$0xff] %vm4236_vm2, %v4227_v5 }
 0x549   : > { %v4193_v61 = vpop.permute.xlu1 %4192 }
 0x54a   : > { %v4230_v16 = vadd.f32 %v4193_v61, %v4150_v48 }
 0x54c   : > { %4247 = vst.msk [vmem:[%s6840_s17 + $0x50] sm:$0xff] %vm4236_vm2, %v4230_v16 }
 0x551   : > { %v4199_v33 = vpop.permute.xlu1 %4198 }
 0x552   : > { %v4233_v20 = vadd.f32 %v4199_v33, %v4153_v38 }
 0x554   : > { %4250 = vst.msk [vmem:[%s6840_s17 + $0x68] sm:$0xff] %vm4236_vm2, %v4233_v20 }
 0x557   : > { %v4189_v18 = vpop.permute.xlu2 %4188 }
 0x558   : > { %v4228_v56 = vadd.f32 %v4189_v18, %v4148_v35 }
 0x55a   : > { %4245 = vst.msk [vmem:[%s6840_s17 + $0x40] sm:$0xff] %vm4236_vm2, %v4228_v56 }
 0x55f   : > { %v4195_v42 = vpop.permute.xlu2 %4194 }
 0x560   : > { %v4231_v58 = vadd.f32 %v4195_v42, %v4151_v1 }
 0x562   : > { %4248 = vst.msk [vmem:[%s6840_s17 + $0x58] sm:$0xff] %vm4236_vm2, %v4231_v58 }
 0x567   : > { %v4201_v37 = vpop.permute.xlu2 %4200 }
 0x568   : > { %v4234_v11 = vadd.f32 %v4201_v37, %v4154_v19 }
 0x56a   : > { %4251 = vst.msk [vmem:[%s6840_s17 + $0x70] sm:$0xff] %vm4236_vm2, %v4234_v11 }
 0x577   : > { %v4191_v9 = vpop.permute.xlu0 %4190 }
 0x578   : > { %v4229_v45 = vadd.f32 %v4191_v9, %v4149_v63 }
 0x57a   : > { %4246 = vst.msk [vmem:[%s6840_s17 + $0x48] sm:$0xff] %vm4236_vm2, %v4229_v45 }
 0x57f   : > { %v4197_v44 = vpop.permute.xlu0 %4196 }
 0x580   : > { %v4232_v0 = vadd.f32 %v4197_v44, %v4152_v17 }
 0x582   : > { %4249 = vst.msk [vmem:[%s6840_s17 + $0x60] sm:$0xff] %vm4236_vm2, %v4232_v0 }
 0x587   : > { %v4203_v43 = vpop.permute.xlu0 %4202 }
 0x588   : > { %v4235_v57 = vadd.f32 %v4203_v43, %v4155_v31 }
 0x58a   : > { %4252 = vst.msk [vmem:[%s6840_s17 + $0x78] sm:$0xff] %vm4236_vm2, %v4235_v57 }
 0x58b PF: > { %s18_s9 = sadd.s32 1, %s4698_s9   ;;  %s7080_s27 = smov %s4690_s29 }
 0x58c   : > { %p15_p8 = scmp.ge.s32.totalorder %s18_s9, 6   ;;  %s7081_s28 = smov %s4694_s30 }
 0x58d   : > { %s7082_s29 = smov %s7085_s10  ;;  %s7083_s30 = smov %s7089_s11 }
 0x58e   :  { %17 = sbr.rel (!%p15_p8) target bundleno = 3 (0x3), region = 93 }

</bundles_post_ra>
